<compile_context>
chip_gen: v7x
topology: tpu7x:2x2x1
jax: 0.10.0
libtpu: 0.0.40
codegen_flags: <defaults>
</compile_context>

<pallas_src>
import functools

import jax
import jax.numpy as jnp
from jax import lax
from jax.experimental import pallas as pl
from jax.experimental.pallas import tpu as pltpu

VECTOR_SIZE = 100
D_PAD = 128   # lane-aligned input width
H_PAD = 128   # lane-aligned hidden width (each gate = one full 128-lane group)


def _round_up(x, m):
    return (x + m - 1) // m * m


def _sigmoid(x):
    # sigmoid(x) = 0.5 * tanh(x / 2) + 0.5  -> EUP transcendental, no VPU divide.
    return 0.5 * jnp.tanh(0.5 * x) + 0.5


# --------------------------------------------------------------------------
# Kernel
# --------------------------------------------------------------------------
def deeplink_kernel(x1_ref, x2_ref, x3_ref,
                    wi1_ref, wh1_ref, b1_ref,
                    wi2_ref, wh2_ref, b2_ref,
                    wi3_ref, wh3_ref, b3_ref,
                    out_ref,
                    gx1_ref, gx2_ref, gx3_ref,
                    h1_ref, c1_ref, h2_ref, c2_ref, h3_ref, c3_ref):
    t_chunk = pl.program_id(0)
    TCB, _DP = x1_ref.shape            # TC * BP rows (time-chunk, batch flattened)
    BP, HP = h1_ref.shape
    TC = TCB // BP
    G = 4 * HP

    # -------- init carries on the first time chunk --------
    @pl.when(t_chunk == 0)
    def _init():
        for r in (h1_ref, c1_ref, h2_ref, c2_ref, h3_ref, c3_ref):
            r[...] = jnp.zeros_like(r)

    # -------- hoisted input projection: one big MXU matmul per stream --------
    def project(x_ref, wi_ref, b_ref, gx_ref):
        gx_ref[...] = (jnp.dot(x_ref[...], wi_ref[...],
                               preferred_element_type=jnp.float32)
                       + b_ref[...])

    project(x1_ref, wi1_ref, b1_ref, gx1_ref)
    project(x2_ref, wi2_ref, b2_ref, gx2_ref)
    project(x3_ref, wi3_ref, b3_ref, gx3_ref)

    wh1 = wh1_ref[...]
    wh2 = wh2_ref[...]
    wh3 = wh3_ref[...]

    def cell(gates, c):
        # gate order i, f, g, o; each slice is a full 128-lane group (aligned).
        i_g = _sigmoid(gates[:, 0 * HP:1 * HP])
        f_g = _sigmoid(gates[:, 1 * HP:2 * HP])
        g_g = jnp.tanh(gates[:, 2 * HP:3 * HP])
        o_g = _sigmoid(gates[:, 3 * HP:4 * HP])
        c_new = f_g * c + i_g * g_g
        h_new = o_g * jnp.tanh(c_new)
        return h_new, c_new

    # -------- three interleaved recurrences in one (unrolled) loop --------
    def step(t, carry):
        h1, c1, h2, c2, h3, c3 = carry
        row = pl.multiple_of(t * BP, 8)
        g1 = gx1_ref[pl.ds(row, BP), :] + jnp.dot(
            h1, wh1, preferred_element_type=jnp.float32)
        g2 = gx2_ref[pl.ds(row, BP), :] + jnp.dot(
            h2, wh2, preferred_element_type=jnp.float32)
        g3 = gx3_ref[pl.ds(row, BP), :] + jnp.dot(
            h3, wh3, preferred_element_type=jnp.float32)
        h1, c1 = cell(g1, c1)
        h2, c2 = cell(g2, c2)
        h3, c3 = cell(g3, c3)
        return h1, c1, h2, c2, h3, c3

    carry = (h1_ref[...], c1_ref[...], h2_ref[...],
             c2_ref[...], h3_ref[...], c3_ref[...])
    carry = lax.fori_loop(0, TC, step, carry, unroll=True)
    (h1_ref[...], c1_ref[...], h2_ref[...],
     c2_ref[...], h3_ref[...], c3_ref[...]) = carry

    # -------- finalize on the last time chunk: cosine -> max -> sigmoid --------
    @pl.when(t_chunk == pl.num_programs(0) - 1)
    def _finalize():
        eps = jnp.float32(1e-8)
        h1, h2, h3 = h1_ref[...], h2_ref[...], h3_ref[...]

        def cosine(a, b):
            dot = jnp.sum(a * b, axis=1, keepdims=True)
            na = jnp.maximum(jnp.sqrt(jnp.sum(a * a, axis=1, keepdims=True)), eps)
            nb = jnp.maximum(jnp.sqrt(jnp.sum(b * b, axis=1, keepdims=True)), eps)
            return dot / (na * nb)

        s = jnp.maximum(cosine(h1, h2), cosine(h1, h3))
        out_ref[...] = _sigmoid(s)


# --------------------------------------------------------------------------
# Wrapper
# --------------------------------------------------------------------------
def _prep_x(x, BP):
    """(B, T, D) batch-first -> time-major, padded, flattened (T*BP, D_PAD)."""
    B, T, D = x.shape
    x = jnp.transpose(x, (1, 0, 2))                          # (T, B, D)
    x = jnp.pad(x, ((0, 0), (0, BP - B), (0, D_PAD - D)))    # (T, BP, DP)
    return x.reshape(T * BP, D_PAD)


@functools.partial(jax.jit, static_argnames=("time_chunk",))
def deeplink_forward(x1, x2, x3, params, time_chunk=4):
    """x1, x2, x3: (B, T, VECTOR_SIZE) batch-first, like nn.LSTM(batch_first=True)."""
    B, T, _D = x1.shape
    BP = _round_up(B, 8)
    TC = time_chunk if (T % time_chunk == 0) else T
    grid = (T // TC,)
    G = 4 * H_PAD

    x1p, x2p, x3p = (_prep_x(x, BP) for x in (x1, x2, x3))

    x_spec = pl.BlockSpec((TC * BP, D_PAD), lambda t: (t, 0))
    wi_spec = pl.BlockSpec((D_PAD, G), lambda t: (0, 0))
    wh_spec = pl.BlockSpec((H_PAD, G), lambda t: (0, 0))
    b_spec = pl.BlockSpec((1, G), lambda t: (0, 0))
    out_spec = pl.BlockSpec((BP, 1), lambda t: (0, 0))

    flat = []
    for k in (1, 2, 3):
        flat += [params[f"wi{k}"], params[f"wh{k}"], params[f"b{k}"]]

    out = pl.pallas_call(
        deeplink_kernel,
        out_shape=jax.ShapeDtypeStruct((BP, 1), jnp.float32),
        grid=grid,
        in_specs=[x_spec, x_spec, x_spec,
                  wi_spec, wh_spec, b_spec,
                  wi_spec, wh_spec, b_spec,
                  wi_spec, wh_spec, b_spec],
        out_specs=out_spec,
        scratch_shapes=(
            [pltpu.VMEM((TC * BP, G), jnp.float32)] * 3      # gates_x per stream
            + [pltpu.VMEM((BP, H_PAD), jnp.float32)] * 6     # h1,c1,h2,c2,h3,c3
        ),
        compiler_params=pltpu.CompilerParams(
            dimension_semantics=("arbitrary",)),
    )(x1p, x2p, x3p, *flat)
    return out[:B]


# --------------------------------------------------------------------------
# Parameters
# --------------------------------------------------------------------------
def init_raw_params(key, hidden_size, input_size=VECTOR_SIZE):
    """nn.LSTM-style params: (w_ih (4H,D), w_hh (4H,H), b_ih (4H,), b_hh (4H,))."""
    bound = float(hidden_size) ** -0.5
    keys = jax.random.split(key, 12)
    raw = {}
    i = 0
    for k in (1, 2, 3):
        w_ih = jax.random.uniform(keys[i], (4 * hidden_size, input_size),
                                  jnp.float32, -bound, bound); i += 1
        w_hh = jax.random.uniform(keys[i], (4 * hidden_size, hidden_size),
                                  jnp.float32, -bound, bound); i += 1
        b_ih = jax.random.uniform(keys[i], (4 * hidden_size,),
                                  jnp.float32, -bound, bound); i += 1
        b_hh = jax.random.uniform(keys[i], (4 * hidden_size,),
                                  jnp.float32, -bound, bound); i += 1
        raw[k] = (w_ih, w_hh, b_ih, b_hh)
    return raw


def prepare_params(raw, hidden_size, input_size=VECTOR_SIZE):
    """Transpose + zero-pad PyTorch LSTM weights to lane-aligned kernel layout.

    wi: (D_PAD, 4*H_PAD), wh: (H_PAD, 4*H_PAD), b: (1, 4*H_PAD); per-gate padding
    keeps the i,f,g,o block structure so padded hidden units stay exactly zero.
    """
    H, D = hidden_size, input_size
    out = {}
    for k in (1, 2, 3):
        w_ih, w_hh, b_ih, b_hh = raw[k]
        wi = w_ih.reshape(4, H, D)
        wi = jnp.pad(wi, ((0, 0), (0, H_PAD - H), (0, D_PAD - D)))
        wi = jnp.transpose(wi, (2, 0, 1)).reshape(D_PAD, 4 * H_PAD)
        wh = w_hh.reshape(4, H, H)
        wh = jnp.pad(wh, ((0, 0), (0, H_PAD - H), (0, H_PAD - H)))
        wh = jnp.transpose(wh, (2, 0, 1)).reshape(H_PAD, 4 * H_PAD)
        b = (b_ih + b_hh).reshape(4, H)
        b = jnp.pad(b, ((0, 0), (0, H_PAD - H))).reshape(1, 4 * H_PAD)
        out[f"wi{k}"] = wi
        out[f"wh{k}"] = wh
        out[f"b{k}"] = b
    return out


# --------------------------------------------------------------------------
# Pure-JAX reference (correctness check only)
# --------------------------------------------------------------------------
def _lstm_ref(x, w_ih, w_hh, b_ih, b_hh):
    B, _T, _D = x.shape
    H = w_hh.shape[1]
    wi, wh, b = w_ih.T, w_hh.T, b_ih + b_hh

    def step(carry, x_t):
        h, c = carry
        gates = x_t @ wi + h @ wh + b
        i = jax.nn.sigmoid(gates[:, :H])
        f = jax.nn.sigmoid(gates[:, H:2 * H])
        g = jnp.tanh(gates[:, 2 * H:3 * H])
        o = jax.nn.sigmoid(gates[:, 3 * H:])
        c = f * c + i * g
        h = o * jnp.tanh(c)
        return (h, c), None

    (h, _), _ = lax.scan(step,
                         (jnp.zeros((B, H), jnp.float32),
                          jnp.zeros((B, H), jnp.float32)),
                         jnp.transpose(x, (1, 0, 2)))
    return h


def _reference_forward(x1, x2, x3, raw):
    h1 = _lstm_ref(x1, *raw[1])
    h2 = _lstm_ref(x2, *raw[2])
    h3 = _lstm_ref(x3, *raw[3])
    eps = 1e-8

    def cosine(a, b):
        dot = jnp.sum(a * b, axis=1)
        na = jnp.maximum(jnp.sqrt(jnp.sum(a * a, axis=1)), eps)
        nb = jnp.maximum(jnp.sqrt(jnp.sum(b * b, axis=1)), eps)
        return dot / (na * nb)

    score = jnp.maximum(cosine(h1, h2), cosine(h1, h3))[:, None]
    return jax.nn.sigmoid(score)


if __name__ == "__main__":
    B, T, H = 2, 8, 32
    key = jax.random.PRNGKey(0)
    kx1, kx2, kx3, kp = jax.random.split(key, 4)
    x1 = jax.random.normal(kx1, (B, T, VECTOR_SIZE), jnp.float32)
    x2 = jax.random.normal(kx2, (B, T, VECTOR_SIZE), jnp.float32)
    x3 = jax.random.normal(kx3, (B, T, VECTOR_SIZE), jnp.float32)

    raw = init_raw_params(kp, H)
    params = prepare_params(raw, H)

    out = deeplink_forward(x1, x2, x3, params)
    jax.block_until_ready(out)
    assert out.shape == (B, 1), out.shape

    ref = _reference_forward(x1, x2, x3, raw)
    assert jnp.allclose(out, ref, atol=5e-3), (out, ref)

    print("KERNEL_OK")
</pallas_src>

<mosaic_0001>
module attributes {stable_mosaic.version = 11 : i64} {
  func.func @deeplink_kernel(%arg0: i32, %arg1: memref<32x128xf32, #tpu.memory_space<vmem>>, %arg2: memref<32x128xf32, #tpu.memory_space<vmem>>, %arg3: memref<32x128xf32, #tpu.memory_space<vmem>>, %arg4: memref<128x512xf32, #tpu.memory_space<vmem>>, %arg5: memref<128x512xf32, #tpu.memory_space<vmem>>, %arg6: memref<1x512xf32, #tpu.memory_space<vmem>>, %arg7: memref<128x512xf32, #tpu.memory_space<vmem>>, %arg8: memref<128x512xf32, #tpu.memory_space<vmem>>, %arg9: memref<1x512xf32, #tpu.memory_space<vmem>>, %arg10: memref<128x512xf32, #tpu.memory_space<vmem>>, %arg11: memref<128x512xf32, #tpu.memory_space<vmem>>, %arg12: memref<1x512xf32, #tpu.memory_space<vmem>>, %arg13: memref<8x1xf32, #tpu.memory_space<vmem>>, %arg14: memref<32x512xf32, #tpu.memory_space<vmem>>, %arg15: memref<32x512xf32, #tpu.memory_space<vmem>>, %arg16: memref<32x512xf32, #tpu.memory_space<vmem>>, %arg17: memref<8x128xf32, #tpu.memory_space<vmem>>, %arg18: memref<8x128xf32, #tpu.memory_space<vmem>>, %arg19: memref<8x128xf32, #tpu.memory_space<vmem>>, %arg20: memref<8x128xf32, #tpu.memory_space<vmem>>, %arg21: memref<8x128xf32, #tpu.memory_space<vmem>>, %arg22: memref<8x128xf32, #tpu.memory_space<vmem>>) attributes {dimension_semantics = [#tpu.dimension_semantics<arbitrary>], iteration_bounds = array<i64: 2>, scalar_prefetch = 0 : i64, scratch_operands = 9 : i64, tpu.core_type = #tpu.core_type<tc>, window_params = [{transform_indices = @transform_0, window_bounds = array<i64: 32, 128>}, {transform_indices = @transform_1, window_bounds = array<i64: 32, 128>}, {transform_indices = @transform_2, window_bounds = array<i64: 32, 128>}, {pipeline_mode = #tpu.pipeline_mode<synchronous>, transform_indices = @transform_3, window_bounds = array<i64: 128, 512>}, {pipeline_mode = #tpu.pipeline_mode<synchronous>, transform_indices = @transform_4, window_bounds = array<i64: 128, 512>}, {pipeline_mode = #tpu.pipeline_mode<synchronous>, transform_indices = @transform_5, window_bounds = array<i64: 1, 512>}, {pipeline_mode = #tpu.pipeline_mode<synchronous>, transform_indices = @transform_6, window_bounds = array<i64: 128, 512>}, {pipeline_mode = #tpu.pipeline_mode<synchronous>, transform_indices = @transform_7, window_bounds = array<i64: 128, 512>}, {pipeline_mode = #tpu.pipeline_mode<synchronous>, transform_indices = @transform_8, window_bounds = array<i64: 1, 512>}, {pipeline_mode = #tpu.pipeline_mode<synchronous>, transform_indices = @transform_9, window_bounds = array<i64: 128, 512>}, {pipeline_mode = #tpu.pipeline_mode<synchronous>, transform_indices = @transform_10, window_bounds = array<i64: 128, 512>}, {pipeline_mode = #tpu.pipeline_mode<synchronous>, transform_indices = @transform_11, window_bounds = array<i64: 1, 512>}, {pipeline_mode = #tpu.pipeline_mode<synchronous>, transform_indices = @transform_12, window_bounds = array<i64: 8, 1>}]} {
    %c0_i32 = arith.constant 0 : i32
    %0 = arith.cmpi eq, %arg0, %c0_i32 : i32
    %1 = arith.extui %0 : i1 to i32
    %c0_i32_0 = arith.constant 0 : i32
    %2 = arith.cmpi ne, %1, %c0_i32_0 : i32
    scf.if %2 {
      %cst_194 = arith.constant 0.000000e+00 : f32
      %470 = vector.broadcast %cst_194 : f32 to vector<8x128xf32>
      %c0_195 = arith.constant 0 : index
      %c0_196 = arith.constant 0 : index
      %471 = vector.load %arg17[%c0_195, %c0_196] : memref<8x128xf32, #tpu.memory_space<vmem>>, vector<8x128xf32>
      tpu.vector_store %arg17[%c0_195, %c0_196], %470 {strides = array<i32>} : memref<8x128xf32, #tpu.memory_space<vmem>>, vector<8x128xf32>,
      %cst_197 = arith.constant 0.000000e+00 : f32
      %472 = vector.broadcast %cst_197 : f32 to vector<8x128xf32>
      %c0_198 = arith.constant 0 : index
      %c0_199 = arith.constant 0 : index
      %473 = vector.load %arg18[%c0_198, %c0_199] : memref<8x128xf32, #tpu.memory_space<vmem>>, vector<8x128xf32>
      tpu.vector_store %arg18[%c0_198, %c0_199], %472 {strides = array<i32>} : memref<8x128xf32, #tpu.memory_space<vmem>>, vector<8x128xf32>,
      %cst_200 = arith.constant 0.000000e+00 : f32
      %474 = vector.broadcast %cst_200 : f32 to vector<8x128xf32>
      %c0_201 = arith.constant 0 : index
      %c0_202 = arith.constant 0 : index
      %475 = vector.load %arg19[%c0_201, %c0_202] : memref<8x128xf32, #tpu.memory_space<vmem>>, vector<8x128xf32>
      tpu.vector_store %arg19[%c0_201, %c0_202], %474 {strides = array<i32>} : memref<8x128xf32, #tpu.memory_space<vmem>>, vector<8x128xf32>,
      %cst_203 = arith.constant 0.000000e+00 : f32
      %476 = vector.broadcast %cst_203 : f32 to vector<8x128xf32>
      %c0_204 = arith.constant 0 : index
      %c0_205 = arith.constant 0 : index
      %477 = vector.load %arg20[%c0_204, %c0_205] : memref<8x128xf32, #tpu.memory_space<vmem>>, vector<8x128xf32>
      tpu.vector_store %arg20[%c0_204, %c0_205], %476 {strides = array<i32>} : memref<8x128xf32, #tpu.memory_space<vmem>>, vector<8x128xf32>,
      %cst_206 = arith.constant 0.000000e+00 : f32
      %478 = vector.broadcast %cst_206 : f32 to vector<8x128xf32>
      %c0_207 = arith.constant 0 : index
      %c0_208 = arith.constant 0 : index
      %479 = vector.load %arg21[%c0_207, %c0_208] : memref<8x128xf32, #tpu.memory_space<vmem>>, vector<8x128xf32>
      tpu.vector_store %arg21[%c0_207, %c0_208], %478 {strides = array<i32>} : memref<8x128xf32, #tpu.memory_space<vmem>>, vector<8x128xf32>,
      %cst_209 = arith.constant 0.000000e+00 : f32
      %480 = vector.broadcast %cst_209 : f32 to vector<8x128xf32>
      %c0_210 = arith.constant 0 : index
      %c0_211 = arith.constant 0 : index
      %481 = vector.load %arg22[%c0_210, %c0_211] : memref<8x128xf32, #tpu.memory_space<vmem>>, vector<8x128xf32>
      tpu.vector_store %arg22[%c0_210, %c0_211], %480 {strides = array<i32>} : memref<8x128xf32, #tpu.memory_space<vmem>>, vector<8x128xf32>,
    } else {
    }
    %c0 = arith.constant 0 : index
    %c0_1 = arith.constant 0 : index
    %3 = vector.load %arg1[%c0, %c0_1] : memref<32x128xf32, #tpu.memory_space<vmem>>, vector<32x128xf32>
    %c0_2 = arith.constant 0 : index
    %c0_3 = arith.constant 0 : index
    %4 = vector.load %arg4[%c0_2, %c0_3] : memref<128x512xf32, #tpu.memory_space<vmem>>, vector<128x512xf32>
    %cst = arith.constant dense<0.000000e+00> : vector<32x512xf32>
    %5 = tpu.matmul %3, %4, %cst {dimension_numbers = #tpu.dot_dimension_numbers<[1], [0], [0], [1], [0, 0, 1, 1], [], []>} : vector<32x128xf32>, vector<128x512xf32>, vector<32x512xf32> -> vector<32x512xf32>
    %c0_4 = arith.constant 0 : index
    %c0_5 = arith.constant 0 : index
    %6 = vector.load %arg6[%c0_4, %c0_5] : memref<1x512xf32, #tpu.memory_space<vmem>>, vector<1x512xf32>
    %7 = vector.broadcast %6 : vector<1x512xf32> to vector<32x512xf32>
    %8 = arith.addf %5, %7 : vector<32x512xf32>
    %c0_6 = arith.constant 0 : index
    %c0_7 = arith.constant 0 : index
    %9 = vector.load %arg14[%c0_6, %c0_7] : memref<32x512xf32, #tpu.memory_space<vmem>>, vector<32x512xf32>
    tpu.vector_store %arg14[%c0_6, %c0_7], %8 {strides = array<i32>} : memref<32x512xf32, #tpu.memory_space<vmem>>, vector<32x512xf32>,
    %c0_8 = arith.constant 0 : index
    %c0_9 = arith.constant 0 : index
    %10 = vector.load %arg2[%c0_8, %c0_9] : memref<32x128xf32, #tpu.memory_space<vmem>>, vector<32x128xf32>
    %c0_10 = arith.constant 0 : index
    %c0_11 = arith.constant 0 : index
    %11 = vector.load %arg7[%c0_10, %c0_11] : memref<128x512xf32, #tpu.memory_space<vmem>>, vector<128x512xf32>
    %cst_12 = arith.constant dense<0.000000e+00> : vector<32x512xf32>
    %12 = tpu.matmul %10, %11, %cst_12 {dimension_numbers = #tpu.dot_dimension_numbers<[1], [0], [0], [1], [0, 0, 1, 1], [], []>} : vector<32x128xf32>, vector<128x512xf32>, vector<32x512xf32> -> vector<32x512xf32>
    %c0_13 = arith.constant 0 : index
    %c0_14 = arith.constant 0 : index
    %13 = vector.load %arg9[%c0_13, %c0_14] : memref<1x512xf32, #tpu.memory_space<vmem>>, vector<1x512xf32>
    %14 = vector.broadcast %13 : vector<1x512xf32> to vector<32x512xf32>
    %15 = arith.addf %12, %14 : vector<32x512xf32>
    %c0_15 = arith.constant 0 : index
    %c0_16 = arith.constant 0 : index
    %16 = vector.load %arg15[%c0_15, %c0_16] : memref<32x512xf32, #tpu.memory_space<vmem>>, vector<32x512xf32>
    tpu.vector_store %arg15[%c0_15, %c0_16], %15 {strides = array<i32>} : memref<32x512xf32, #tpu.memory_space<vmem>>, vector<32x512xf32>,
    %c0_17 = arith.constant 0 : index
    %c0_18 = arith.constant 0 : index
    %17 = vector.load %arg3[%c0_17, %c0_18] : memref<32x128xf32, #tpu.memory_space<vmem>>, vector<32x128xf32>
    %c0_19 = arith.constant 0 : index
    %c0_20 = arith.constant 0 : index
    %18 = vector.load %arg10[%c0_19, %c0_20] : memref<128x512xf32, #tpu.memory_space<vmem>>, vector<128x512xf32>
    %cst_21 = arith.constant dense<0.000000e+00> : vector<32x512xf32>
    %19 = tpu.matmul %17, %18, %cst_21 {dimension_numbers = #tpu.dot_dimension_numbers<[1], [0], [0], [1], [0, 0, 1, 1], [], []>} : vector<32x128xf32>, vector<128x512xf32>, vector<32x512xf32> -> vector<32x512xf32>
    %c0_22 = arith.constant 0 : index
    %c0_23 = arith.constant 0 : index
    %20 = vector.load %arg12[%c0_22, %c0_23] : memref<1x512xf32, #tpu.memory_space<vmem>>, vector<1x512xf32>
    %21 = vector.broadcast %20 : vector<1x512xf32> to vector<32x512xf32>
    %22 = arith.addf %19, %21 : vector<32x512xf32>
    %c0_24 = arith.constant 0 : index
    %c0_25 = arith.constant 0 : index
    %23 = vector.load %arg16[%c0_24, %c0_25] : memref<32x512xf32, #tpu.memory_space<vmem>>, vector<32x512xf32>
    tpu.vector_store %arg16[%c0_24, %c0_25], %22 {strides = array<i32>} : memref<32x512xf32, #tpu.memory_space<vmem>>, vector<32x512xf32>,
    %c0_26 = arith.constant 0 : index
    %c0_27 = arith.constant 0 : index
    %24 = vector.load %arg5[%c0_26, %c0_27] : memref<128x512xf32, #tpu.memory_space<vmem>>, vector<128x512xf32>
    %c0_28 = arith.constant 0 : index
    %c0_29 = arith.constant 0 : index
    %25 = vector.load %arg8[%c0_28, %c0_29] : memref<128x512xf32, #tpu.memory_space<vmem>>, vector<128x512xf32>
    %c0_30 = arith.constant 0 : index
    %c0_31 = arith.constant 0 : index
    %26 = vector.load %arg11[%c0_30, %c0_31] : memref<128x512xf32, #tpu.memory_space<vmem>>, vector<128x512xf32>
    %c0_32 = arith.constant 0 : index
    %c0_33 = arith.constant 0 : index
    %27 = vector.load %arg17[%c0_32, %c0_33] : memref<8x128xf32, #tpu.memory_space<vmem>>, vector<8x128xf32>
    %c0_34 = arith.constant 0 : index
    %c0_35 = arith.constant 0 : index
    %28 = vector.load %arg18[%c0_34, %c0_35] : memref<8x128xf32, #tpu.memory_space<vmem>>, vector<8x128xf32>
    %c0_36 = arith.constant 0 : index
    %c0_37 = arith.constant 0 : index
    %29 = vector.load %arg19[%c0_36, %c0_37] : memref<8x128xf32, #tpu.memory_space<vmem>>, vector<8x128xf32>
    %c0_38 = arith.constant 0 : index
    %c0_39 = arith.constant 0 : index
    %30 = vector.load %arg20[%c0_38, %c0_39] : memref<8x128xf32, #tpu.memory_space<vmem>>, vector<8x128xf32>
    %c0_40 = arith.constant 0 : index
    %c0_41 = arith.constant 0 : index
    %31 = vector.load %arg21[%c0_40, %c0_41] : memref<8x128xf32, #tpu.memory_space<vmem>>, vector<8x128xf32>
    %c0_42 = arith.constant 0 : index
    %c0_43 = arith.constant 0 : index
    %32 = vector.load %arg22[%c0_42, %c0_43] : memref<8x128xf32, #tpu.memory_space<vmem>>, vector<8x128xf32>
    %c0_i32_44 = arith.constant 0 : i32
    %c8_i32 = arith.constant 8 : i32
    %33 = arith.muli %c0_i32_44, %c8_i32 : i32
    %34 = tpu.assume_multiple %33, 8 : i32
    %35 = arith.index_cast %34 : i32 to index
    %c0_45 = arith.constant 0 : index
    %36 = vector.load %arg14[%35, %c0_45] : memref<32x512xf32, #tpu.memory_space<vmem>>, vector<8x512xf32>
    %cst_46 = arith.constant dense<0.000000e+00> : vector<8x512xf32>
    %37 = tpu.matmul %27, %24, %cst_46 {dimension_numbers = #tpu.dot_dimension_numbers<[1], [0], [0], [1], [0, 0, 1, 1], [], []>} : vector<8x128xf32>, vector<128x512xf32>, vector<8x512xf32> -> vector<8x512xf32>
    %38 = arith.addf %36, %37 : vector<8x512xf32>
    %39 = arith.index_cast %34 : i32 to index
    %c0_47 = arith.constant 0 : index
    %40 = vector.load %arg15[%39, %c0_47] : memref<32x512xf32, #tpu.memory_space<vmem>>, vector<8x512xf32>
    %cst_48 = arith.constant dense<0.000000e+00> : vector<8x512xf32>
    %41 = tpu.matmul %29, %25, %cst_48 {dimension_numbers = #tpu.dot_dimension_numbers<[1], [0], [0], [1], [0, 0, 1, 1], [], []>} : vector<8x128xf32>, vector<128x512xf32>, vector<8x512xf32> -> vector<8x512xf32>
    %42 = arith.addf %40, %41 : vector<8x512xf32>
    %43 = arith.index_cast %34 : i32 to index
    %c0_49 = arith.constant 0 : index
    %44 = vector.load %arg16[%43, %c0_49] : memref<32x512xf32, #tpu.memory_space<vmem>>, vector<8x512xf32>
    %cst_50 = arith.constant dense<0.000000e+00> : vector<8x512xf32>
    %45 = tpu.matmul %31, %26, %cst_50 {dimension_numbers = #tpu.dot_dimension_numbers<[1], [0], [0], [1], [0, 0, 1, 1], [], []>} : vector<8x128xf32>, vector<128x512xf32>, vector<8x512xf32> -> vector<8x512xf32>
    %46 = arith.addf %44, %45 : vector<8x512xf32>
    %47 = vector.extract_strided_slice %38 {offsets = [0, 0], sizes = [8, 128], strides = [1, 1]} : vector<8x512xf32> to vector<8x128xf32>
    %cst_51 = arith.constant 5.000000e-01 : f32
    %48 = vector.broadcast %cst_51 : f32 to vector<8x128xf32>
    %49 = arith.mulf %48, %47 : vector<8x128xf32>
    %50 = math.tanh %49 : vector<8x128xf32>
    %cst_52 = arith.constant 5.000000e-01 : f32
    %51 = vector.broadcast %cst_52 : f32 to vector<8x128xf32>
    %52 = arith.mulf %51, %50 : vector<8x128xf32>
    %cst_53 = arith.constant 5.000000e-01 : f32
    %53 = vector.broadcast %cst_53 : f32 to vector<8x128xf32>
    %54 = arith.addf %52, %53 : vector<8x128xf32>
    %55 = vector.extract_strided_slice %38 {offsets = [0, 128], sizes = [8, 128], strides = [1, 1]} : vector<8x512xf32> to vector<8x128xf32>
    %cst_54 = arith.constant 5.000000e-01 : f32
    %56 = vector.broadcast %cst_54 : f32 to vector<8x128xf32>
    %57 = arith.mulf %56, %55 : vector<8x128xf32>
    %58 = math.tanh %57 : vector<8x128xf32>
    %cst_55 = arith.constant 5.000000e-01 : f32
    %59 = vector.broadcast %cst_55 : f32 to vector<8x128xf32>
    %60 = arith.mulf %59, %58 : vector<8x128xf32>
    %cst_56 = arith.constant 5.000000e-01 : f32
    %61 = vector.broadcast %cst_56 : f32 to vector<8x128xf32>
    %62 = arith.addf %60, %61 : vector<8x128xf32>
    %63 = vector.extract_strided_slice %38 {offsets = [0, 256], sizes = [8, 128], strides = [1, 1]} : vector<8x512xf32> to vector<8x128xf32>
    %64 = math.tanh %63 : vector<8x128xf32>
    %65 = vector.extract_strided_slice %38 {offsets = [0, 384], sizes = [8, 128], strides = [1, 1]} : vector<8x512xf32> to vector<8x128xf32>
    %cst_57 = arith.constant 5.000000e-01 : f32
    %66 = vector.broadcast %cst_57 : f32 to vector<8x128xf32>
    %67 = arith.mulf %66, %65 : vector<8x128xf32>
    %68 = math.tanh %67 : vector<8x128xf32>
    %cst_58 = arith.constant 5.000000e-01 : f32
    %69 = vector.broadcast %cst_58 : f32 to vector<8x128xf32>
    %70 = arith.mulf %69, %68 : vector<8x128xf32>
    %cst_59 = arith.constant 5.000000e-01 : f32
    %71 = vector.broadcast %cst_59 : f32 to vector<8x128xf32>
    %72 = arith.addf %70, %71 : vector<8x128xf32>
    %73 = arith.mulf %62, %28 : vector<8x128xf32>
    %74 = arith.mulf %54, %64 : vector<8x128xf32>
    %75 = arith.addf %73, %74 : vector<8x128xf32>
    %76 = math.tanh %75 : vector<8x128xf32>
    %77 = arith.mulf %72, %76 : vector<8x128xf32>
    %78 = vector.extract_strided_slice %42 {offsets = [0, 0], sizes = [8, 128], strides = [1, 1]} : vector<8x512xf32> to vector<8x128xf32>
    %cst_60 = arith.constant 5.000000e-01 : f32
    %79 = vector.broadcast %cst_60 : f32 to vector<8x128xf32>
    %80 = arith.mulf %79, %78 : vector<8x128xf32>
    %81 = math.tanh %80 : vector<8x128xf32>
    %cst_61 = arith.constant 5.000000e-01 : f32
    %82 = vector.broadcast %cst_61 : f32 to vector<8x128xf32>
    %83 = arith.mulf %82, %81 : vector<8x128xf32>
    %cst_62 = arith.constant 5.000000e-01 : f32
    %84 = vector.broadcast %cst_62 : f32 to vector<8x128xf32>
    %85 = arith.addf %83, %84 : vector<8x128xf32>
    %86 = vector.extract_strided_slice %42 {offsets = [0, 128], sizes = [8, 128], strides = [1, 1]} : vector<8x512xf32> to vector<8x128xf32>
    %cst_63 = arith.constant 5.000000e-01 : f32
    %87 = vector.broadcast %cst_63 : f32 to vector<8x128xf32>
    %88 = arith.mulf %87, %86 : vector<8x128xf32>
    %89 = math.tanh %88 : vector<8x128xf32>
    %cst_64 = arith.constant 5.000000e-01 : f32
    %90 = vector.broadcast %cst_64 : f32 to vector<8x128xf32>
    %91 = arith.mulf %90, %89 : vector<8x128xf32>
    %cst_65 = arith.constant 5.000000e-01 : f32
    %92 = vector.broadcast %cst_65 : f32 to vector<8x128xf32>
    %93 = arith.addf %91, %92 : vector<8x128xf32>
    %94 = vector.extract_strided_slice %42 {offsets = [0, 256], sizes = [8, 128], strides = [1, 1]} : vector<8x512xf32> to vector<8x128xf32>
    %95 = math.tanh %94 : vector<8x128xf32>
    %96 = vector.extract_strided_slice %42 {offsets = [0, 384], sizes = [8, 128], strides = [1, 1]} : vector<8x512xf32> to vector<8x128xf32>
    %cst_66 = arith.constant 5.000000e-01 : f32
    %97 = vector.broadcast %cst_66 : f32 to vector<8x128xf32>
    %98 = arith.mulf %97, %96 : vector<8x128xf32>
    %99 = math.tanh %98 : vector<8x128xf32>
    %cst_67 = arith.constant 5.000000e-01 : f32
    %100 = vector.broadcast %cst_67 : f32 to vector<8x128xf32>
    %101 = arith.mulf %100, %99 : vector<8x128xf32>
    %cst_68 = arith.constant 5.000000e-01 : f32
    %102 = vector.broadcast %cst_68 : f32 to vector<8x128xf32>
    %103 = arith.addf %101, %102 : vector<8x128xf32>
    %104 = arith.mulf %93, %30 : vector<8x128xf32>
    %105 = arith.mulf %85, %95 : vector<8x128xf32>
    %106 = arith.addf %104, %105 : vector<8x128xf32>
    %107 = math.tanh %106 : vector<8x128xf32>
    %108 = arith.mulf %103, %107 : vector<8x128xf32>
    %109 = vector.extract_strided_slice %46 {offsets = [0, 0], sizes = [8, 128], strides = [1, 1]} : vector<8x512xf32> to vector<8x128xf32>
    %cst_69 = arith.constant 5.000000e-01 : f32
    %110 = vector.broadcast %cst_69 : f32 to vector<8x128xf32>
    %111 = arith.mulf %110, %109 : vector<8x128xf32>
    %112 = math.tanh %111 : vector<8x128xf32>
    %cst_70 = arith.constant 5.000000e-01 : f32
    %113 = vector.broadcast %cst_70 : f32 to vector<8x128xf32>
    %114 = arith.mulf %113, %112 : vector<8x128xf32>
    %cst_71 = arith.constant 5.000000e-01 : f32
    %115 = vector.broadcast %cst_71 : f32 to vector<8x128xf32>
    %116 = arith.addf %114, %115 : vector<8x128xf32>
    %117 = vector.extract_strided_slice %46 {offsets = [0, 128], sizes = [8, 128], strides = [1, 1]} : vector<8x512xf32> to vector<8x128xf32>
    %cst_72 = arith.constant 5.000000e-01 : f32
    %118 = vector.broadcast %cst_72 : f32 to vector<8x128xf32>
    %119 = arith.mulf %118, %117 : vector<8x128xf32>
    %120 = math.tanh %119 : vector<8x128xf32>
    %cst_73 = arith.constant 5.000000e-01 : f32
    %121 = vector.broadcast %cst_73 : f32 to vector<8x128xf32>
    %122 = arith.mulf %121, %120 : vector<8x128xf32>
    %cst_74 = arith.constant 5.000000e-01 : f32
    %123 = vector.broadcast %cst_74 : f32 to vector<8x128xf32>
    %124 = arith.addf %122, %123 : vector<8x128xf32>
    %125 = vector.extract_strided_slice %46 {offsets = [0, 256], sizes = [8, 128], strides = [1, 1]} : vector<8x512xf32> to vector<8x128xf32>
    %126 = math.tanh %125 : vector<8x128xf32>
    %127 = vector.extract_strided_slice %46 {offsets = [0, 384], sizes = [8, 128], strides = [1, 1]} : vector<8x512xf32> to vector<8x128xf32>
    %cst_75 = arith.constant 5.000000e-01 : f32
    %128 = vector.broadcast %cst_75 : f32 to vector<8x128xf32>
    %129 = arith.mulf %128, %127 : vector<8x128xf32>
    %130 = math.tanh %129 : vector<8x128xf32>
    %cst_76 = arith.constant 5.000000e-01 : f32
    %131 = vector.broadcast %cst_76 : f32 to vector<8x128xf32>
    %132 = arith.mulf %131, %130 : vector<8x128xf32>
    %cst_77 = arith.constant 5.000000e-01 : f32
    %133 = vector.broadcast %cst_77 : f32 to vector<8x128xf32>
    %134 = arith.addf %132, %133 : vector<8x128xf32>
    %135 = arith.mulf %124, %32 : vector<8x128xf32>
    %136 = arith.mulf %116, %126 : vector<8x128xf32>
    %137 = arith.addf %135, %136 : vector<8x128xf32>
    %138 = math.tanh %137 : vector<8x128xf32>
    %139 = arith.mulf %134, %138 : vector<8x128xf32>
    %c1_i32 = arith.constant 1 : i32
    %c8_i32_78 = arith.constant 8 : i32
    %140 = arith.muli %c1_i32, %c8_i32_78 : i32
    %141 = tpu.assume_multiple %140, 8 : i32
    %142 = arith.index_cast %141 : i32 to index
    %c0_79 = arith.constant 0 : index
    %143 = vector.load %arg14[%142, %c0_79] : memref<32x512xf32, #tpu.memory_space<vmem>>, vector<8x512xf32>
    %cst_80 = arith.constant dense<0.000000e+00> : vector<8x512xf32>
    %144 = tpu.matmul %77, %24, %cst_80 {dimension_numbers = #tpu.dot_dimension_numbers<[1], [0], [0], [1], [0, 0, 1, 1], [], []>} : vector<8x128xf32>, vector<128x512xf32>, vector<8x512xf32> -> vector<8x512xf32>
    %145 = arith.addf %143, %144 : vector<8x512xf32>
    %146 = arith.index_cast %141 : i32 to index
    %c0_81 = arith.constant 0 : index
    %147 = vector.load %arg15[%146, %c0_81] : memref<32x512xf32, #tpu.memory_space<vmem>>, vector<8x512xf32>
    %cst_82 = arith.constant dense<0.000000e+00> : vector<8x512xf32>
    %148 = tpu.matmul %108, %25, %cst_82 {dimension_numbers = #tpu.dot_dimension_numbers<[1], [0], [0], [1], [0, 0, 1, 1], [], []>} : vector<8x128xf32>, vector<128x512xf32>, vector<8x512xf32> -> vector<8x512xf32>
    %149 = arith.addf %147, %148 : vector<8x512xf32>
    %150 = arith.index_cast %141 : i32 to index
    %c0_83 = arith.constant 0 : index
    %151 = vector.load %arg16[%150, %c0_83] : memref<32x512xf32, #tpu.memory_space<vmem>>, vector<8x512xf32>
    %cst_84 = arith.constant dense<0.000000e+00> : vector<8x512xf32>
    %152 = tpu.matmul %139, %26, %cst_84 {dimension_numbers = #tpu.dot_dimension_numbers<[1], [0], [0], [1], [0, 0, 1, 1], [], []>} : vector<8x128xf32>, vector<128x512xf32>, vector<8x512xf32> -> vector<8x512xf32>
    %153 = arith.addf %151, %152 : vector<8x512xf32>
    %154 = vector.extract_strided_slice %145 {offsets = [0, 0], sizes = [8, 128], strides = [1, 1]} : vector<8x512xf32> to vector<8x128xf32>
    %cst_85 = arith.constant 5.000000e-01 : f32
    %155 = vector.broadcast %cst_85 : f32 to vector<8x128xf32>
    %156 = arith.mulf %155, %154 : vector<8x128xf32>
    %157 = math.tanh %156 : vector<8x128xf32>
    %cst_86 = arith.constant 5.000000e-01 : f32
    %158 = vector.broadcast %cst_86 : f32 to vector<8x128xf32>
    %159 = arith.mulf %158, %157 : vector<8x128xf32>
    %cst_87 = arith.constant 5.000000e-01 : f32
    %160 = vector.broadcast %cst_87 : f32 to vector<8x128xf32>
    %161 = arith.addf %159, %160 : vector<8x128xf32>
    %162 = vector.extract_strided_slice %145 {offsets = [0, 128], sizes = [8, 128], strides = [1, 1]} : vector<8x512xf32> to vector<8x128xf32>
    %cst_88 = arith.constant 5.000000e-01 : f32
    %163 = vector.broadcast %cst_88 : f32 to vector<8x128xf32>
    %164 = arith.mulf %163, %162 : vector<8x128xf32>
    %165 = math.tanh %164 : vector<8x128xf32>
    %cst_89 = arith.constant 5.000000e-01 : f32
    %166 = vector.broadcast %cst_89 : f32 to vector<8x128xf32>
    %167 = arith.mulf %166, %165 : vector<8x128xf32>
    %cst_90 = arith.constant 5.000000e-01 : f32
    %168 = vector.broadcast %cst_90 : f32 to vector<8x128xf32>
    %169 = arith.addf %167, %168 : vector<8x128xf32>
    %170 = vector.extract_strided_slice %145 {offsets = [0, 256], sizes = [8, 128], strides = [1, 1]} : vector<8x512xf32> to vector<8x128xf32>
    %171 = math.tanh %170 : vector<8x128xf32>
    %172 = vector.extract_strided_slice %145 {offsets = [0, 384], sizes = [8, 128], strides = [1, 1]} : vector<8x512xf32> to vector<8x128xf32>
    %cst_91 = arith.constant 5.000000e-01 : f32
    %173 = vector.broadcast %cst_91 : f32 to vector<8x128xf32>
    %174 = arith.mulf %173, %172 : vector<8x128xf32>
    %175 = math.tanh %174 : vector<8x128xf32>
    %cst_92 = arith.constant 5.000000e-01 : f32
    %176 = vector.broadcast %cst_92 : f32 to vector<8x128xf32>
    %177 = arith.mulf %176, %175 : vector<8x128xf32>
    %cst_93 = arith.constant 5.000000e-01 : f32
    %178 = vector.broadcast %cst_93 : f32 to vector<8x128xf32>
    %179 = arith.addf %177, %178 : vector<8x128xf32>
    %180 = arith.mulf %169, %75 : vector<8x128xf32>
    %181 = arith.mulf %161, %171 : vector<8x128xf32>
    %182 = arith.addf %180, %181 : vector<8x128xf32>
    %183 = math.tanh %182 : vector<8x128xf32>
    %184 = arith.mulf %179, %183 : vector<8x128xf32>
    %185 = vector.extract_strided_slice %149 {offsets = [0, 0], sizes = [8, 128], strides = [1, 1]} : vector<8x512xf32> to vector<8x128xf32>
    %cst_94 = arith.constant 5.000000e-01 : f32
    %186 = vector.broadcast %cst_94 : f32 to vector<8x128xf32>
    %187 = arith.mulf %186, %185 : vector<8x128xf32>
    %188 = math.tanh %187 : vector<8x128xf32>
    %cst_95 = arith.constant 5.000000e-01 : f32
    %189 = vector.broadcast %cst_95 : f32 to vector<8x128xf32>
    %190 = arith.mulf %189, %188 : vector<8x128xf32>
    %cst_96 = arith.constant 5.000000e-01 : f32
    %191 = vector.broadcast %cst_96 : f32 to vector<8x128xf32>
    %192 = arith.addf %190, %191 : vector<8x128xf32>
    %193 = vector.extract_strided_slice %149 {offsets = [0, 128], sizes = [8, 128], strides = [1, 1]} : vector<8x512xf32> to vector<8x128xf32>
    %cst_97 = arith.constant 5.000000e-01 : f32
    %194 = vector.broadcast %cst_97 : f32 to vector<8x128xf32>
    %195 = arith.mulf %194, %193 : vector<8x128xf32>
    %196 = math.tanh %195 : vector<8x128xf32>
    %cst_98 = arith.constant 5.000000e-01 : f32
    %197 = vector.broadcast %cst_98 : f32 to vector<8x128xf32>
    %198 = arith.mulf %197, %196 : vector<8x128xf32>
    %cst_99 = arith.constant 5.000000e-01 : f32
    %199 = vector.broadcast %cst_99 : f32 to vector<8x128xf32>
    %200 = arith.addf %198, %199 : vector<8x128xf32>
    %201 = vector.extract_strided_slice %149 {offsets = [0, 256], sizes = [8, 128], strides = [1, 1]} : vector<8x512xf32> to vector<8x128xf32>
    %202 = math.tanh %201 : vector<8x128xf32>
    %203 = vector.extract_strided_slice %149 {offsets = [0, 384], sizes = [8, 128], strides = [1, 1]} : vector<8x512xf32> to vector<8x128xf32>
    %cst_100 = arith.constant 5.000000e-01 : f32
    %204 = vector.broadcast %cst_100 : f32 to vector<8x128xf32>
    %205 = arith.mulf %204, %203 : vector<8x128xf32>
    %206 = math.tanh %205 : vector<8x128xf32>
    %cst_101 = arith.constant 5.000000e-01 : f32
    %207 = vector.broadcast %cst_101 : f32 to vector<8x128xf32>
    %208 = arith.mulf %207, %206 : vector<8x128xf32>
    %cst_102 = arith.constant 5.000000e-01 : f32
    %209 = vector.broadcast %cst_102 : f32 to vector<8x128xf32>
    %210 = arith.addf %208, %209 : vector<8x128xf32>
    %211 = arith.mulf %200, %106 : vector<8x128xf32>
    %212 = arith.mulf %192, %202 : vector<8x128xf32>
    %213 = arith.addf %211, %212 : vector<8x128xf32>
    %214 = math.tanh %213 : vector<8x128xf32>
    %215 = arith.mulf %210, %214 : vector<8x128xf32>
    %216 = vector.extract_strided_slice %153 {offsets = [0, 0], sizes = [8, 128], strides = [1, 1]} : vector<8x512xf32> to vector<8x128xf32>
    %cst_103 = arith.constant 5.000000e-01 : f32
    %217 = vector.broadcast %cst_103 : f32 to vector<8x128xf32>
    %218 = arith.mulf %217, %216 : vector<8x128xf32>
    %219 = math.tanh %218 : vector<8x128xf32>
    %cst_104 = arith.constant 5.000000e-01 : f32
    %220 = vector.broadcast %cst_104 : f32 to vector<8x128xf32>
    %221 = arith.mulf %220, %219 : vector<8x128xf32>
    %cst_105 = arith.constant 5.000000e-01 : f32
    %222 = vector.broadcast %cst_105 : f32 to vector<8x128xf32>
    %223 = arith.addf %221, %222 : vector<8x128xf32>
    %224 = vector.extract_strided_slice %153 {offsets = [0, 128], sizes = [8, 128], strides = [1, 1]} : vector<8x512xf32> to vector<8x128xf32>
    %cst_106 = arith.constant 5.000000e-01 : f32
    %225 = vector.broadcast %cst_106 : f32 to vector<8x128xf32>
    %226 = arith.mulf %225, %224 : vector<8x128xf32>
    %227 = math.tanh %226 : vector<8x128xf32>
    %cst_107 = arith.constant 5.000000e-01 : f32
    %228 = vector.broadcast %cst_107 : f32 to vector<8x128xf32>
    %229 = arith.mulf %228, %227 : vector<8x128xf32>
    %cst_108 = arith.constant 5.000000e-01 : f32
    %230 = vector.broadcast %cst_108 : f32 to vector<8x128xf32>
    %231 = arith.addf %229, %230 : vector<8x128xf32>
    %232 = vector.extract_strided_slice %153 {offsets = [0, 256], sizes = [8, 128], strides = [1, 1]} : vector<8x512xf32> to vector<8x128xf32>
    %233 = math.tanh %232 : vector<8x128xf32>
    %234 = vector.extract_strided_slice %153 {offsets = [0, 384], sizes = [8, 128], strides = [1, 1]} : vector<8x512xf32> to vector<8x128xf32>
    %cst_109 = arith.constant 5.000000e-01 : f32
    %235 = vector.broadcast %cst_109 : f32 to vector<8x128xf32>
    %236 = arith.mulf %235, %234 : vector<8x128xf32>
    %237 = math.tanh %236 : vector<8x128xf32>
    %cst_110 = arith.constant 5.000000e-01 : f32
    %238 = vector.broadcast %cst_110 : f32 to vector<8x128xf32>
    %239 = arith.mulf %238, %237 : vector<8x128xf32>
    %cst_111 = arith.constant 5.000000e-01 : f32
    %240 = vector.broadcast %cst_111 : f32 to vector<8x128xf32>
    %241 = arith.addf %239, %240 : vector<8x128xf32>
    %242 = arith.mulf %231, %137 : vector<8x128xf32>
    %243 = arith.mulf %223, %233 : vector<8x128xf32>
    %244 = arith.addf %242, %243 : vector<8x128xf32>
    %245 = math.tanh %244 : vector<8x128xf32>
    %246 = arith.mulf %241, %245 : vector<8x128xf32>
    %c2_i32 = arith.constant 2 : i32
    %c8_i32_112 = arith.constant 8 : i32
    %247 = arith.muli %c2_i32, %c8_i32_112 : i32
    %248 = tpu.assume_multiple %247, 8 : i32
    %249 = arith.index_cast %248 : i32 to index
    %c0_113 = arith.constant 0 : index
    %250 = vector.load %arg14[%249, %c0_113] : memref<32x512xf32, #tpu.memory_space<vmem>>, vector<8x512xf32>
    %cst_114 = arith.constant dense<0.000000e+00> : vector<8x512xf32>
    %251 = tpu.matmul %184, %24, %cst_114 {dimension_numbers = #tpu.dot_dimension_numbers<[1], [0], [0], [1], [0, 0, 1, 1], [], []>} : vector<8x128xf32>, vector<128x512xf32>, vector<8x512xf32> -> vector<8x512xf32>
    %252 = arith.addf %250, %251 : vector<8x512xf32>
    %253 = arith.index_cast %248 : i32 to index
    %c0_115 = arith.constant 0 : index
    %254 = vector.load %arg15[%253, %c0_115] : memref<32x512xf32, #tpu.memory_space<vmem>>, vector<8x512xf32>
    %cst_116 = arith.constant dense<0.000000e+00> : vector<8x512xf32>
    %255 = tpu.matmul %215, %25, %cst_116 {dimension_numbers = #tpu.dot_dimension_numbers<[1], [0], [0], [1], [0, 0, 1, 1], [], []>} : vector<8x128xf32>, vector<128x512xf32>, vector<8x512xf32> -> vector<8x512xf32>
    %256 = arith.addf %254, %255 : vector<8x512xf32>
    %257 = arith.index_cast %248 : i32 to index
    %c0_117 = arith.constant 0 : index
    %258 = vector.load %arg16[%257, %c0_117] : memref<32x512xf32, #tpu.memory_space<vmem>>, vector<8x512xf32>
    %cst_118 = arith.constant dense<0.000000e+00> : vector<8x512xf32>
    %259 = tpu.matmul %246, %26, %cst_118 {dimension_numbers = #tpu.dot_dimension_numbers<[1], [0], [0], [1], [0, 0, 1, 1], [], []>} : vector<8x128xf32>, vector<128x512xf32>, vector<8x512xf32> -> vector<8x512xf32>
    %260 = arith.addf %258, %259 : vector<8x512xf32>
    %261 = vector.extract_strided_slice %252 {offsets = [0, 0], sizes = [8, 128], strides = [1, 1]} : vector<8x512xf32> to vector<8x128xf32>
    %cst_119 = arith.constant 5.000000e-01 : f32
    %262 = vector.broadcast %cst_119 : f32 to vector<8x128xf32>
    %263 = arith.mulf %262, %261 : vector<8x128xf32>
    %264 = math.tanh %263 : vector<8x128xf32>
    %cst_120 = arith.constant 5.000000e-01 : f32
    %265 = vector.broadcast %cst_120 : f32 to vector<8x128xf32>
    %266 = arith.mulf %265, %264 : vector<8x128xf32>
    %cst_121 = arith.constant 5.000000e-01 : f32
    %267 = vector.broadcast %cst_121 : f32 to vector<8x128xf32>
    %268 = arith.addf %266, %267 : vector<8x128xf32>
    %269 = vector.extract_strided_slice %252 {offsets = [0, 128], sizes = [8, 128], strides = [1, 1]} : vector<8x512xf32> to vector<8x128xf32>
    %cst_122 = arith.constant 5.000000e-01 : f32
    %270 = vector.broadcast %cst_122 : f32 to vector<8x128xf32>
    %271 = arith.mulf %270, %269 : vector<8x128xf32>
    %272 = math.tanh %271 : vector<8x128xf32>
    %cst_123 = arith.constant 5.000000e-01 : f32
    %273 = vector.broadcast %cst_123 : f32 to vector<8x128xf32>
    %274 = arith.mulf %273, %272 : vector<8x128xf32>
    %cst_124 = arith.constant 5.000000e-01 : f32
    %275 = vector.broadcast %cst_124 : f32 to vector<8x128xf32>
    %276 = arith.addf %274, %275 : vector<8x128xf32>
    %277 = vector.extract_strided_slice %252 {offsets = [0, 256], sizes = [8, 128], strides = [1, 1]} : vector<8x512xf32> to vector<8x128xf32>
    %278 = math.tanh %277 : vector<8x128xf32>
    %279 = vector.extract_strided_slice %252 {offsets = [0, 384], sizes = [8, 128], strides = [1, 1]} : vector<8x512xf32> to vector<8x128xf32>
    %cst_125 = arith.constant 5.000000e-01 : f32
    %280 = vector.broadcast %cst_125 : f32 to vector<8x128xf32>
    %281 = arith.mulf %280, %279 : vector<8x128xf32>
    %282 = math.tanh %281 : vector<8x128xf32>
    %cst_126 = arith.constant 5.000000e-01 : f32
    %283 = vector.broadcast %cst_126 : f32 to vector<8x128xf32>
    %284 = arith.mulf %283, %282 : vector<8x128xf32>
    %cst_127 = arith.constant 5.000000e-01 : f32
    %285 = vector.broadcast %cst_127 : f32 to vector<8x128xf32>
    %286 = arith.addf %284, %285 : vector<8x128xf32>
    %287 = arith.mulf %276, %182 : vector<8x128xf32>
    %288 = arith.mulf %268, %278 : vector<8x128xf32>
    %289 = arith.addf %287, %288 : vector<8x128xf32>
    %290 = math.tanh %289 : vector<8x128xf32>
    %291 = arith.mulf %286, %290 : vector<8x128xf32>
    %292 = vector.extract_strided_slice %256 {offsets = [0, 0], sizes = [8, 128], strides = [1, 1]} : vector<8x512xf32> to vector<8x128xf32>
    %cst_128 = arith.constant 5.000000e-01 : f32
    %293 = vector.broadcast %cst_128 : f32 to vector<8x128xf32>
    %294 = arith.mulf %293, %292 : vector<8x128xf32>
    %295 = math.tanh %294 : vector<8x128xf32>
    %cst_129 = arith.constant 5.000000e-01 : f32
    %296 = vector.broadcast %cst_129 : f32 to vector<8x128xf32>
    %297 = arith.mulf %296, %295 : vector<8x128xf32>
    %cst_130 = arith.constant 5.000000e-01 : f32
    %298 = vector.broadcast %cst_130 : f32 to vector<8x128xf32>
    %299 = arith.addf %297, %298 : vector<8x128xf32>
    %300 = vector.extract_strided_slice %256 {offsets = [0, 128], sizes = [8, 128], strides = [1, 1]} : vector<8x512xf32> to vector<8x128xf32>
    %cst_131 = arith.constant 5.000000e-01 : f32
    %301 = vector.broadcast %cst_131 : f32 to vector<8x128xf32>
    %302 = arith.mulf %301, %300 : vector<8x128xf32>
    %303 = math.tanh %302 : vector<8x128xf32>
    %cst_132 = arith.constant 5.000000e-01 : f32
    %304 = vector.broadcast %cst_132 : f32 to vector<8x128xf32>
    %305 = arith.mulf %304, %303 : vector<8x128xf32>
    %cst_133 = arith.constant 5.000000e-01 : f32
    %306 = vector.broadcast %cst_133 : f32 to vector<8x128xf32>
    %307 = arith.addf %305, %306 : vector<8x128xf32>
    %308 = vector.extract_strided_slice %256 {offsets = [0, 256], sizes = [8, 128], strides = [1, 1]} : vector<8x512xf32> to vector<8x128xf32>
    %309 = math.tanh %308 : vector<8x128xf32>
    %310 = vector.extract_strided_slice %256 {offsets = [0, 384], sizes = [8, 128], strides = [1, 1]} : vector<8x512xf32> to vector<8x128xf32>
    %cst_134 = arith.constant 5.000000e-01 : f32
    %311 = vector.broadcast %cst_134 : f32 to vector<8x128xf32>
    %312 = arith.mulf %311, %310 : vector<8x128xf32>
    %313 = math.tanh %312 : vector<8x128xf32>
    %cst_135 = arith.constant 5.000000e-01 : f32
    %314 = vector.broadcast %cst_135 : f32 to vector<8x128xf32>
    %315 = arith.mulf %314, %313 : vector<8x128xf32>
    %cst_136 = arith.constant 5.000000e-01 : f32
    %316 = vector.broadcast %cst_136 : f32 to vector<8x128xf32>
    %317 = arith.addf %315, %316 : vector<8x128xf32>
    %318 = arith.mulf %307, %213 : vector<8x128xf32>
    %319 = arith.mulf %299, %309 : vector<8x128xf32>
    %320 = arith.addf %318, %319 : vector<8x128xf32>
    %321 = math.tanh %320 : vector<8x128xf32>
    %322 = arith.mulf %317, %321 : vector<8x128xf32>
    %323 = vector.extract_strided_slice %260 {offsets = [0, 0], sizes = [8, 128], strides = [1, 1]} : vector<8x512xf32> to vector<8x128xf32>
    %cst_137 = arith.constant 5.000000e-01 : f32
    %324 = vector.broadcast %cst_137 : f32 to vector<8x128xf32>
    %325 = arith.mulf %324, %323 : vector<8x128xf32>
    %326 = math.tanh %325 : vector<8x128xf32>
    %cst_138 = arith.constant 5.000000e-01 : f32
    %327 = vector.broadcast %cst_138 : f32 to vector<8x128xf32>
    %328 = arith.mulf %327, %326 : vector<8x128xf32>
    %cst_139 = arith.constant 5.000000e-01 : f32
    %329 = vector.broadcast %cst_139 : f32 to vector<8x128xf32>
    %330 = arith.addf %328, %329 : vector<8x128xf32>
    %331 = vector.extract_strided_slice %260 {offsets = [0, 128], sizes = [8, 128], strides = [1, 1]} : vector<8x512xf32> to vector<8x128xf32>
    %cst_140 = arith.constant 5.000000e-01 : f32
    %332 = vector.broadcast %cst_140 : f32 to vector<8x128xf32>
    %333 = arith.mulf %332, %331 : vector<8x128xf32>
    %334 = math.tanh %333 : vector<8x128xf32>
    %cst_141 = arith.constant 5.000000e-01 : f32
    %335 = vector.broadcast %cst_141 : f32 to vector<8x128xf32>
    %336 = arith.mulf %335, %334 : vector<8x128xf32>
    %cst_142 = arith.constant 5.000000e-01 : f32
    %337 = vector.broadcast %cst_142 : f32 to vector<8x128xf32>
    %338 = arith.addf %336, %337 : vector<8x128xf32>
    %339 = vector.extract_strided_slice %260 {offsets = [0, 256], sizes = [8, 128], strides = [1, 1]} : vector<8x512xf32> to vector<8x128xf32>
    %340 = math.tanh %339 : vector<8x128xf32>
    %341 = vector.extract_strided_slice %260 {offsets = [0, 384], sizes = [8, 128], strides = [1, 1]} : vector<8x512xf32> to vector<8x128xf32>
    %cst_143 = arith.constant 5.000000e-01 : f32
    %342 = vector.broadcast %cst_143 : f32 to vector<8x128xf32>
    %343 = arith.mulf %342, %341 : vector<8x128xf32>
    %344 = math.tanh %343 : vector<8x128xf32>
    %cst_144 = arith.constant 5.000000e-01 : f32
    %345 = vector.broadcast %cst_144 : f32 to vector<8x128xf32>
    %346 = arith.mulf %345, %344 : vector<8x128xf32>
    %cst_145 = arith.constant 5.000000e-01 : f32
    %347 = vector.broadcast %cst_145 : f32 to vector<8x128xf32>
    %348 = arith.addf %346, %347 : vector<8x128xf32>
    %349 = arith.mulf %338, %244 : vector<8x128xf32>
    %350 = arith.mulf %330, %340 : vector<8x128xf32>
    %351 = arith.addf %349, %350 : vector<8x128xf32>
    %352 = math.tanh %351 : vector<8x128xf32>
    %353 = arith.mulf %348, %352 : vector<8x128xf32>
    %c3_i32 = arith.constant 3 : i32
    %c8_i32_146 = arith.constant 8 : i32
    %354 = arith.muli %c3_i32, %c8_i32_146 : i32
    %355 = tpu.assume_multiple %354, 8 : i32
    %356 = arith.index_cast %355 : i32 to index
    %c0_147 = arith.constant 0 : index
    %357 = vector.load %arg14[%356, %c0_147] : memref<32x512xf32, #tpu.memory_space<vmem>>, vector<8x512xf32>
    %cst_148 = arith.constant dense<0.000000e+00> : vector<8x512xf32>
    %358 = tpu.matmul %291, %24, %cst_148 {dimension_numbers = #tpu.dot_dimension_numbers<[1], [0], [0], [1], [0, 0, 1, 1], [], []>} : vector<8x128xf32>, vector<128x512xf32>, vector<8x512xf32> -> vector<8x512xf32>
    %359 = arith.addf %357, %358 : vector<8x512xf32>
    %360 = arith.index_cast %355 : i32 to index
    %c0_149 = arith.constant 0 : index
    %361 = vector.load %arg15[%360, %c0_149] : memref<32x512xf32, #tpu.memory_space<vmem>>, vector<8x512xf32>
    %cst_150 = arith.constant dense<0.000000e+00> : vector<8x512xf32>
    %362 = tpu.matmul %322, %25, %cst_150 {dimension_numbers = #tpu.dot_dimension_numbers<[1], [0], [0], [1], [0, 0, 1, 1], [], []>} : vector<8x128xf32>, vector<128x512xf32>, vector<8x512xf32> -> vector<8x512xf32>
    %363 = arith.addf %361, %362 : vector<8x512xf32>
    %364 = arith.index_cast %355 : i32 to index
    %c0_151 = arith.constant 0 : index
    %365 = vector.load %arg16[%364, %c0_151] : memref<32x512xf32, #tpu.memory_space<vmem>>, vector<8x512xf32>
    %cst_152 = arith.constant dense<0.000000e+00> : vector<8x512xf32>
    %366 = tpu.matmul %353, %26, %cst_152 {dimension_numbers = #tpu.dot_dimension_numbers<[1], [0], [0], [1], [0, 0, 1, 1], [], []>} : vector<8x128xf32>, vector<128x512xf32>, vector<8x512xf32> -> vector<8x512xf32>
    %367 = arith.addf %365, %366 : vector<8x512xf32>
    %368 = vector.extract_strided_slice %359 {offsets = [0, 0], sizes = [8, 128], strides = [1, 1]} : vector<8x512xf32> to vector<8x128xf32>
    %cst_153 = arith.constant 5.000000e-01 : f32
    %369 = vector.broadcast %cst_153 : f32 to vector<8x128xf32>
    %370 = arith.mulf %369, %368 : vector<8x128xf32>
    %371 = math.tanh %370 : vector<8x128xf32>
    %cst_154 = arith.constant 5.000000e-01 : f32
    %372 = vector.broadcast %cst_154 : f32 to vector<8x128xf32>
    %373 = arith.mulf %372, %371 : vector<8x128xf32>
    %cst_155 = arith.constant 5.000000e-01 : f32
    %374 = vector.broadcast %cst_155 : f32 to vector<8x128xf32>
    %375 = arith.addf %373, %374 : vector<8x128xf32>
    %376 = vector.extract_strided_slice %359 {offsets = [0, 128], sizes = [8, 128], strides = [1, 1]} : vector<8x512xf32> to vector<8x128xf32>
    %cst_156 = arith.constant 5.000000e-01 : f32
    %377 = vector.broadcast %cst_156 : f32 to vector<8x128xf32>
    %378 = arith.mulf %377, %376 : vector<8x128xf32>
    %379 = math.tanh %378 : vector<8x128xf32>
    %cst_157 = arith.constant 5.000000e-01 : f32
    %380 = vector.broadcast %cst_157 : f32 to vector<8x128xf32>
    %381 = arith.mulf %380, %379 : vector<8x128xf32>
    %cst_158 = arith.constant 5.000000e-01 : f32
    %382 = vector.broadcast %cst_158 : f32 to vector<8x128xf32>
    %383 = arith.addf %381, %382 : vector<8x128xf32>
    %384 = vector.extract_strided_slice %359 {offsets = [0, 256], sizes = [8, 128], strides = [1, 1]} : vector<8x512xf32> to vector<8x128xf32>
    %385 = math.tanh %384 : vector<8x128xf32>
    %386 = vector.extract_strided_slice %359 {offsets = [0, 384], sizes = [8, 128], strides = [1, 1]} : vector<8x512xf32> to vector<8x128xf32>
    %cst_159 = arith.constant 5.000000e-01 : f32
    %387 = vector.broadcast %cst_159 : f32 to vector<8x128xf32>
    %388 = arith.mulf %387, %386 : vector<8x128xf32>
    %389 = math.tanh %388 : vector<8x128xf32>
    %cst_160 = arith.constant 5.000000e-01 : f32
    %390 = vector.broadcast %cst_160 : f32 to vector<8x128xf32>
    %391 = arith.mulf %390, %389 : vector<8x128xf32>
    %cst_161 = arith.constant 5.000000e-01 : f32
    %392 = vector.broadcast %cst_161 : f32 to vector<8x128xf32>
    %393 = arith.addf %391, %392 : vector<8x128xf32>
    %394 = arith.mulf %383, %289 : vector<8x128xf32>
    %395 = arith.mulf %375, %385 : vector<8x128xf32>
    %396 = arith.addf %394, %395 : vector<8x128xf32>
    %397 = math.tanh %396 : vector<8x128xf32>
    %398 = arith.mulf %393, %397 : vector<8x128xf32>
    %399 = vector.extract_strided_slice %363 {offsets = [0, 0], sizes = [8, 128], strides = [1, 1]} : vector<8x512xf32> to vector<8x128xf32>
    %cst_162 = arith.constant 5.000000e-01 : f32
    %400 = vector.broadcast %cst_162 : f32 to vector<8x128xf32>
    %401 = arith.mulf %400, %399 : vector<8x128xf32>
    %402 = math.tanh %401 : vector<8x128xf32>
    %cst_163 = arith.constant 5.000000e-01 : f32
    %403 = vector.broadcast %cst_163 : f32 to vector<8x128xf32>
    %404 = arith.mulf %403, %402 : vector<8x128xf32>
    %cst_164 = arith.constant 5.000000e-01 : f32
    %405 = vector.broadcast %cst_164 : f32 to vector<8x128xf32>
    %406 = arith.addf %404, %405 : vector<8x128xf32>
    %407 = vector.extract_strided_slice %363 {offsets = [0, 128], sizes = [8, 128], strides = [1, 1]} : vector<8x512xf32> to vector<8x128xf32>
    %cst_165 = arith.constant 5.000000e-01 : f32
    %408 = vector.broadcast %cst_165 : f32 to vector<8x128xf32>
    %409 = arith.mulf %408, %407 : vector<8x128xf32>
    %410 = math.tanh %409 : vector<8x128xf32>
    %cst_166 = arith.constant 5.000000e-01 : f32
    %411 = vector.broadcast %cst_166 : f32 to vector<8x128xf32>
    %412 = arith.mulf %411, %410 : vector<8x128xf32>
    %cst_167 = arith.constant 5.000000e-01 : f32
    %413 = vector.broadcast %cst_167 : f32 to vector<8x128xf32>
    %414 = arith.addf %412, %413 : vector<8x128xf32>
    %415 = vector.extract_strided_slice %363 {offsets = [0, 256], sizes = [8, 128], strides = [1, 1]} : vector<8x512xf32> to vector<8x128xf32>
    %416 = math.tanh %415 : vector<8x128xf32>
    %417 = vector.extract_strided_slice %363 {offsets = [0, 384], sizes = [8, 128], strides = [1, 1]} : vector<8x512xf32> to vector<8x128xf32>
    %cst_168 = arith.constant 5.000000e-01 : f32
    %418 = vector.broadcast %cst_168 : f32 to vector<8x128xf32>
    %419 = arith.mulf %418, %417 : vector<8x128xf32>
    %420 = math.tanh %419 : vector<8x128xf32>
    %cst_169 = arith.constant 5.000000e-01 : f32
    %421 = vector.broadcast %cst_169 : f32 to vector<8x128xf32>
    %422 = arith.mulf %421, %420 : vector<8x128xf32>
    %cst_170 = arith.constant 5.000000e-01 : f32
    %423 = vector.broadcast %cst_170 : f32 to vector<8x128xf32>
    %424 = arith.addf %422, %423 : vector<8x128xf32>
    %425 = arith.mulf %414, %320 : vector<8x128xf32>
    %426 = arith.mulf %406, %416 : vector<8x128xf32>
    %427 = arith.addf %425, %426 : vector<8x128xf32>
    %428 = math.tanh %427 : vector<8x128xf32>
    %429 = arith.mulf %424, %428 : vector<8x128xf32>
    %430 = vector.extract_strided_slice %367 {offsets = [0, 0], sizes = [8, 128], strides = [1, 1]} : vector<8x512xf32> to vector<8x128xf32>
    %cst_171 = arith.constant 5.000000e-01 : f32
    %431 = vector.broadcast %cst_171 : f32 to vector<8x128xf32>
    %432 = arith.mulf %431, %430 : vector<8x128xf32>
    %433 = math.tanh %432 : vector<8x128xf32>
    %cst_172 = arith.constant 5.000000e-01 : f32
    %434 = vector.broadcast %cst_172 : f32 to vector<8x128xf32>
    %435 = arith.mulf %434, %433 : vector<8x128xf32>
    %cst_173 = arith.constant 5.000000e-01 : f32
    %436 = vector.broadcast %cst_173 : f32 to vector<8x128xf32>
    %437 = arith.addf %435, %436 : vector<8x128xf32>
    %438 = vector.extract_strided_slice %367 {offsets = [0, 128], sizes = [8, 128], strides = [1, 1]} : vector<8x512xf32> to vector<8x128xf32>
    %cst_174 = arith.constant 5.000000e-01 : f32
    %439 = vector.broadcast %cst_174 : f32 to vector<8x128xf32>
    %440 = arith.mulf %439, %438 : vector<8x128xf32>
    %441 = math.tanh %440 : vector<8x128xf32>
    %cst_175 = arith.constant 5.000000e-01 : f32
    %442 = vector.broadcast %cst_175 : f32 to vector<8x128xf32>
    %443 = arith.mulf %442, %441 : vector<8x128xf32>
    %cst_176 = arith.constant 5.000000e-01 : f32
    %444 = vector.broadcast %cst_176 : f32 to vector<8x128xf32>
    %445 = arith.addf %443, %444 : vector<8x128xf32>
    %446 = vector.extract_strided_slice %367 {offsets = [0, 256], sizes = [8, 128], strides = [1, 1]} : vector<8x512xf32> to vector<8x128xf32>
    %447 = math.tanh %446 : vector<8x128xf32>
    %448 = vector.extract_strided_slice %367 {offsets = [0, 384], sizes = [8, 128], strides = [1, 1]} : vector<8x512xf32> to vector<8x128xf32>
    %cst_177 = arith.constant 5.000000e-01 : f32
    %449 = vector.broadcast %cst_177 : f32 to vector<8x128xf32>
    %450 = arith.mulf %449, %448 : vector<8x128xf32>
    %451 = math.tanh %450 : vector<8x128xf32>
    %cst_178 = arith.constant 5.000000e-01 : f32
    %452 = vector.broadcast %cst_178 : f32 to vector<8x128xf32>
    %453 = arith.mulf %452, %451 : vector<8x128xf32>
    %cst_179 = arith.constant 5.000000e-01 : f32
    %454 = vector.broadcast %cst_179 : f32 to vector<8x128xf32>
    %455 = arith.addf %453, %454 : vector<8x128xf32>
    %456 = arith.mulf %445, %351 : vector<8x128xf32>
    %457 = arith.mulf %437, %447 : vector<8x128xf32>
    %458 = arith.addf %456, %457 : vector<8x128xf32>
    %459 = math.tanh %458 : vector<8x128xf32>
    %460 = arith.mulf %455, %459 : vector<8x128xf32>
    %c4_i32 = arith.constant 4 : i32
    %c0_180 = arith.constant 0 : index
    %c0_181 = arith.constant 0 : index
    %461 = vector.load %arg17[%c0_180, %c0_181] : memref<8x128xf32, #tpu.memory_space<vmem>>, vector<8x128xf32>
    tpu.vector_store %arg17[%c0_180, %c0_181], %398 {strides = array<i32>} : memref<8x128xf32, #tpu.memory_space<vmem>>, vector<8x128xf32>,
    %c0_182 = arith.constant 0 : index
    %c0_183 = arith.constant 0 : index
    %462 = vector.load %arg18[%c0_182, %c0_183] : memref<8x128xf32, #tpu.memory_space<vmem>>, vector<8x128xf32>
    tpu.vector_store %arg18[%c0_182, %c0_183], %396 {strides = array<i32>} : memref<8x128xf32, #tpu.memory_space<vmem>>, vector<8x128xf32>,
    %c0_184 = arith.constant 0 : index
    %c0_185 = arith.constant 0 : index
    %463 = vector.load %arg19[%c0_184, %c0_185] : memref<8x128xf32, #tpu.memory_space<vmem>>, vector<8x128xf32>
    tpu.vector_store %arg19[%c0_184, %c0_185], %429 {strides = array<i32>} : memref<8x128xf32, #tpu.memory_space<vmem>>, vector<8x128xf32>,
    %c0_186 = arith.constant 0 : index
    %c0_187 = arith.constant 0 : index
    %464 = vector.load %arg20[%c0_186, %c0_187] : memref<8x128xf32, #tpu.memory_space<vmem>>, vector<8x128xf32>
    tpu.vector_store %arg20[%c0_186, %c0_187], %427 {strides = array<i32>} : memref<8x128xf32, #tpu.memory_space<vmem>>, vector<8x128xf32>,
    %c0_188 = arith.constant 0 : index
    %c0_189 = arith.constant 0 : index
    %465 = vector.load %arg21[%c0_188, %c0_189] : memref<8x128xf32, #tpu.memory_space<vmem>>, vector<8x128xf32>
    tpu.vector_store %arg21[%c0_188, %c0_189], %460 {strides = array<i32>} : memref<8x128xf32, #tpu.memory_space<vmem>>, vector<8x128xf32>,
    %c0_190 = arith.constant 0 : index
    %c0_191 = arith.constant 0 : index
    %466 = vector.load %arg22[%c0_190, %c0_191] : memref<8x128xf32, #tpu.memory_space<vmem>>, vector<8x128xf32>
    tpu.vector_store %arg22[%c0_190, %c0_191], %458 {strides = array<i32>} : memref<8x128xf32, #tpu.memory_space<vmem>>, vector<8x128xf32>,
    %c1_i32_192 = arith.constant 1 : i32
    %467 = arith.cmpi eq, %arg0, %c1_i32_192 : i32
    %468 = arith.extui %467 : i1 to i32
    %c0_i32_193 = arith.constant 0 : i32
    %469 = arith.cmpi ne, %468, %c0_i32_193 : i32
    scf.if %469 {
      %c0_194 = arith.constant 0 : index
      %c0_195 = arith.constant 0 : index
      %470 = vector.load %arg17[%c0_194, %c0_195] : memref<8x128xf32, #tpu.memory_space<vmem>>, vector<8x128xf32>
      %c0_196 = arith.constant 0 : index
      %c0_197 = arith.constant 0 : index
      %471 = vector.load %arg19[%c0_196, %c0_197] : memref<8x128xf32, #tpu.memory_space<vmem>>, vector<8x128xf32>
      %c0_198 = arith.constant 0 : index
      %c0_199 = arith.constant 0 : index
      %472 = vector.load %arg21[%c0_198, %c0_199] : memref<8x128xf32, #tpu.memory_space<vmem>>, vector<8x128xf32>
      %473 = arith.mulf %470, %471 : vector<8x128xf32>
      %cst_200 = arith.constant dense<0.000000e+00> : vector<8xf32>
      %474 = vector.multi_reduction <add>, %473, %cst_200 [1] : vector<8x128xf32> to vector<8xf32>
      %475 = vector.shape_cast %474 : vector<8xf32> to vector<8x1xf32>
      %476 = arith.mulf %470, %470 : vector<8x128xf32>
      %cst_201 = arith.constant dense<0.000000e+00> : vector<8xf32>
      %477 = vector.multi_reduction <add>, %476, %cst_201 [1] : vector<8x128xf32> to vector<8xf32>
      %478 = vector.shape_cast %477 : vector<8xf32> to vector<8x1xf32>
      %479 = math.sqrt %478 : vector<8x1xf32>
      %cst_202 = arith.constant 9.99999993E-9 : f32
      %480 = vector.broadcast %cst_202 : f32 to vector<8x1xf32>
      %481 = arith.maximumf %479, %480 : vector<8x1xf32>
      %482 = arith.mulf %471, %471 : vector<8x128xf32>
      %cst_203 = arith.constant dense<0.000000e+00> : vector<8xf32>
      %483 = vector.multi_reduction <add>, %482, %cst_203 [1] : vector<8x128xf32> to vector<8xf32>
      %484 = vector.shape_cast %483 : vector<8xf32> to vector<8x1xf32>
      %485 = math.sqrt %484 : vector<8x1xf32>
      %cst_204 = arith.constant 9.99999993E-9 : f32
      %486 = vector.broadcast %cst_204 : f32 to vector<8x1xf32>
      %487 = arith.maximumf %485, %486 : vector<8x1xf32>
      %488 = arith.mulf %481, %487 : vector<8x1xf32>
      %489 = arith.divf %475, %488 : vector<8x1xf32>
      %490 = arith.mulf %470, %472 : vector<8x128xf32>
      %cst_205 = arith.constant dense<0.000000e+00> : vector<8xf32>
      %491 = vector.multi_reduction <add>, %490, %cst_205 [1] : vector<8x128xf32> to vector<8xf32>
      %492 = vector.shape_cast %491 : vector<8xf32> to vector<8x1xf32>
      %493 = arith.mulf %470, %470 : vector<8x128xf32>
      %cst_206 = arith.constant dense<0.000000e+00> : vector<8xf32>
      %494 = vector.multi_reduction <add>, %493, %cst_206 [1] : vector<8x128xf32> to vector<8xf32>
      %495 = vector.shape_cast %494 : vector<8xf32> to vector<8x1xf32>
      %496 = math.sqrt %495 : vector<8x1xf32>
      %cst_207 = arith.constant 9.99999993E-9 : f32
      %497 = vector.broadcast %cst_207 : f32 to vector<8x1xf32>
      %498 = arith.maximumf %496, %497 : vector<8x1xf32>
      %499 = arith.mulf %472, %472 : vector<8x128xf32>
      %cst_208 = arith.constant dense<0.000000e+00> : vector<8xf32>
      %500 = vector.multi_reduction <add>, %499, %cst_208 [1] : vector<8x128xf32> to vector<8xf32>
      %501 = vector.shape_cast %500 : vector<8xf32> to vector<8x1xf32>
      %502 = math.sqrt %501 : vector<8x1xf32>
      %cst_209 = arith.constant 9.99999993E-9 : f32
      %503 = vector.broadcast %cst_209 : f32 to vector<8x1xf32>
      %504 = arith.maximumf %502, %503 : vector<8x1xf32>
      %505 = arith.mulf %498, %504 : vector<8x1xf32>
      %506 = arith.divf %492, %505 : vector<8x1xf32>
      %507 = arith.maximumf %489, %506 : vector<8x1xf32>
      %cst_210 = arith.constant 5.000000e-01 : f32
      %508 = vector.broadcast %cst_210 : f32 to vector<8x1xf32>
      %509 = arith.mulf %508, %507 : vector<8x1xf32>
      %510 = math.tanh %509 : vector<8x1xf32>
      %cst_211 = arith.constant 5.000000e-01 : f32
      %511 = vector.broadcast %cst_211 : f32 to vector<8x1xf32>
      %512 = arith.mulf %511, %510 : vector<8x1xf32>
      %cst_212 = arith.constant 5.000000e-01 : f32
      %513 = vector.broadcast %cst_212 : f32 to vector<8x1xf32>
      %514 = arith.addf %512, %513 : vector<8x1xf32>
      %c0_213 = arith.constant 0 : index
      %c0_214 = arith.constant 0 : index
      %515 = vector.load %arg13[%c0_213, %c0_214] : memref<8x1xf32, #tpu.memory_space<vmem>>, vector<8x1xf32>
      tpu.vector_store %arg13[%c0_213, %c0_214], %514 {strides = array<i32>} : memref<8x1xf32, #tpu.memory_space<vmem>>, vector<8x1xf32>,
    } else {
    }
    return
  }
  func.func @transform_0(%arg0: i32) -> (i32, i32) {
    %c0_i32 = arith.constant 0 : i32
    %c0_i32_0 = arith.constant 0 : i32
    return %arg0, %c0_i32 : i32, i32
  }
  func.func @transform_1(%arg0: i32) -> (i32, i32) {
    %c0_i32 = arith.constant 0 : i32
    %c0_i32_0 = arith.constant 0 : i32
    return %arg0, %c0_i32 : i32, i32
  }
  func.func @transform_2(%arg0: i32) -> (i32, i32) {
    %c0_i32 = arith.constant 0 : i32
    %c0_i32_0 = arith.constant 0 : i32
    return %arg0, %c0_i32 : i32, i32
  }
  func.func @transform_3(%arg0: i32) -> (i32, i32) {
    %c0_i32 = arith.constant 0 : i32
    %c0_i32_0 = arith.constant 0 : i32
    %c0_i32_1 = arith.constant 0 : i32
    return %c0_i32, %c0_i32_0 : i32, i32
  }
  func.func @transform_4(%arg0: i32) -> (i32, i32) {
    %c0_i32 = arith.constant 0 : i32
    %c0_i32_0 = arith.constant 0 : i32
    %c0_i32_1 = arith.constant 0 : i32
    return %c0_i32, %c0_i32_0 : i32, i32
  }
  func.func @transform_5(%arg0: i32) -> (i32, i32) {
    %c0_i32 = arith.constant 0 : i32
    %c0_i32_0 = arith.constant 0 : i32
    %c0_i32_1 = arith.constant 0 : i32
    return %c0_i32, %c0_i32_0 : i32, i32
  }
  func.func @transform_6(%arg0: i32) -> (i32, i32) {
    %c0_i32 = arith.constant 0 : i32
    %c0_i32_0 = arith.constant 0 : i32
    %c0_i32_1 = arith.constant 0 : i32
    return %c0_i32, %c0_i32_0 : i32, i32
  }
  func.func @transform_7(%arg0: i32) -> (i32, i32) {
    %c0_i32 = arith.constant 0 : i32
    %c0_i32_0 = arith.constant 0 : i32
    %c0_i32_1 = arith.constant 0 : i32
    return %c0_i32, %c0_i32_0 : i32, i32
  }
  func.func @transform_8(%arg0: i32) -> (i32, i32) {
    %c0_i32 = arith.constant 0 : i32
    %c0_i32_0 = arith.constant 0 : i32
    %c0_i32_1 = arith.constant 0 : i32
    return %c0_i32, %c0_i32_0 : i32, i32
  }
  func.func @transform_9(%arg0: i32) -> (i32, i32) {
    %c0_i32 = arith.constant 0 : i32
    %c0_i32_0 = arith.constant 0 : i32
    %c0_i32_1 = arith.constant 0 : i32
    return %c0_i32, %c0_i32_0 : i32, i32
  }
  func.func @transform_10(%arg0: i32) -> (i32, i32) {
    %c0_i32 = arith.constant 0 : i32
    %c0_i32_0 = arith.constant 0 : i32
    %c0_i32_1 = arith.constant 0 : i32
    return %c0_i32, %c0_i32_0 : i32, i32
  }
  func.func @transform_11(%arg0: i32) -> (i32, i32) {
    %c0_i32 = arith.constant 0 : i32
    %c0_i32_0 = arith.constant 0 : i32
    %c0_i32_1 = arith.constant 0 : i32
    return %c0_i32, %c0_i32_0 : i32, i32
  }
  func.func @transform_12(%arg0: i32) -> (i32, i32) {
    %c0_i32 = arith.constant 0 : i32
    %c0_i32_0 = arith.constant 0 : i32
    %c0_i32_1 = arith.constant 0 : i32
    return %c0_i32, %c0_i32_0 : i32, i32
  }
}

</mosaic_0001>

<bundles_post_ra>
// kernel: deeplink_forward.1
= control target key start
LH: loop header
LB: loop body
LE: loop exit
PB: predicated region body
PF: predicated region fallthrough
CT: control target
= control target key end

     0   :  { %s6373_s0 = inlined_call_operand.vmem [shape: f32[64,128], index: 0, kind: input, shape index: {}]   ;;  %s6374_s1 = inlined_call_operand.vmem [shape: f32[64,128], index: 1, kind: input, shape index: {}]   ;;  %s6375_s2 = inlined_call_operand.vmem [shape: f32[64,128], index: 2, kind: input, shape index: {}]   ;;  %s6376_s3 = inlined_call_operand.hbm [shape: f32[128,512], index: 3, kind: input, shape index: {}]   ;;  %s6377_s4 = inlined_call_operand.hbm [shape: f32[128,512], index: 4, kind: input, shape index: {}]   ;;  %s6378_s5 = inlined_call_operand.vmem [shape: f32[1,512], index: 5, kind: input, shape index: {}]   ;;  %s6379_s6 = inlined_call_operand.hbm [shape: f32[128,512], index: 6, kind: input, shape index: {}]   ;;  %s6380_s7 = inlined_call_operand.hbm [shape: f32[128,512], index: 7, kind: input, shape index: {}]   ;;  %s6381_s8 = inlined_call_operand.vmem [shape: f32[1,512], index: 8, kind: input, shape index: {}]   ;;  %s6382_s9 = inlined_call_operand.hbm [shape: f32[128,512], index: 9, kind: input, shape index: {}]   ;;  %s6383_s10 = inlined_call_operand.hbm [shape: f32[128,512], index: 10, kind: input, shape index: {}]   ;;  %s6384_s11 = inlined_call_operand.vmem [shape: f32[1,512], index: 11, kind: input, shape index: {}]   ;;  %s6385_s12 = inlined_call_operand.vmem [shape: f32[8,1], index: 12, kind: output, shape index: {}]  }
   0x1   :  { %6535 = sst [smem:[#allocation103_spill]] %s6385_s12 }
   0x2   :  { %17 = vsyncpa [#allocation12], 0 }
   0x3   :  { %18 = vsyncpa [#allocation14], 0 }
   0x4   :  { %19 = vsyncpa [#allocation17], 0 }
   0x5   :  { %20 = vsyncpa [#allocation20], 0  ;;  %s5377_s21 = smov 0  }
   0x6 LB: > { %6536 = sst [smem:[#allocation25_spill]] %s5300_s21  ;;  %s5383_s22 = sadd.s32 4294967295, %s5300_s21   ;;  %s5300_s21 = sphi %s5377_s21, %s26_s21  }
   0x7   : > { %p3824_p0 = scmp.ge.s32.totalorder %s5300_s21, 1  ;;  %p319_p1 = scmp.lt.s32.totalorder %s5300_s21, 3 }
   0x8   : > { %p6387_p3 = scmp.eq.s32.totalorder %s5383_s22, 0  ;;  %s5302_s24 = smov [#allocation13]  }
   0x9   : > { %p5389_p4 = pnand %p3824_p0, %p319_p1  ;;  %s344_s25 = sshll.u32 %s5302_s24, 4  ;;  %s5393_s25 = int_to_ptr.vmem [resolvable:$true] %s344_s25 }
   0xa   : > { %s5303_s26 = smov [#allocation16]   ;;  %s5304_s29 = smov [#allocation11]  }
   0xb   : > { %s6537_s23 = scalar_select %p5389_p4, 1, 0 }
   0xc   : > { %p4929_p5 = pneg %p5389_p4  ;;  %s373_s27 = sshll.u32 %s5303_s26, 4  ;;  %s5397_s27 = int_to_ptr.vmem [resolvable:$true] %s373_s27 }
   0xd   : > { %s331_s30 = sshll.u32 %s5304_s29, 4  ;;  %s5305_s13 = smov [#allocation15]   ;;  %s5405_s30 = int_to_ptr.vmem [resolvable:$true] %s331_s30 }
   0xe   : > { %p5401_p6 = pnand %p6387_p3, %p4929_p5  ;;  %s5407_s14 = sshll.u32 %s5305_s13, 4  ;;  %s361_s14 = int_to_ptr.vmem [resolvable:$true] %s5407_s14 }
   0xf   : > { %s5110_s17 = scalar_lea.hbm %s6377_s4, 8192 }
  0x10   : > { %p5111_p7 = scmp.ne.s32.totalorder %s6377_s4, %s5110_s17  ;;  %p5417_p8 = pneg %p5401_p6 }
  0x11   : > { %p5117_p11 = scmp.lt.u32.totalorder %s5110_s17, %s6377_s4 }
  0x12   : > { %p5113_p9 = pnand %p5417_p8, %p5111_p7 }
  0x14   : > { %p5114_p10 = pneg %p5113_p9 }
  0x16   : > { %p5119_p12 = pnand %p5117_p11, %p5114_p10 }
  0x18   : > { %5122 = shalt.err (!%p5119_p12)
}
  0x19   : > { %s5123_s29 = scalar_lea.vmem %s5393_s25, 8192  ;;  %p5131_p5 = scmp.lt.s32.totalorder %s5393_s25, %s5393_s25 }
  0x1a   : > { %p5124_p13 = scmp.ne.s32.totalorder %s5393_s25, %s5123_s29  ;;  %p5132_p2 = scmp.lt.s32.totalorder %s5123_s29, %s5123_s29 }
  0x1c   : > { %p5126_p0 = pnand %p5124_p13, %p5417_p8  ;;  %p5133_p7 = por %p5132_p2, %p5131_p5 }
  0x1e   : > { %p5127_p1 = pneg %p5126_p0 }
  0x20   : > { %p5134_p9 = pnand %p5133_p7, %p5127_p1 }
  0x22   : > { %5137 = shalt.err (!%p5134_p9)
}
  0x23   : > { %s5306_s13 = smov 512   ;;  %s5307_s15 = smov 32  }
  0x24   : > { %4935 = dma.hbm_to_vmem [thread:$0]  (!%p5401_p6), %s6377_s4, 8192, %s5393_s25, [#allocation14], %s5306_s13, %s5306_s13, %s5307_s15  }
  0x25   : > { %s5138_s24 = scalar_lea.hbm %s6380_s7, 8192 }
  0x26   : > { %p5139_p2 = scmp.ne.s32.totalorder %s6380_s7, %s5138_s24  ;;  %p5145_p12 = scmp.lt.u32.totalorder %s5138_s24, %s6380_s7 }
  0x28   : > { %p5141_p10 = pnand %p5139_p2, %p5417_p8 }
  0x2a   : > { %p5142_p11 = pneg %p5141_p10 }
  0x2c   : > { %p5147_p13 = pnand %p5145_p12, %p5142_p11 }
  0x2e   : > { %5150 = shalt.err (!%p5147_p13)
}
  0x2f   : > { %s5151_s25 = scalar_lea.vmem %s5397_s27, 8192  ;;  %p5159_p7 = scmp.lt.s32.totalorder %s5397_s27, %s5397_s27 }
  0x30   : > { %p5152_p0 = scmp.ne.s32.totalorder %s5397_s27, %s5151_s25  ;;  %p5160_p9 = scmp.lt.s32.totalorder %s5151_s25, %s5151_s25 }
  0x32   : > { %p5154_p1 = pnand %p5152_p0, %p5417_p8  ;;  %p5161_p2 = por %p5160_p9, %p5159_p7 }
  0x34   : > { %p5155_p5 = pneg %p5154_p1 }
  0x36   : > { %p5162_p10 = pnand %p5161_p2, %p5155_p5 }
  0x38   : > { %5165 = shalt.err (!%p5162_p10)
}
  0x39   : > { %4941 = dma.hbm_to_vmem [thread:$0]  (!%p5401_p6), %s6380_s7, 8192, %s5397_s27, [#allocation17], %s5306_s13, %s5306_s13, %s5307_s15  }
  0x3a   : > { %s5166_s18 = scalar_lea.hbm %s6376_s3, 8192 }
  0x3b   : > { %p5167_p11 = scmp.ne.s32.totalorder %s6376_s3, %s5166_s18  ;;  %p5173_p0 = scmp.lt.u32.totalorder %s5166_s18, %s6376_s3 }
  0x3d   : > { %p5169_p12 = pnand %p5167_p11, %p5417_p8 }
  0x3f   : > { %p5170_p13 = pneg %p5169_p12 }
  0x41   : > { %p5175_p1 = pnand %p5173_p0, %p5170_p13 }
  0x43   : > { %5178 = shalt.err (!%p5175_p1)
}
  0x44   : > { %s5179_s27 = scalar_lea.vmem %s5405_s30, 8192  ;;  %p5187_p2 = scmp.lt.s32.totalorder %s5405_s30, %s5405_s30 }
  0x45   : > { %p5180_p5 = scmp.ne.s32.totalorder %s5405_s30, %s5179_s27  ;;  %p5188_p10 = scmp.lt.s32.totalorder %s5179_s27, %s5179_s27 }
  0x47   : > { %p5182_p7 = pnand %p5180_p5, %p5417_p8  ;;  %p5189_p11 = por %p5188_p10, %p5187_p2 }
  0x49   : > { %p5183_p9 = pneg %p5182_p7 }
  0x4b   : > { %p5190_p12 = pnand %p5189_p11, %p5183_p9 }
  0x4d   : > { %5193 = shalt.err (!%p5190_p12)
}
  0x4e   : > { %4932 = dma.hbm_to_vmem [thread:$0]  (!%p5401_p6), %s6376_s3, 8192, %s5405_s30, [#allocation12], %s5306_s13, %s5306_s13, %s5307_s15  }
  0x4f   : > { %s5194_s17 = scalar_lea.hbm %s6379_s6, 8192 }
  0x50   : > { %p5195_p13 = scmp.ne.s32.totalorder %s6379_s6, %s5194_s17  ;;  %p5201_p5 = scmp.lt.u32.totalorder %s5194_s17, %s6379_s6 }
  0x52   : > { %p5197_p0 = pnand %p5195_p13, %p5417_p8 }
  0x54   : > { %p5198_p1 = pneg %p5197_p0 }
  0x56   : > { %p5203_p7 = pnand %p5201_p5, %p5198_p1 }
  0x58   : > { %5206 = shalt.err (!%p5203_p7)
}
  0x59   : > { %s5207_s29 = scalar_lea.vmem %s361_s14, 8192  ;;  %p5215_p11 = scmp.lt.s32.totalorder %s361_s14, %s361_s14 }
  0x5a   : > { %p5208_p9 = scmp.ne.s32.totalorder %s361_s14, %s5207_s29  ;;  %p5216_p12 = scmp.lt.s32.totalorder %s5207_s29, %s5207_s29 }
  0x5c   : > { %p5210_p2 = pnand %p5208_p9, %p5417_p8  ;;  %p5217_p3 = por %p5216_p12, %p5215_p11 }
  0x5e   : > { %p5211_p10 = pneg %p5210_p2 }
  0x60   : > { %p5218_p4 = pnand %p5217_p3, %p5211_p10 }
  0x62   : > { %5221 = shalt.err (!%p5218_p4)
}
  0x63   : > { %4938 = dma.hbm_to_vmem [thread:$0]  (!%p5401_p6), %s6379_s6, 8192, %s361_s14, [#allocation14], %s5306_s13, %s5306_s13, %s5307_s15  }
  0x64   : > { %s5308_s25 = smov [#allocation18]   ;;  %s5309_s21 = smov [#allocation19]  }
  0x65   : > { %s389_s12 = sshll.u32 %s5308_s25, 4  ;;  %s402_s16 = sshll.u32 %s5309_s21, 4  ;;  %s390_s12 = int_to_ptr.vmem [resolvable:$true] %s389_s12  ;;  %s403_s16 = int_to_ptr.vmem [resolvable:$true] %s402_s16 }
  0x66   : > { %s5222_s19 = scalar_lea.hbm %s6382_s9, 8192 }
  0x67   : > { %p5223_p3 = scmp.ne.s32.totalorder %s6382_s9, %s5222_s19  ;;  %p5229_p0 = scmp.lt.u32.totalorder %s5222_s19, %s6382_s9 }
  0x69   : > { %p5225_p4 = pnand %p5223_p3, %p5417_p8 }
  0x6b   : > { %p5226_p13 = pneg %p5225_p4 }
  0x6d   : > { %p5231_p1 = pnand %p5229_p0, %p5226_p13 }
  0x6f   : > { %5234 = shalt.err (!%p5231_p1)
}
  0x70   : > { %s5235_s14 = scalar_lea.vmem %s390_s12, 8192  ;;  %p5243_p2 = scmp.lt.s32.totalorder %s390_s12, %s390_s12 }
  0x71   : > { %p5236_p5 = scmp.ne.s32.totalorder %s390_s12, %s5235_s14  ;;  %p5244_p10 = scmp.lt.s32.totalorder %s5235_s14, %s5235_s14 }
  0x73   : > { %p5238_p7 = pnand %p5236_p5, %p5417_p8  ;;  %p5245_p11 = por %p5244_p10, %p5243_p2 }
  0x75   : > { %p5239_p9 = pneg %p5238_p7 }
  0x77   : > { %p5246_p12 = pnand %p5245_p11, %p5239_p9 }
  0x79   : > { %5249 = shalt.err (!%p5246_p12)
}
  0x7a   : > { %4944 = dma.hbm_to_vmem [thread:$0]  (!%p5401_p6), %s6382_s9, 8192, %s390_s12, [#allocation17], %s5306_s13, %s5306_s13, %s5307_s15  }
  0x7b   : > { %s5250_s18 = scalar_lea.hbm %s6383_s10, 8192 }
  0x7c   : > { %p5251_p3 = scmp.ne.s32.totalorder %s6383_s10, %s5250_s18  ;;  %p5257_p0 = scmp.lt.u32.totalorder %s5250_s18, %s6383_s10 }
  0x7e   : > { %p5253_p4 = pnand %p5251_p3, %p5417_p8 }
  0x80   : > { %p5254_p13 = pneg %p5253_p4 }
  0x82   : > { %p5259_p1 = pnand %p5257_p0, %p5254_p13 }
  0x84   : > { %5262 = shalt.err (!%p5259_p1)
}
  0x85   : > { %s5263_s30 = scalar_lea.vmem %s403_s16, 8192  ;;  %p5271_p2 = scmp.lt.s32.totalorder %s403_s16, %s403_s16 }
  0x86   : > { %p5264_p5 = scmp.ne.s32.totalorder %s403_s16, %s5263_s30  ;;  %p5272_p10 = scmp.lt.s32.totalorder %s5263_s30, %s5263_s30 }
  0x88   : > { %p5266_p7 = pnand %p5264_p5, %p5417_p8  ;;  %p5273_p11 = por %p5272_p10, %p5271_p2 }
  0x8a   : > { %p5267_p9 = pneg %p5266_p7 }
  0x8c   : > { %p5274_p12 = pnand %p5273_p11, %p5267_p9 }
  0x8e   : > { %5277 = shalt.err (!%p5274_p12)
}
  0x8f   : > { %4947 = dma.hbm_to_vmem [thread:$0]  (!%p5401_p6), %s6383_s10, 8192, %s403_s16, [#allocation20], %s5306_s13, %s5306_s13, %s5307_s15  }
  0x90   : > { %p6540_p3 = scmp.ne.s32.totalorder %s6537_s23, 0 }
  0x92   : > { %448 = sbr.rel (%p6540_p3) target bundleno = 1573 (0x625), region = 68 }
  0x99   : > { %p6541_p8 = scmp.eq.s32.totalorder %s5383_s22, 0 }
  0x9b   : > { %5283 = dma.done.wait (%p6541_p8), [#allocation12], 8192   ;;  %p6542_p4 = pmov %p6541_p8 }
  0x9d   : > { %5285 = vsyncadd (%p6542_p4), [#allocation12], 4294959104  ;;  %p6543_p13 = pmov %p6542_p4 }
  0x9e   : > { %p6544_p0 = pmov %p6542_p4 }
  0x9f   : > { %5287 = dma.done.wait (%p6543_p13), [#allocation14], 16384  }
  0xa0   : > { %5289 = vsyncadd (%p6544_p0), [#allocation14], 4294950912  ;;  %p6545_p1 = pmov %p6544_p0 }
  0xa1   : > { %p6546_p6 = pmov %p6544_p0 }
  0xa2   : > { %5291 = dma.done.wait (%p6545_p1), [#allocation17], 16384  }
  0xa3   : > { %5293 = vsyncadd (%p6546_p6), [#allocation17], 4294950912  ;;  %p6547_p5 = pmov %p6544_p0 }
  0xa4   : > { %p6548_p7 = pmov %p6544_p0 }
  0xa5   : > { %5295 = dma.done.wait (%p6547_p5), [#allocation20], 8192  }
  0xa6   : > { %5297 = vsyncadd (%p6548_p7), [#allocation20], 4294959104  ;;  %s3839_s23 = sshll.u32 %s5383_s22, 2  ;;  %p6549_p2 = scmp.ne.s32.totalorder %s5383_s22, 0 }
  0xa7   : > { %p516_p9 = scmp.lt.s32.totalorder %s3839_s23, 7  ;;  %v5310_v0 = vmov (!%p6549_p2), 0.0  }
  0xa8   : > { %536 = sbr.rel (%p6549_p2) target bundleno = 175 (0xaf), region = 96  ;;  %537 = vst [vmem:[#allocation5] sm:$0xff] (!%p6549_p2), %v5310_v0  ;;  %538 = vst [vmem:[#allocation6] sm:$0xff] (!%p6549_p2), %v5310_v0 }
  0xa9   : > { %s6790_s23 = smov (!%p516_p9, %s3839_s23), 7  ;;  %539 = vst [vmem:[#allocation7] sm:$0xff] (!%p6549_p2), %v5310_v0  ;;  %540 = vst [vmem:[#allocation8] sm:$0xff] (!%p6549_p2), %v5310_v0 }
  0xaa   : > { %s3840_s28 = sshll.u32 %s6790_s23, 3  ;;  %541 = vst [vmem:[#allocation9] sm:$0xff] (!%p6549_p2), %v5310_v0  ;;  %542 = vst [vmem:[#allocation10] sm:$0xff] (!%p6549_p2), %v5310_v0 }
  0xab   : > { %s5579_s15 = scalar_lea.vmem %s6373_s0, %s3840_s28  ;;  %s5584_s25 = scalar_lea.vmem %s6374_s1, %s3840_s28 }
  0xac   : > { %s5589_s18 = scalar_lea.vmem %s6375_s2, %s3840_s28 }
  0xaf PF: > { %v548_v1 = vld [vmem:[#allocation11 + $0x8] sm:$0xff]  ;;  %v550_v3 = vld [vmem:[#allocation11 + $0x18] sm:$0xff]  ;;  %v547_v6 = vld [vmem:[#allocation11] sm:$0xff]  ;;  %v6389_v8 = vmov 0.0   ;;  %p3846_p10 = scmp.ne.s32.totalorder %s5383_s22, 1 }
  0xb0   : > { %v552_v2 = vld [vmem:[#allocation11 + $0x28] sm:$0xff]  ;;  %v554_v5 = vld [vmem:[#allocation11 + $0x38] sm:$0xff]  ;;  %v551_v7 = vld [vmem:[#allocation11 + $0x20] sm:$0xff]  ;;  %697 = vmatprep.mubr.f32.mxu0 %v6389_v8  ;;  %786 = vmatprep.mubr.f32.mxu1 %v6389_v8  ;;  %vm3700_vm6 = vcmask (!%p3846_p10), 7168   ;;  %s6787_s23 = sld [smem:[#allocation103_spill]] (!%p3846_p10) }
  0xb1   : > { %v3849_v4 = vpack.c.bf16 %v552_v2, %v548_v1  ;;  %v3881_v9 = vpack.c.bf16 %v554_v5, %v550_v3  ;;  %v3851_v10 = vpack.c.bf16 %v551_v7, %v547_v6  ;;  %v549_v11 = vld [vmem:[#allocation11 + $0x10] sm:$0xff]  ;;  %v556_v13 = vld [vmem:[#allocation11 + $0x48] sm:$0xff]  ;;  %v558_v16 = vld [vmem:[#allocation11 + $0x58] sm:$0xff] }
  0xb2   : > { %v553_v12 = vld [vmem:[#allocation11 + $0x30] sm:$0xff]  ;;  %v560_v15 = vld [vmem:[#allocation11 + $0x68] sm:$0xff]  ;;  %v562_v17 = vld [vmem:[#allocation11 + $0x78] sm:$0xff] }
  0xb3   : > { %3850 = vmatprep.subr.bf16.mxu0 %v3849_v4  ;;  %v3883_v14 = vpack.c.bf16 %v553_v12, %v549_v11  ;;  %3882 = vmatprep.subr.bf16.mxu1 %v3881_v9  ;;  %v3853_v18 = vpack.c.bf16 %v560_v15, %v556_v13  ;;  %v3885_v19 = vpack.c.bf16 %v562_v17, %v558_v16  ;;  %v555_v20 = vld [vmem:[#allocation11 + $0x40] sm:$0xff]  ;;  %v557_v22 = vld [vmem:[#allocation11 + $0x50] sm:$0xff]  ;;  %v564_v25 = vld [vmem:[#allocation11 + $0x88] sm:$0xff] }
  0xb4   : > { %3852 = vmatpush1.bf16.msra.mxu0 %v3851_v10  ;;  %v559_v21 = vld [vmem:[#allocation11 + $0x60] sm:$0xff]  ;;  %v561_v24 = vld [vmem:[#allocation11 + $0x70] sm:$0xff]  ;;  %v568_v26 = vld [vmem:[#allocation11 + $0xa8] sm:$0xff] }
  0xb5   : > { %3884 = vmatpush1.bf16.msra.mxu1 %v3883_v14  ;;  %v3855_v23 = vpack.c.bf16 %v559_v21, %v555_v20  ;;  %3854 = vmatprep.subr.bf16.mxu0 %v3853_v18  ;;  %v3887_v27 = vpack.c.bf16 %v561_v24, %v557_v22  ;;  %v3857_v28 = vpack.c.bf16 %v568_v26, %v564_v25  ;;  %v566_v29 = vld [vmem:[#allocation11 + $0x98] sm:$0xff]  ;;  %v563_v31 = vld [vmem:[#allocation11 + $0x80] sm:$0xff]  ;;  %v565_v34 = vld [vmem:[#allocation11 + $0x90] sm:$0xff] }
  0xb6   : > { %3886 = vmatprep.subr.bf16.mxu1 %v3885_v19  ;;  %v570_v30 = vld [vmem:[#allocation11 + $0xb8] sm:$0xff]  ;;  %v567_v33 = vld [vmem:[#allocation11 + $0xa0] sm:$0xff]  ;;  %v569_v35 = vld [vmem:[#allocation11 + $0xb0] sm:$0xff] }
  0xb7   : > { %v3889_v32 = vpack.c.bf16 %v570_v30, %v566_v29  ;;  %v3859_v36 = vpack.c.bf16 %v567_v33, %v563_v31  ;;  %v572_v37 = vld [vmem:[#allocation11 + $0xc8] sm:$0xff]  ;;  %v574_v39 = vld [vmem:[#allocation11 + $0xd8] sm:$0xff]  ;;  %v3891_v40 = vpack.c.bf16 %v569_v35, %v565_v34  ;;  %v571_v43 = vld [vmem:[#allocation11 + $0xc0] sm:$0xff] }
  0xb8   : > { %3856 = vmatpush1.bf16.msra.mxu0 %v3855_v23  ;;  %v576_v38 = vld [vmem:[#allocation11 + $0xe8] sm:$0xff]  ;;  %v578_v42 = vld [vmem:[#allocation11 + $0xf8] sm:$0xff]  ;;  %v575_v44 = vld [vmem:[#allocation11 + $0xe0] sm:$0xff] }
  0xb9   : > { %3888 = vmatpush1.bf16.msra.mxu1 %v3887_v27  ;;  %3858 = vmatprep.subr.bf16.mxu0 %v3857_v28  ;;  %v3861_v41 = vpack.c.bf16 %v576_v38, %v572_v37  ;;  %v3893_v45 = vpack.c.bf16 %v578_v42, %v574_v39  ;;  %v573_v46 = vld [vmem:[#allocation11 + $0xd0] sm:$0xff]  ;;  %v580_v48 = vld [vmem:[#allocation11 + $0x108] sm:$0xff]  ;;  %v582_v50 = vld [vmem:[#allocation11 + $0x118] sm:$0xff]  ;;  %v3863_v52 = vpack.c.bf16 %v575_v44, %v571_v43 }
  0xba   : > { %3890 = vmatprep.subr.bf16.mxu1 %v3889_v32  ;;  %v577_v47 = vld [vmem:[#allocation11 + $0xf0] sm:$0xff]  ;;  %v584_v49 = vld [vmem:[#allocation11 + $0x128] sm:$0xff]  ;;  %v586_v51 = vld [vmem:[#allocation11 + $0x138] sm:$0xff] }
  0xbb   : > { %v3895_v53 = vpack.c.bf16 %v577_v47, %v573_v46  ;;  %v3865_v54 = vpack.c.bf16 %v584_v49, %v580_v48  ;;  %v579_v55 = vld [vmem:[#allocation11 + $0x100] sm:$0xff]  ;;  %v581_v57 = vld [vmem:[#allocation11 + $0x110] sm:$0xff]  ;;  %v3897_v58 = vpack.c.bf16 %v586_v51, %v582_v50  ;;  %v588_v60 = vld [vmem:[#allocation11 + $0x148] sm:$0xff] }
  0xbc   : > { %3860 = vmatpush1.bf16.msra.mxu0 %v3859_v36  ;;  %v583_v56 = vld [vmem:[#allocation11 + $0x120] sm:$0xff]  ;;  %v585_v59 = vld [vmem:[#allocation11 + $0x130] sm:$0xff]  ;;  %v592_v61 = vld [vmem:[#allocation11 + $0x168] sm:$0xff] }
  0xbd   : > { %3892 = vmatpush1.bf16.msra.mxu1 %v3891_v40  ;;  %3862 = vmatprep.subr.bf16.mxu0 %v3861_v41  ;;  %v590_v62 = vld [vmem:[#allocation11 + $0x158] sm:$0xff]  ;;  %v3867_v0 = vpack.c.bf16 %v583_v56, %v579_v55  ;;  %v3899_v1 = vpack.c.bf16 %v585_v59, %v581_v57  ;;  %v3869_v2 = vpack.c.bf16 %v592_v61, %v588_v60  ;;  %v587_v3 = vld [vmem:[#allocation11 + $0x140] sm:$0xff]  ;;  %v589_v5 = vld [vmem:[#allocation11 + $0x150] sm:$0xff] }
  0xbe   : > { %3894 = vmatprep.subr.bf16.mxu1 %v3893_v45  ;;  %v594_v63 = vld [vmem:[#allocation11 + $0x178] sm:$0xff]  ;;  %v591_v4 = vld [vmem:[#allocation11 + $0x160] sm:$0xff]  ;;  %v593_v7 = vld [vmem:[#allocation11 + $0x170] sm:$0xff] }
  0xbf   : > { %v3901_v6 = vpack.c.bf16 %v594_v63, %v590_v62  ;;  %v596_v9 = vld [vmem:[#allocation11 + $0x188] sm:$0xff]  ;;  %v598_v11 = vld [vmem:[#allocation11 + $0x198] sm:$0xff]  ;;  %v3871_v13 = vpack.c.bf16 %v591_v4, %v587_v3  ;;  %v3903_v14 = vpack.c.bf16 %v593_v7, %v589_v5  ;;  %v595_v16 = vld [vmem:[#allocation11 + $0x180] sm:$0xff] }
  0xc0   : > { %3864 = vmatpush1.bf16.msra.mxu0 %v3863_v52  ;;  %v600_v10 = vld [vmem:[#allocation11 + $0x1a8] sm:$0xff]  ;;  %v602_v12 = vld [vmem:[#allocation11 + $0x1b8] sm:$0xff]  ;;  %v599_v17 = vld [vmem:[#allocation11 + $0x1a0] sm:$0xff] }
  0xc1   : > { %3896 = vmatpush1.bf16.msra.mxu1 %v3895_v53  ;;  %3866 = vmatprep.subr.bf16.mxu0 %v3865_v54  ;;  %v3873_v15 = vpack.c.bf16 %v600_v10, %v596_v9  ;;  %v597_v18 = vld [vmem:[#allocation11 + $0x190] sm:$0xff]  ;;  %v3905_v19 = vpack.c.bf16 %v602_v12, %v598_v11  ;;  %v604_v21 = vld [vmem:[#allocation11 + $0x1c8] sm:$0xff]  ;;  %v606_v23 = vld [vmem:[#allocation11 + $0x1d8] sm:$0xff]  ;;  %v3875_v25 = vpack.c.bf16 %v599_v17, %v595_v16 }
  0xc2   : > { %3898 = vmatprep.subr.bf16.mxu1 %v3897_v58  ;;  %v601_v20 = vld [vmem:[#allocation11 + $0x1b0] sm:$0xff]  ;;  %v608_v22 = vld [vmem:[#allocation11 + $0x1e8] sm:$0xff]  ;;  %v610_v24 = vld [vmem:[#allocation11 + $0x1f8] sm:$0xff] }
  0xc3   : > { %v3907_v26 = vpack.c.bf16 %v601_v20, %v597_v18  ;;  %v3877_v27 = vpack.c.bf16 %v608_v22, %v604_v21  ;;  %v603_v28 = vld [vmem:[#allocation11 + $0x1c0] sm:$0xff]  ;;  %v605_v30 = vld [vmem:[#allocation11 + $0x1d0] sm:$0xff]  ;;  %v3909_v31 = vpack.c.bf16 %v610_v24, %v606_v23  ;;  %v832_v33 = vld [vmem:[#allocation15 + $0x8] sm:$0xff] }
  0xc4   : > { %3868 = vmatpush1.bf16.msra.mxu0 %v3867_v0  ;;  %v607_v29 = vld [vmem:[#allocation11 + $0x1e0] sm:$0xff]  ;;  %v609_v32 = vld [vmem:[#allocation11 + $0x1f0] sm:$0xff]  ;;  %v836_v34 = vld [vmem:[#allocation15 + $0x28] sm:$0xff] }
  0xc5   : > { %3900 = vmatpush1.bf16.msra.mxu1 %v3899_v1  ;;  %3870 = vmatprep.subr.bf16.mxu0 %v3869_v2  ;;  %v834_v35 = vld [vmem:[#allocation15 + $0x18] sm:$0xff]  ;;  %v3879_v37 = vpack.c.bf16 %v607_v29, %v603_v28  ;;  %v3911_v38 = vpack.c.bf16 %v609_v32, %v605_v30  ;;  %v3913_v39 = vpack.c.bf16 %v836_v34, %v832_v33  ;;  %v831_v40 = vld [vmem:[#allocation15] sm:$0xff]  ;;  %v833_v42 = vld [vmem:[#allocation15 + $0x10] sm:$0xff] }
  0xc6   : > { %3902 = vmatprep.subr.bf16.mxu1 %v3901_v6  ;;  %v838_v36 = vld [vmem:[#allocation15 + $0x38] sm:$0xff]  ;;  %v835_v41 = vld [vmem:[#allocation15 + $0x20] sm:$0xff]  ;;  %v837_v44 = vld [vmem:[#allocation15 + $0x30] sm:$0xff] }
  0xc7   : > { %v3945_v43 = vpack.c.bf16 %v838_v36, %v834_v35  ;;  %v840_v45 = vld [vmem:[#allocation15 + $0x48] sm:$0xff]  ;;  %v842_v47 = vld [vmem:[#allocation15 + $0x58] sm:$0xff]  ;;  %v543_v49 = vld [vmem:[%s5579_s15] sm:$0xff]  ;;  %v3915_v50 = vpack.c.bf16 %v835_v41, %v831_v40  ;;  %v3947_v51 = vpack.c.bf16 %v837_v44, %v833_v42 }
  0xc8   : > { %3872 = vmatpush1.bf16.msra.mxu0 %v3871_v13  ;;  %v844_v46 = vld [vmem:[#allocation15 + $0x68] sm:$0xff]  ;;  %v846_v48 = vld [vmem:[#allocation15 + $0x78] sm:$0xff]  ;;  %v839_v53 = vld [vmem:[#allocation15 + $0x40] sm:$0xff] }
  0xc9   : > { %3904 = vmatpush1.bf16.msra.mxu1 %v3903_v14  ;;  %3874 = vmatprep.subr.bf16.mxu0 %v3873_v15  ;;  %v3917_v52 = vpack.c.bf16 %v844_v46, %v840_v45  ;;  %v843_v54 = vld [vmem:[#allocation15 + $0x60] sm:$0xff]  ;;  %v841_v55 = vld [vmem:[#allocation15 + $0x50] sm:$0xff]  ;;  %v3949_v56 = vpack.c.bf16 %v846_v48, %v842_v47  ;;  %v848_v58 = vld [vmem:[#allocation15 + $0x88] sm:$0xff] }
  0xca   : > { %3906 = vmatprep.subr.bf16.mxu1 %v3905_v19  ;;  %v845_v57 = vld [vmem:[#allocation15 + $0x70] sm:$0xff]  ;;  %v852_v59 = vld [vmem:[#allocation15 + $0xa8] sm:$0xff]  ;;  %v850_v60 = vld [vmem:[#allocation15 + $0x98] sm:$0xff]  ;;  %v3919_v62 = vpack.c.bf16 %v843_v54, %v839_v53 }
  0xcb   : > { %v854_v61 = vld [vmem:[#allocation15 + $0xb8] sm:$0xff]  ;;  %v3951_v0 = vpack.c.bf16 %v845_v57, %v841_v55  ;;  %v3921_v1 = vpack.c.bf16 %v852_v59, %v848_v58  ;;  %v847_v2 = vld [vmem:[#allocation15 + $0x80] sm:$0xff]  ;;  %v849_v4 = vld [vmem:[#allocation15 + $0x90] sm:$0xff] }
  0xcc   : > { %3876 = vmatpush1.bf16.msra.mxu0 %v3875_v25  ;;  %v544_v63 = vld [vmem:[%s5579_s15 + $0x8] sm:$0xff]  ;;  %v851_v3 = vld [vmem:[#allocation15 + $0xa0] sm:$0xff]  ;;  %v3953_v5 = vpack.c.bf16 %v854_v61, %v850_v60  ;;  %v853_v6 = vld [vmem:[#allocation15 + $0xb0] sm:$0xff] }
  0xcd   : > { %3908 = vmatpush1.bf16.msra.mxu1 %v3907_v26  ;;  %3878 = vmatprep.subr.bf16.mxu0 %v3877_v27  ;;  %v856_v7 = vld [vmem:[#allocation15 + $0xc8] sm:$0xff]  ;;  %v858_v10 = vld [vmem:[#allocation15 + $0xd8] sm:$0xff]  ;;  %v3923_v12 = vpack.c.bf16 %v851_v3, %v847_v2  ;;  %v545_v13 = vld [vmem:[%s5579_s15 + $0x10] sm:$0xff]  ;;  %v3955_v14 = vpack.c.bf16 %v853_v6, %v849_v4 }
  0xce   : > { %3910 = vmatprep.subr.bf16.mxu1 %v3909_v31  ;;  %v860_v9 = vld [vmem:[#allocation15 + $0xe8] sm:$0xff]  ;;  %v862_v11 = vld [vmem:[#allocation15 + $0xf8] sm:$0xff]  ;;  %v855_v16 = vld [vmem:[#allocation15 + $0xc0] sm:$0xff] }
  0xcf   : > { %v3925_v15 = vpack.c.bf16 %v860_v9, %v856_v7  ;;  %v859_v17 = vld [vmem:[#allocation15 + $0xe0] sm:$0xff]  ;;  %v857_v18 = vld [vmem:[#allocation15 + $0xd0] sm:$0xff]  ;;  %v3957_v19 = vpack.c.bf16 %v862_v11, %v858_v10  ;;  %v864_v21 = vld [vmem:[#allocation15 + $0x108] sm:$0xff] }
  0xd0   : > { %3880 = vmatpush1.bf16.msra.mxu0 %v3879_v37  ;;  %v861_v20 = vld [vmem:[#allocation15 + $0xf0] sm:$0xff]  ;;  %v868_v22 = vld [vmem:[#allocation15 + $0x128] sm:$0xff]  ;;  %v866_v23 = vld [vmem:[#allocation15 + $0x118] sm:$0xff]  ;;  %v3927_v25 = vpack.c.bf16 %v859_v17, %v855_v16 }
  0xd1   : > { %3912 = vmatpush1.bf16.msra.mxu1 %v3911_v38  ;;  %3914 = vmatprep.subr.bf16.mxu0 %v3913_v39  ;;  %v870_v24 = vld [vmem:[#allocation15 + $0x138] sm:$0xff]  ;;  %v546_v26 = vld [vmem:[%s5579_s15 + $0x18] sm:$0xff]  ;;  %v3959_v27 = vpack.c.bf16 %v861_v20, %v857_v18  ;;  %v3929_v28 = vpack.c.bf16 %v868_v22, %v864_v21  ;;  %v863_v29 = vld [vmem:[#allocation15 + $0x100] sm:$0xff] }
  0xd2   : > { %3946 = vmatprep.subr.bf16.mxu1 %v3945_v43  ;;  %v867_v30 = vld [vmem:[#allocation15 + $0x120] sm:$0xff]  ;;  %v865_v31 = vld [vmem:[#allocation15 + $0x110] sm:$0xff]  ;;  %v3961_v32 = vpack.c.bf16 %v870_v24, %v866_v23  ;;  %v872_v34 = vld [vmem:[#allocation15 + $0x148] sm:$0xff] }
  0xd3   : > { %698 = vmatmul.mubr.f32.vlgmr.msra.gmra.mrb[0].mxu0 %v543_v49  ;;  %v869_v33 = vld [vmem:[#allocation15 + $0x130] sm:$0xff]  ;;  %v876_v35 = vld [vmem:[#allocation15 + $0x168] sm:$0xff]  ;;  %v874_v36 = vld [vmem:[#allocation15 + $0x158] sm:$0xff]  ;;  %v3931_v38 = vpack.c.bf16 %v867_v30, %v863_v29 }
  0xd4   : > { %787 = vmatmul.mubr.f32.vlgmr.msra.gmra.mrb[0].mxu1 %v543_v49  ;;  %3916 = vmatpush1.bf16.msra.mxu0 %v3915_v50  ;;  %v878_v37 = vld [vmem:[#allocation15 + $0x178] sm:$0xff]  ;;  %v3963_v39 = vpack.c.bf16 %v869_v33, %v865_v31  ;;  %v3933_v40 = vpack.c.bf16 %v876_v35, %v872_v34  ;;  %v871_v41 = vld [vmem:[#allocation15 + $0x140] sm:$0xff]  ;;  %v873_v43 = vld [vmem:[#allocation15 + $0x150] sm:$0xff] }
  0xd5   : > { %3948 = vmatpush1.bf16.msra.mxu1 %v3947_v51  ;;  %3918 = vmatprep.subr.bf16.mxu0 %v3917_v52  ;;  %v875_v42 = vld [vmem:[#allocation15 + $0x160] sm:$0xff]  ;;  %v3965_v44 = vpack.c.bf16 %v878_v37, %v874_v36  ;;  %v877_v45 = vld [vmem:[#allocation15 + $0x170] sm:$0xff]  ;;  %v880_v46 = vld [vmem:[#allocation15 + $0x188] sm:$0xff] }
  0xd6   : > { %3950 = vmatprep.subr.bf16.mxu1 %v3949_v56  ;;  %703 = vmatprep.mubr.f32.mxu0 %v6389_v8  ;;  %v884_v47 = vld [vmem:[#allocation15 + $0x1a8] sm:$0xff]  ;;  %v882_v48 = vld [vmem:[#allocation15 + $0x198] sm:$0xff]  ;;  %v3935_v50 = vpack.c.bf16 %v875_v42, %v871_v41  ;;  %v3967_v51 = vpack.c.bf16 %v877_v45, %v873_v43  ;;  %v879_v53 = vld [vmem:[#allocation15 + $0x180] sm:$0xff] }
  0xd7   : > { %792 = vmatprep.mubr.f32.mxu1 %v6389_v8  ;;  %704 = vmatmul.mubr.f32.gmra.mrb[2].mxu0 %v544_v63  ;;  %v886_v49 = vld [vmem:[#allocation15 + $0x1b8] sm:$0xff]  ;;  %v3937_v52 = vpack.c.bf16 %v884_v47, %v880_v46  ;;  %v883_v54 = vld [vmem:[#allocation15 + $0x1a0] sm:$0xff]  ;;  %v881_v55 = vld [vmem:[#allocation15 + $0x190] sm:$0xff] }
  0xd8   : > { %3920 = vmatpush1.bf16.msra.mxu0 %v3919_v62  ;;  %793 = vmatmul.mubr.f32.gmra.mrb[2].mxu1 %v544_v63  ;;  %v3969_v56 = vpack.c.bf16 %v886_v49, %v882_v48  ;;  %v885_v57 = vld [vmem:[#allocation15 + $0x1b0] sm:$0xff]  ;;  %v888_v58 = vld [vmem:[#allocation15 + $0x1c8] sm:$0xff]  ;;  %v890_v60 = vld [vmem:[#allocation15 + $0x1d8] sm:$0xff]  ;;  %v3939_v62 = vpack.c.bf16 %v883_v54, %v879_v53 }
  0xd9   : > { %3952 = vmatpush1.bf16.msra.mxu1 %v3951_v0  ;;  %3922 = vmatprep.subr.bf16.mxu0 %v3921_v1  ;;  %v892_v59 = vld [vmem:[#allocation15 + $0x1e8] sm:$0xff]  ;;  %v894_v61 = vld [vmem:[#allocation15 + $0x1f8] sm:$0xff]  ;;  %v3971_v63 = vpack.c.bf16 %v885_v57, %v881_v55  ;;  %v887_v1 = vld [vmem:[#allocation15 + $0x1c0] sm:$0xff] }
  0xda   : > { %3954 = vmatprep.subr.bf16.mxu1 %v3953_v5  ;;  %709 = vmatprep.mubr.f32.mxu0 %v6389_v8  ;;  %v3941_v0 = vpack.c.bf16 %v892_v59, %v888_v58  ;;  %v891_v2 = vld [vmem:[#allocation15 + $0x1e0] sm:$0xff]  ;;  %v889_v3 = vld [vmem:[#allocation15 + $0x1d0] sm:$0xff]  ;;  %v3973_v4 = vpack.c.bf16 %v894_v61, %v890_v60  ;;  %v1116_v6 = vld [vmem:[#allocation18 + $0x8] sm:$0xff] }
  0xdb   : > { %798 = vmatprep.mubr.f32.mxu1 %v6389_v8  ;;  %710 = vmatmul.mubr.f32.gmra.mrb[4].mxu0 %v545_v13  ;;  %v893_v5 = vld [vmem:[#allocation15 + $0x1f0] sm:$0xff]  ;;  %v1120_v7 = vld [vmem:[#allocation18 + $0x28] sm:$0xff]  ;;  %v1118_v9 = vld [vmem:[#allocation18 + $0x18] sm:$0xff]  ;;  %v3943_v11 = vpack.c.bf16 %v891_v2, %v887_v1 }
  0xdc   : > { %3924 = vmatpush1.bf16.msra.mxu0 %v3923_v12  ;;  %799 = vmatmul.mubr.f32.gmra.mrb[4].mxu1 %v545_v13  ;;  %v1122_v10 = vld [vmem:[#allocation18 + $0x38] sm:$0xff]  ;;  %v3975_v12 = vpack.c.bf16 %v893_v5, %v889_v3  ;;  %v3977_v13 = vpack.c.bf16 %v1120_v7, %v1116_v6  ;;  %v1117_v16 = vld [vmem:[#allocation18 + $0x10] sm:$0xff]  ;;  %v1128_v20 = vld [vmem:[#allocation18 + $0x68] sm:$0xff] }
  0xdd   : > { %3956 = vmatpush1.bf16.msra.mxu1 %v3955_v14  ;;  %3926 = vmatprep.subr.bf16.mxu0 %v3925_v15  ;;  %v1115_v14 = vld [vmem:[#allocation18] sm:$0xff]  ;;  %v4009_v17 = vpack.c.bf16 %v1122_v10, %v1118_v9  ;;  %v1121_v18 = vld [vmem:[#allocation18 + $0x30] sm:$0xff]  ;;  %v1126_v21 = vld [vmem:[#allocation18 + $0x58] sm:$0xff] }
  0xde   : > { %3958 = vmatprep.subr.bf16.mxu1 %v3957_v19  ;;  %715 = vmatprep.mubr.f32.mxu0 %v6389_v8  ;;  %v1119_v15 = vld [vmem:[#allocation18 + $0x20] sm:$0xff]  ;;  %v1124_v19 = vld [vmem:[#allocation18 + $0x48] sm:$0xff]  ;;  %v1130_v22 = vld [vmem:[#allocation18 + $0x78] sm:$0xff] }
  0xdf   : > { %804 = vmatprep.mubr.f32.mxu1 %v6389_v8  ;;  %716 = vmatmul.mubr.f32.gmra.mrb[6].mxu0 %v546_v26  ;;  %v827_v23 = vld [vmem:[%s5584_s25] sm:$0xff]  ;;  %v3979_v24 = vpack.c.bf16 %v1119_v15, %v1115_v14  ;;  %v4013_v30 = vpack.c.bf16 %v1130_v22, %v1126_v21  ;;  %v1136_v33 = vld [vmem:[#allocation18 + $0xa8] sm:$0xff]  ;;  %v1134_v34 = vld [vmem:[#allocation18 + $0x98] sm:$0xff] }
  0xe0   : > { %3928 = vmatpush1.bf16.msra.mxu0 %v3927_v25  ;;  %805 = vmatmul.mubr.f32.gmra.mrb[6].mxu1 %v546_v26  ;;  %v4011_v25 = vpack.c.bf16 %v1121_v18, %v1117_v16  ;;  %v3981_v26 = vpack.c.bf16 %v1128_v20, %v1124_v19  ;;  %v1125_v29 = vld [vmem:[#allocation18 + $0x50] sm:$0xff]  ;;  %v1138_v35 = vld [vmem:[#allocation18 + $0xb8] sm:$0xff]  ;;  %v1135_v41 = vld [vmem:[#allocation18 + $0xa0] sm:$0xff] }
  0xe1   : > { %3960 = vmatpush1.bf16.msra.mxu1 %v3959_v27  ;;  %3930 = vmatprep.subr.bf16.mxu0 %v3929_v28  ;;  %v1123_v27 = vld [vmem:[#allocation18 + $0x40] sm:$0xff]  ;;  %v1129_v31 = vld [vmem:[#allocation18 + $0x70] sm:$0xff]  ;;  %v828_v37 = vld [vmem:[%s5584_s25 + $0x8] sm:$0xff]  ;;  %v4017_v43 = vpack.c.bf16 %v1138_v35, %v1134_v34 }
  0xe2   : > { %3962 = vmatprep.subr.bf16.mxu1 %v3961_v32  ;;  %981 = vmatprep.mubr.f32.mxu0 %v6389_v8  ;;  %v1127_v28 = vld [vmem:[#allocation18 + $0x60] sm:$0xff]  ;;  %v1132_v32 = vld [vmem:[#allocation18 + $0x88] sm:$0xff]  ;;  %v1133_v42 = vld [vmem:[#allocation18 + $0x90] sm:$0xff] }
  0xe3   : > { %1070 = vmatprep.mubr.f32.mxu1 %v6389_v8  ;;  %v3983_v36 = vpack.c.bf16 %v1127_v28, %v1123_v27  ;;  %v1140_v45 = vld [vmem:[#allocation18 + $0xc8] sm:$0xff]  ;;  %v1142_v47 = vld [vmem:[#allocation18 + $0xd8] sm:$0xff]  ;;  %v1139_v53 = vld [vmem:[#allocation18 + $0xc0] sm:$0xff] }
  0xe4   : > { %3932 = vmatpush1.bf16.msra.mxu0 %v3931_v38  ;;  %v4015_v38 = vpack.c.bf16 %v1129_v31, %v1125_v29  ;;  %v1144_v46 = vld [vmem:[#allocation18 + $0xe8] sm:$0xff]  ;;  %v1146_v48 = vld [vmem:[#allocation18 + $0xf8] sm:$0xff]  ;;  %v1143_v54 = vld [vmem:[#allocation18 + $0xe0] sm:$0xff] }
  0xe5   : > { %3964 = vmatpush1.bf16.msra.mxu1 %v3963_v39  ;;  %3934 = vmatprep.subr.bf16.mxu0 %v3933_v40  ;;  %v3985_v39 = vpack.c.bf16 %v1136_v33, %v1132_v32  ;;  %v1131_v40 = vld [vmem:[#allocation18 + $0x80] sm:$0xff]  ;;  %v1141_v55 = vld [vmem:[#allocation18 + $0xd0] sm:$0xff]  ;;  %v1148_v58 = vld [vmem:[#allocation18 + $0x108] sm:$0xff] }
  0xe6   : > { %3966 = vmatprep.subr.bf16.mxu1 %v3965_v44  ;;  %v1137_v44 = vld [vmem:[#allocation18 + $0xb0] sm:$0xff]  ;;  %v3987_v49 = vpack.c.bf16 %v1135_v41, %v1131_v40  ;;  %v1152_v59 = vld [vmem:[#allocation18 + $0x128] sm:$0xff]  ;;  %v1150_v60 = vld [vmem:[#allocation18 + $0x118] sm:$0xff] }
  0xe7   : > { %v1145_v57 = vld [vmem:[#allocation18 + $0xf0] sm:$0xff]  ;;  %v1154_v61 = vld [vmem:[#allocation18 + $0x138] sm:$0xff]  ;;  %v3993_v1 = vpack.c.bf16 %v1152_v59, %v1148_v58  ;;  %v1147_v2 = vld [vmem:[#allocation18 + $0x100] sm:$0xff] }
  0xe8   : > { %3936 = vmatpush1.bf16.msra.mxu0 %v3935_v50  ;;  %v829_v50 = vld [vmem:[%s5584_s25 + $0x10] sm:$0xff]  ;;  %v4025_v5 = vpack.c.bf16 %v1154_v61, %v1150_v60  ;;  %v1153_v6 = vld [vmem:[#allocation18 + $0x130] sm:$0xff]  ;;  %v1156_v7 = vld [vmem:[#allocation18 + $0x148] sm:$0xff] }
  0xe9   : > { %3968 = vmatpush1.bf16.msra.mxu1 %v3967_v51  ;;  %3938 = vmatprep.subr.bf16.mxu0 %v3937_v52  ;;  %v4019_v51 = vpack.c.bf16 %v1137_v44, %v1133_v42  ;;  %v3989_v52 = vpack.c.bf16 %v1144_v46, %v1140_v45  ;;  %v1151_v3 = vld [vmem:[#allocation18 + $0x120] sm:$0xff]  ;;  %v1160_v9 = vld [vmem:[#allocation18 + $0x168] sm:$0xff]  ;;  %v1158_v10 = vld [vmem:[#allocation18 + $0x158] sm:$0xff] }
  0xea   : > { %3970 = vmatprep.subr.bf16.mxu1 %v3969_v56  ;;  %v4021_v56 = vpack.c.bf16 %v1146_v48, %v1142_v47  ;;  %v3997_v14 = vpack.c.bf16 %v1160_v9, %v1156_v7  ;;  %v1155_v15 = vld [vmem:[#allocation18 + $0x140] sm:$0xff]  ;;  %v1161_v19 = vld [vmem:[#allocation18 + $0x170] sm:$0xff]  ;;  %v1164_v20 = vld [vmem:[#allocation18 + $0x188] sm:$0xff] }
  0xeb   : > { %v1159_v16 = vld [vmem:[#allocation18 + $0x160] sm:$0xff]  ;;  %v1168_v21 = vld [vmem:[#allocation18 + $0x1a8] sm:$0xff]  ;;  %v1166_v22 = vld [vmem:[#allocation18 + $0x198] sm:$0xff] }
  0xec   : > { %3940 = vmatpush1.bf16.msra.mxu0 %v3939_v62  ;;  %v3991_v62 = vpack.c.bf16 %v1143_v54, %v1139_v53  ;;  %v1163_v27 = vld [vmem:[#allocation18 + $0x180] sm:$0xff]  ;;  %v1165_v29 = vld [vmem:[#allocation18 + $0x190] sm:$0xff]  ;;  %v1172_v32 = vld [vmem:[#allocation18 + $0x1c8] sm:$0xff] }
  0xed   : > { %3972 = vmatpush1.bf16.msra.mxu1 %v3971_v63  ;;  %3942 = vmatprep.subr.bf16.mxu0 %v3941_v0  ;;  %v830_v63 = vld [vmem:[%s5584_s25 + $0x18] sm:$0xff]  ;;  %v4023_v0 = vpack.c.bf16 %v1145_v57, %v1141_v55  ;;  %v1167_v28 = vld [vmem:[#allocation18 + $0x1a0] sm:$0xff]  ;;  %v1169_v31 = vld [vmem:[#allocation18 + $0x1b0] sm:$0xff] }
  0xee   : > { %3974 = vmatprep.subr.bf16.mxu1 %v3973_v4  ;;  %v1149_v4 = vld [vmem:[#allocation18 + $0x110] sm:$0xff]  ;;  %v1176_v33 = vld [vmem:[#allocation18 + $0x1e8] sm:$0xff]  ;;  %v1174_v34 = vld [vmem:[#allocation18 + $0x1d8] sm:$0xff] }
  0xef   : > { %v1178_v35 = vld [vmem:[#allocation18 + $0x1f8] sm:$0xff]  ;;  %v1175_v40 = vld [vmem:[#allocation18 + $0x1e0] sm:$0xff]  ;;  %v1173_v41 = vld [vmem:[#allocation18 + $0x1d0] sm:$0xff] }
  0xf0   : > { %3944 = vmatpush1.bf16.msra.mxu0 %v3943_v11  ;;  %v1162_v11 = vld [vmem:[#allocation18 + $0x178] sm:$0xff]  ;;  %v4037_v42 = vpack.c.bf16 %v1178_v35, %v1174_v34  ;;  %v1396_v44 = vld [vmem:[#allocation13 + $0x8] sm:$0xff]  ;;  %v1397_v53 = vld [vmem:[#allocation13 + $0x10] sm:$0xff] }
  0xf1   : > { %3976 = vmatpush1.bf16.msra.mxu1 %v3975_v12  ;;  %3978 = vmatprep.subr.bf16.mxu0 %v3977_v13  ;;  %v3995_v12 = vpack.c.bf16 %v1151_v3, %v1147_v2  ;;  %v4027_v13 = vpack.c.bf16 %v1153_v6, %v1149_v4  ;;  %v4029_v18 = vpack.c.bf16 %v1162_v11, %v1158_v10  ;;  %v1400_v45 = vld [vmem:[#allocation13 + $0x28] sm:$0xff]  ;;  %v1398_v46 = vld [vmem:[#allocation13 + $0x18] sm:$0xff]  ;;  %v1401_v55 = vld [vmem:[#allocation13 + $0x30] sm:$0xff] }
  0xf2   : > { %4010 = vmatprep.subr.bf16.mxu1 %v4009_v17  ;;  %v1157_v17 = vld [vmem:[#allocation18 + $0x150] sm:$0xff]  ;;  %v1402_v47 = vld [vmem:[#allocation13 + $0x38] sm:$0xff]  ;;  %v1408_v57 = vld [vmem:[#allocation13 + $0x68] sm:$0xff] }
  0xf3   : > { %982 = vmatmul.mubr.f32.vlgmr.msra.gmra.mrb[8].mxu0 %v827_v23  ;;  %v5621_v54 = vpack.c.bf16 %v1402_v47, %v1398_v46  ;;  %v1406_v58 = vld [vmem:[#allocation13 + $0x58] sm:$0xff]  ;;  %v1111_v60 = vld [vmem:[%s5589_s18] sm:$0xff]  ;;  %v1416_v6 = vld [vmem:[#allocation13 + $0xa8] sm:$0xff] }
  0xf4   : > { %1071 = vmatmul.mubr.f32.vlgmr.msra.gmra.mrb[8].mxu1 %v827_v23  ;;  %3980 = vmatpush1.bf16.msra.mxu0 %v3979_v24  ;;  %v1170_v23 = vld [vmem:[#allocation18 + $0x1b8] sm:$0xff]  ;;  %v3999_v24 = vpack.c.bf16 %v1159_v16, %v1155_v15  ;;  %v1405_v2 = vld [vmem:[#allocation13 + $0x50] sm:$0xff]  ;;  %v1415_v15 = vld [vmem:[#allocation13 + $0xa0] sm:$0xff] }
  0xf5   : > { %4012 = vmatpush1.bf16.msra.mxu1 %v4011_v25  ;;  %3982 = vmatprep.subr.bf16.mxu0 %v3981_v26  ;;  %v4031_v25 = vpack.c.bf16 %v1161_v19, %v1157_v17  ;;  %v4001_v26 = vpack.c.bf16 %v1168_v21, %v1164_v20  ;;  %v1410_v59 = vld [vmem:[#allocation13 + $0x78] sm:$0xff]  ;;  %v1409_v4 = vld [vmem:[#allocation13 + $0x70] sm:$0xff]  ;;  %v1420_v19 = vld [vmem:[#allocation13 + $0xc8] sm:$0xff] }
  0xf6   : > { %4014 = vmatprep.subr.bf16.mxu1 %v4013_v30  ;;  %987 = vmatprep.mubr.f32.mxu0 %v6389_v8  ;;  %v4033_v30 = vpack.c.bf16 %v1170_v23, %v1166_v22  ;;  %v5632_v3 = vpack.c.bf16 %v1410_v59, %v1406_v58  ;;  %v1414_v7 = vld [vmem:[#allocation13 + $0x98] sm:$0xff]  ;;  %v1413_v16 = vld [vmem:[#allocation13 + $0x90] sm:$0xff]  ;;  %v1424_v20 = vld [vmem:[#allocation13 + $0xe8] sm:$0xff] }
  0xf7   : > { %1076 = vmatprep.mubr.f32.mxu1 %v6389_v8  ;;  %988 = vmatmul.mubr.f32.gmra.mrb[10].mxu0 %v828_v37  ;;  %v1418_v9 = vld [vmem:[#allocation13 + $0xb8] sm:$0xff]  ;;  %v1440_v46 = vld [vmem:[#allocation13 + $0x168] sm:$0xff]  ;;  %v1441_v58 = vld [vmem:[#allocation13 + $0x170] sm:$0xff] }
  0xf8   : > { %3984 = vmatpush1.bf16.msra.mxu0 %v3983_v36  ;;  %1077 = vmatmul.mubr.f32.gmra.mrb[10].mxu1 %v828_v37  ;;  %v4003_v36 = vpack.c.bf16 %v1167_v28, %v1163_v27  ;;  %v4035_v37 = vpack.c.bf16 %v1169_v31, %v1165_v29  ;;  %v1112_v11 = vld [vmem:[%s5589_s18 + $0x8] sm:$0xff]  ;;  %v5645_v17 = vpack.c.bf16 %v1418_v9, %v1414_v7  ;;  %v1419_v27 = vld [vmem:[#allocation13 + $0xc0] sm:$0xff]  ;;  %v1421_v29 = vld [vmem:[#allocation13 + $0xd0] sm:$0xff] }
  0xf9   : > { %4016 = vmatpush1.bf16.msra.mxu1 %v4015_v38  ;;  %3986 = vmatprep.subr.bf16.mxu0 %v3985_v39  ;;  %v4005_v38 = vpack.c.bf16 %v1176_v33, %v1172_v32  ;;  %v1171_v39 = vld [vmem:[#allocation18 + $0x1c0] sm:$0xff]  ;;  %v1422_v21 = vld [vmem:[#allocation13 + $0xd8] sm:$0xff]  ;;  %v1425_v31 = vld [vmem:[#allocation13 + $0xf0] sm:$0xff] }
  0xfa   : > { %4018 = vmatprep.subr.bf16.mxu1 %v4017_v43  ;;  %993 = vmatprep.mubr.f32.mxu0 %v6389_v8  ;;  %v1177_v43 = vld [vmem:[#allocation18 + $0x1f0] sm:$0xff]  ;;  %v4007_v48 = vpack.c.bf16 %v1175_v40, %v1171_v39  ;;  %6550 = vst [vmem:[#allocation26_spill] sm:$0xff] %v5645_v17  ;;  %v1426_v22 = vld [vmem:[#allocation13 + $0xf8] sm:$0xff]  ;;  %v1423_v28 = vld [vmem:[#allocation13 + $0xe0] sm:$0xff] }
  0xfb   : > { %1082 = vmatprep.mubr.f32.mxu1 %v6389_v8  ;;  %994 = vmatmul.mubr.f32.gmra.mrb[12].mxu0 %v829_v50  ;;  %v1428_v32 = vld [vmem:[#allocation13 + $0x108] sm:$0xff]  ;;  %v1430_v34 = vld [vmem:[#allocation13 + $0x118] sm:$0xff]  ;;  %v1427_v40 = vld [vmem:[#allocation13 + $0x100] sm:$0xff] }
  0xfc   : > { %3988 = vmatpush1.bf16.msra.mxu0 %v3987_v49  ;;  %1083 = vmatmul.mubr.f32.gmra.mrb[12].mxu1 %v829_v50  ;;  %v4039_v49 = vpack.c.bf16 %v1177_v43, %v1173_v41  ;;  %v5619_v50 = vpack.c.bf16 %v1400_v45, %v1396_v44  ;;  %v1432_v33 = vld [vmem:[#allocation13 + $0x128] sm:$0xff]  ;;  %v1434_v35 = vld [vmem:[#allocation13 + $0x138] sm:$0xff]  ;;  %v1431_v41 = vld [vmem:[#allocation13 + $0x120] sm:$0xff] }
  0xfd   : > { %4020 = vmatpush1.bf16.msra.mxu1 %v4019_v51  ;;  %3990 = vmatprep.subr.bf16.mxu0 %v3989_v52  ;;  %v1395_v51 = vld [vmem:[#allocation13] sm:$0xff]  ;;  %v5672_v39 = vpack.c.bf16 %v1432_v33, %v1428_v32  ;;  %v5675_v43 = vpack.c.bf16 %v1434_v35, %v1430_v34  ;;  %v1433_v44 = vld [vmem:[#allocation13 + $0x130] sm:$0xff]  ;;  %v1436_v45 = vld [vmem:[#allocation13 + $0x148] sm:$0xff] }
  0xfe   : > { %4022 = vmatprep.subr.bf16.mxu1 %v4021_v56  ;;  %999 = vmatprep.mubr.f32.mxu0 %v6389_v8  ;;  %v1399_v52 = vld [vmem:[#allocation13 + $0x20] sm:$0xff]  ;;  %v1404_v56 = vld [vmem:[#allocation13 + $0x48] sm:$0xff]  ;;  %v1438_v47 = vld [vmem:[#allocation13 + $0x158] sm:$0xff] }
  0xff   : > { %1088 = vmatprep.mubr.f32.mxu1 %v6389_v8  ;;  %1000 = vmatmul.mubr.f32.gmra.mrb[14].mxu0 %v830_v63  ;;  %v5624_v61 = vpack.c.bf16 %v1399_v52, %v1395_v51  ;;  %6557 = vst [vmem:[#allocation33_spill] sm:$0xff] %v5672_v39  ;;  %6558 = vst [vmem:[#allocation34_spill] sm:$0xff] %v5675_v43  ;;  %v5686_v52 = vpack.c.bf16 %v1440_v46, %v1436_v45  ;;  %v1444_v59 = vld [vmem:[#allocation13 + $0x188] sm:$0xff]  ;;  %v1447_v7 = vld [vmem:[#allocation13 + $0x1a0] sm:$0xff] }
 0x100   : > { %3992 = vmatpush1.bf16.msra.mxu0 %v3991_v62  ;;  %1089 = vmatmul.mubr.f32.gmra.mrb[14].mxu1 %v830_v63  ;;  %v5627_v62 = vpack.c.bf16 %v1401_v55, %v1397_v53  ;;  %v5629_v63 = vpack.c.bf16 %v1408_v57, %v1404_v56  ;;  %v1435_v53 = vld [vmem:[#allocation13 + $0x140] sm:$0xff]  ;;  %v1437_v56 = vld [vmem:[#allocation13 + $0x150] sm:$0xff]  ;;  %v1460_v32 = vld [vmem:[#allocation16 + $0x8] sm:$0xff] }
 0x101   : > { %4024 = vmatpush1.bf16.msra.mxu1 %v4023_v0  ;;  %3994 = vmatprep.subr.bf16.mxu0 %v3993_v1  ;;  %v1403_v0 = vld [vmem:[#allocation13 + $0x40] sm:$0xff]  ;;  %6561 = vst [vmem:[#allocation37_spill] sm:$0xff] %v5686_v52  ;;  %v1445_v9 = vld [vmem:[#allocation13 + $0x190] sm:$0xff]  ;;  %v1464_v33 = vld [vmem:[#allocation16 + $0x28] sm:$0xff] }
 0x102   : > { %4026 = vmatprep.subr.bf16.mxu1 %v4025_v5  ;;  %1265 = vmatprep.mubr.f32.mxu0 %v6389_v8  ;;  %v1407_v1 = vld [vmem:[#allocation13 + $0x60] sm:$0xff]  ;;  %v1412_v5 = vld [vmem:[#allocation13 + $0x88] sm:$0xff]  ;;  %v1462_v34 = vld [vmem:[#allocation16 + $0x18] sm:$0xff] }
 0x103   : > { %1354 = vmatprep.mubr.f32.mxu1 %v6389_v8  ;;  %v5635_v10 = vpack.c.bf16 %v1407_v1, %v1403_v0  ;;  %v1439_v55 = vld [vmem:[#allocation13 + $0x160] sm:$0xff]  ;;  %v1446_v0 = vld [vmem:[#allocation13 + $0x198] sm:$0xff]  ;;  %v1461_v45 = vld [vmem:[#allocation16 + $0x10] sm:$0xff] }
 0x104   : > { %3996 = vmatpush1.bf16.msra.mxu0 %v3995_v12  ;;  %v5640_v12 = vpack.c.bf16 %v1409_v4, %v1405_v2  ;;  %v1450_v1 = vld [vmem:[#allocation13 + $0x1b8] sm:$0xff]  ;;  %v5694_v2 = vpack.c.bf16 %v1439_v55, %v1435_v53  ;;  %v5698_v4 = vpack.c.bf16 %v1441_v58, %v1437_v56  ;;  %v1472_v53 = vld [vmem:[#allocation16 + $0x68] sm:$0xff]  ;;  %v1587_v58 = vld [vmem:[#allocation5] sm:$0xff] }
 0x105   : > { %4028 = vmatpush1.bf16.msra.mxu1 %v4027_v13  ;;  %3998 = vmatprep.subr.bf16.mxu0 %v3997_v14  ;;  %v5642_v13 = vpack.c.bf16 %v1416_v6, %v1412_v5  ;;  %v1411_v14 = vld [vmem:[#allocation13 + $0x80] sm:$0xff]  ;;  %v1466_v35 = vld [vmem:[#allocation16 + $0x38] sm:$0xff] }
 0x106   : > { %4030 = vmatprep.subr.bf16.mxu1 %v4029_v18  ;;  %v1417_v18 = vld [vmem:[#allocation13 + $0xb0] sm:$0xff]  ;;  %v5650_v23 = vpack.c.bf16 %v1415_v15, %v1411_v14  ;;  %6563 = vst [vmem:[#allocation39_spill] sm:$0xff] %v5694_v2  ;;  %6564 = vst [vmem:[#allocation40_spill] sm:$0xff] %v5698_v4  ;;  %v1443_v6 = vld [vmem:[#allocation13 + $0x180] sm:$0xff]  ;;  %v5727_v46 = vpack.c.bf16 %v1466_v35, %v1462_v34 }
 0x107   : > { %v1449_v14 = vld [vmem:[#allocation13 + $0x1b0] sm:$0xff]  ;;  %v1452_v15 = vld [vmem:[#allocation13 + $0x1c8] sm:$0xff]  ;;  %v1470_v55 = vld [vmem:[#allocation16 + $0x58] sm:$0xff] }
 0x108   : > { %4000 = vmatpush1.bf16.msra.mxu0 %v3999_v24  ;;  %6551 = vst [vmem:[#allocation27_spill] sm:$0xff] %v5650_v23  ;;  %v1113_v24 = vld [vmem:[%s5589_s18 + $0x10] sm:$0xff]  ;;  %6574 = vst [vmem:[#allocation50_spill] sm:$0xff] %v5727_v46  ;;  %v1474_v56 = vld [vmem:[#allocation16 + $0x78] sm:$0xff] }
 0x109   : > { %4032 = vmatpush1.bf16.msra.mxu1 %v4031_v25  ;;  %4002 = vmatprep.subr.bf16.mxu0 %v4001_v26  ;;  %v5655_v25 = vpack.c.bf16 %v1417_v18, %v1413_v16  ;;  %v5657_v26 = vpack.c.bf16 %v1424_v20, %v1420_v19  ;;  %v1456_v16 = vld [vmem:[#allocation13 + $0x1e8] sm:$0xff]  ;;  %v1454_v18 = vld [vmem:[#allocation13 + $0x1d8] sm:$0xff]  ;;  %v5706_v20 = vpack.c.bf16 %v1447_v7, %v1443_v6  ;;  %v1471_v6 = vld [vmem:[#allocation16 + $0x60] sm:$0xff] }
 0x10a   : > { %4034 = vmatprep.subr.bf16.mxu1 %v4033_v30  ;;  %v5660_v30 = vpack.c.bf16 %v1426_v22, %v1422_v21  ;;  %v1458_v19 = vld [vmem:[#allocation13 + $0x1f8] sm:$0xff]  ;;  %v5710_v21 = vpack.c.bf16 %v1449_v14, %v1445_v9  ;;  %v5712_v22 = vpack.c.bf16 %v1456_v16, %v1452_v15  ;;  %v1469_v7 = vld [vmem:[#allocation16 + $0x50] sm:$0xff]  ;;  %v5739_v9 = vpack.c.bf16 %v1474_v56, %v1470_v55  ;;  %v1476_v15 = vld [vmem:[#allocation16 + $0x88] sm:$0xff] }
 0x10b   : > { %6552 = vst [vmem:[#allocation28_spill] sm:$0xff] %v5655_v25  ;;  %6553 = vst [vmem:[#allocation29_spill] sm:$0xff] %v5657_v26  ;;  %v1473_v14 = vld [vmem:[#allocation16 + $0x70] sm:$0xff]  ;;  %v1480_v16 = vld [vmem:[#allocation16 + $0xa8] sm:$0xff] }
 0x10c   : > { %4004 = vmatpush1.bf16.msra.mxu0 %v4003_v36  ;;  %6554 = vst [vmem:[#allocation30_spill] sm:$0xff] %v5660_v30  ;;  %v5665_v36 = vpack.c.bf16 %v1423_v28, %v1419_v27  ;;  %6567 = vst [vmem:[#allocation43_spill] sm:$0xff] %v5706_v20  ;;  %v1455_v27 = vld [vmem:[#allocation13 + $0x1e0] sm:$0xff]  ;;  %v1453_v28 = vld [vmem:[#allocation13 + $0x1d0] sm:$0xff] }
 0x10d   : > { %4036 = vmatpush1.bf16.msra.mxu1 %v4035_v37  ;;  %4006 = vmatprep.subr.bf16.mxu0 %v4005_v38  ;;  %v1114_v37 = vld [vmem:[%s5589_s18 + $0x18] sm:$0xff]  ;;  %v5670_v38 = vpack.c.bf16 %v1425_v31, %v1421_v29  ;;  %6568 = vst [vmem:[#allocation44_spill] sm:$0xff] %v5710_v21  ;;  %6569 = vst [vmem:[#allocation45_spill] sm:$0xff] %v5712_v22  ;;  %v5715_v29 = vpack.c.bf16 %v1458_v19, %v1454_v18  ;;  %v1457_v31 = vld [vmem:[#allocation13 + $0x1f0] sm:$0xff] }
 0x10e   : > { %4038 = vmatprep.subr.bf16.mxu1 %v4037_v42  ;;  %6555 = vst [vmem:[#allocation31_spill] sm:$0xff] %v5665_v36  ;;  %v1429_v42 = vld [vmem:[#allocation13 + $0x110] sm:$0xff]  ;;  %v1478_v18 = vld [vmem:[#allocation16 + $0x98] sm:$0xff]  ;;  %v1483_v56 = vld [vmem:[#allocation16 + $0xc0] sm:$0xff] }
 0x10f   : > { %6556 = vst [vmem:[#allocation32_spill] sm:$0xff] %v5670_v38  ;;  %v5684_v51 = vpack.c.bf16 %v1433_v44, %v1429_v42  ;;  %6570 = vst [vmem:[#allocation46_spill] sm:$0xff] %v5715_v29  ;;  %v1459_v42 = vld [vmem:[#allocation16] sm:$0xff]  ;;  %v1482_v19 = vld [vmem:[#allocation16 + $0xb8] sm:$0xff] }
 0x110   : > { %4008 = vmatpush1.bf16.msra.mxu0 %v4007_v48  ;;  %v1442_v48 = vld [vmem:[#allocation13 + $0x178] sm:$0xff]  ;;  %v1463_v44 = vld [vmem:[#allocation16 + $0x20] sm:$0xff]  ;;  %v5751_v34 = vpack.c.bf16 %v1482_v19, %v1478_v18  ;;  %v1481_v35 = vld [vmem:[#allocation16 + $0xb0] sm:$0xff] }
 0x111   : > { %4040 = vmatpush1.bf16.msra.mxu1 %v4039_v49  ;;  %4042 = vmatprep.subr.bf16.mxu0 %v5619_v50  ;;  %v5680_v49 = vpack.c.bf16 %v1431_v41, %v1427_v40  ;;  %6560 = vst [vmem:[#allocation36_spill] sm:$0xff] %v5684_v51  ;;  %v5689_v57 = vpack.c.bf16 %v1442_v48, %v1438_v47  ;;  %v1465_v47 = vld [vmem:[#allocation16 + $0x30] sm:$0xff]  ;;  %v1468_v48 = vld [vmem:[#allocation16 + $0x48] sm:$0xff]  ;;  %v1498_v18 = vld [vmem:[#allocation16 + $0x138] sm:$0xff] }
 0x112   : > { %4074 = vmatprep.subr.bf16.mxu1 %v5621_v54  ;;  %v5722_v40 = vpack.c.bf16 %v1457_v31, %v1453_v28  ;;  %v5724_v41 = vpack.c.bf16 %v1464_v33, %v1460_v32  ;;  %v5748_v28 = vpack.c.bf16 %v1480_v16, %v1476_v15  ;;  %v1475_v31 = vld [vmem:[#allocation16 + $0x80] sm:$0xff]  ;;  %v1477_v33 = vld [vmem:[#allocation16 + $0x90] sm:$0xff]  ;;  %6577 = vst [vmem:[#allocation53_spill] sm:$0xff] %v5751_v34  ;;  %v1496_v15 = vld [vmem:[#allocation16 + $0x128] sm:$0xff] }
 0x113   : > { %1266 = vmatmul.mubr.f32.vlgmr.msra.gmra.mrb[16].mxu0 %v1111_v60  ;;  %6559 = vst [vmem:[#allocation35_spill] sm:$0xff] %v5680_v49  ;;  %6562 = vst [vmem:[#allocation38_spill] sm:$0xff] %v5689_v57  ;;  %v1479_v32 = vld [vmem:[#allocation16 + $0xa0] sm:$0xff]  ;;  %v1494_v16 = vld [vmem:[#allocation16 + $0x118] sm:$0xff] }
 0x114   : > { %1355 = vmatmul.mubr.f32.vlgmr.msra.gmra.mrb[16].mxu1 %v1111_v60  ;;  %4044 = vmatpush1.bf16.msra.mxu0 %v5624_v61  ;;  %v1448_v60 = vld [vmem:[#allocation13 + $0x1a8] sm:$0xff]  ;;  %6572 = vst [vmem:[#allocation48_spill] sm:$0xff] %v5722_v40  ;;  %6573 = vst [vmem:[#allocation49_spill] sm:$0xff] %v5724_v41 }
 0x115   : > { %4076 = vmatpush1.bf16.msra.mxu1 %v5627_v62  ;;  %4046 = vmatprep.subr.bf16.mxu0 %v5629_v63  ;;  %v5700_v5 = vpack.c.bf16 %v1448_v60, %v1444_v59  ;;  %v5730_v59 = vpack.c.bf16 %v1463_v44, %v1459_v42  ;;  %v5734_v60 = vpack.c.bf16 %v1465_v47, %v1461_v45  ;;  %v1484_v42 = vld [vmem:[#allocation16 + $0xc8] sm:$0xff]  ;;  %v1486_v45 = vld [vmem:[#allocation16 + $0xd8] sm:$0xff] }
 0x116   : > { %4078 = vmatprep.subr.bf16.mxu1 %v5632_v3  ;;  %1271 = vmatprep.mubr.f32.mxu0 %v6389_v8  ;;  %6576 = vst [vmem:[#allocation52_spill] sm:$0xff] %v5748_v28  ;;  %v1488_v44 = vld [vmem:[#allocation16 + $0xe8] sm:$0xff]  ;;  %v1490_v47 = vld [vmem:[#allocation16 + $0xf8] sm:$0xff] }
 0x117   : > { %1360 = vmatprep.mubr.f32.mxu1 %v6389_v8  ;;  %1272 = vmatmul.mubr.f32.gmra.mrb[18].mxu0 %v1112_v11  ;;  %6565 = vst [vmem:[#allocation41_spill] sm:$0xff] %v5700_v5  ;;  %v5762_v55 = vpack.c.bf16 %v1488_v44, %v1484_v42  ;;  %v1493_v42 = vld [vmem:[#allocation16 + $0x110] sm:$0xff]  ;;  %v5777_v44 = vpack.c.bf16 %v1498_v18, %v1494_v16 }
 0x118   : > { %4048 = vmatpush1.bf16.msra.mxu0 %v5635_v10  ;;  %1361 = vmatmul.mubr.f32.gmra.mrb[18].mxu1 %v1112_v11  ;;  %v5703_v11 = vpack.c.bf16 %v1450_v1, %v1446_v0  ;;  %v5736_v0 = vpack.c.bf16 %v1472_v53, %v1468_v48  ;;  %v1467_v1 = vld [vmem:[#allocation16 + $0x40] sm:$0xff]  ;;  %v5756_v48 = vpack.c.bf16 %v1479_v32, %v1475_v31  ;;  %v1501_v16 = vld [vmem:[#allocation16 + $0x150] sm:$0xff] }
 0x119   : > { %4080 = vmatpush1.bf16.msra.mxu1 %v5640_v12  ;;  %4050 = vmatprep.subr.bf16.mxu0 %v5642_v13  ;;  %v5760_v53 = vpack.c.bf16 %v1481_v35, %v1477_v33  ;;  %6580 = vst [vmem:[#allocation56_spill] sm:$0xff] %v5762_v55  ;;  %v1491_v33 = vld [vmem:[#allocation16 + $0x100] sm:$0xff]  ;;  %6585 = vst [vmem:[#allocation61_spill] sm:$0xff] %v5777_v44 }
 0x11a   : > { %4082 = vmatprep.subr.bf16.mxu1 %v5645_v17  ;;  %1277 = vmatprep.mubr.f32.mxu0 %v6389_v8  ;;  %6566 = vst [vmem:[#allocation42_spill] sm:$0xff] %v5703_v11  ;;  %6578 = vst [vmem:[#allocation54_spill] sm:$0xff] %v5756_v48  ;;  %v1495_v35 = vld [vmem:[#allocation16 + $0x120] sm:$0xff] }
 0x11b   : > { %1366 = vmatprep.mubr.f32.mxu1 %v6389_v8  ;;  %1278 = vmatmul.mubr.f32.gmra.mrb[20].mxu0 %v1113_v24  ;;  %6579 = vst [vmem:[#allocation55_spill] sm:$0xff] %v5760_v53 }
 0x11c   : > { %4052 = vmatpush1.bf16.msra.mxu0 %v5650_v23  ;;  %1367 = vmatmul.mubr.f32.gmra.mrb[20].mxu1 %v1113_v24  ;;  %v1451_v24 = vld [vmem:[#allocation13 + $0x1c0] sm:$0xff] }
 0x11d   : > { %4084 = vmatpush1.bf16.msra.mxu1 %v5655_v25  ;;  %4054 = vmatprep.subr.bf16.mxu0 %v5657_v26 }
 0x11e   : > { %4086 = vmatprep.subr.bf16.mxu1 %v5660_v30  ;;  %1283 = vmatprep.mubr.f32.mxu0 %v6389_v8 }
 0x11f   : > { %1372 = vmatprep.mubr.f32.mxu1 %v6389_v8  ;;  %1284 = vmatmul.mubr.f32.gmra.mrb[22].mxu0 %v1114_v37 }
 0x120   : > { %4056 = vmatpush1.bf16.msra.mxu0 %v5665_v36  ;;  %1373 = vmatmul.mubr.f32.gmra.mrb[22].mxu1 %v1114_v37  ;;  %v5718_v37 = vpack.c.bf16 %v1455_v27, %v1451_v24  ;;  %v5742_v24 = vpack.c.bf16 %v1471_v6, %v1467_v1  ;;  %v5746_v27 = vpack.c.bf16 %v1473_v14, %v1469_v7  ;;  %v1485_v1 = vld [vmem:[#allocation16 + $0xd0] sm:$0xff]  ;;  %v1492_v14 = vld [vmem:[#allocation16 + $0x108] sm:$0xff] }
 0x121   : > { %4088 = vmatpush1.bf16.msra.mxu1 %v5670_v38  ;;  %4058 = vmatprep.subr.bf16.mxu0 %v5672_v39  ;;  %v5765_v6 = vpack.c.bf16 %v1490_v47, %v1486_v45  ;;  %v1489_v7 = vld [vmem:[#allocation16 + $0xf0] sm:$0xff]  ;;  %v5774_v32 = vpack.c.bf16 %v1496_v15, %v1492_v14  ;;  %v1500_v47 = vld [vmem:[#allocation16 + $0x148] sm:$0xff]  ;;  %v1499_v14 = vld [vmem:[#allocation16 + $0x140] sm:$0xff] }
 0x122   : > { %4090 = vmatprep.subr.bf16.mxu1 %v5675_v43  ;;  %1664 = vmatprep.mubr.f32.mxu0 %v6389_v8  ;;  %6571 = vst [vmem:[#allocation47_spill] sm:$0xff] %v5718_v37  ;;  %6575 = vst [vmem:[#allocation51_spill] sm:$0xff] %v5746_v27  ;;  %v5772_v31 = vpack.c.bf16 %v1489_v7, %v1485_v1  ;;  %v1497_v45 = vld [vmem:[#allocation16 + $0x130] sm:$0xff]  ;;  %v1503_v15 = vld [vmem:[#allocation16 + $0x160] sm:$0xff] }
 0x123   : > { %1735 = vmatprep.mubr.f32.mxu1 %v6389_v8  ;;  %6581 = vst [vmem:[#allocation57_spill] sm:$0xff] %v5765_v6  ;;  %6584 = vst [vmem:[#allocation60_spill] sm:$0xff] %v5774_v32  ;;  %v5784_v1 = vpack.c.bf16 %v1497_v45, %v1493_v42  ;;  %v1507_v45 = vld [vmem:[#allocation16 + $0x180] sm:$0xff] }
 0x124   : > { %4060 = vmatpush1.bf16.msra.mxu0 %v5680_v49  ;;  %6583 = vst [vmem:[#allocation59_spill] sm:$0xff] %v5772_v31 }
 0x125   : > { %4092 = vmatpush1.bf16.msra.mxu1 %v5684_v51  ;;  %4062 = vmatprep.subr.bf16.mxu0 %v5686_v52  ;;  %6587 = vst [vmem:[#allocation63_spill] sm:$0xff] %v5784_v1 }
 0x126   : > { %4094 = vmatprep.subr.bf16.mxu1 %v5689_v57 }
 0x128   : > { %4064 = vmatpush1.bf16.msra.mxu0 %v5694_v2 }
 0x129   : > { %4096 = vmatpush1.bf16.msra.mxu1 %v5698_v4  ;;  %4066 = vmatprep.subr.bf16.mxu0 %v5700_v5 }
 0x12a   : > { %4098 = vmatprep.subr.bf16.mxu1 %v5703_v11 }
 0x12c   : > { %4068 = vmatpush1.bf16.msra.mxu0 %v5706_v20 }
 0x12d   : > { %4100 = vmatpush1.bf16.msra.mxu1 %v5710_v21  ;;  %4070 = vmatprep.subr.bf16.mxu0 %v5712_v22 }
 0x12e   : > { %4102 = vmatprep.subr.bf16.mxu1 %v5715_v29 }
 0x130   : > { %4072 = vmatpush1.bf16.msra.mxu0 %v5718_v37 }
 0x131   : > { %4104 = vmatpush1.bf16.msra.mxu1 %v5722_v40  ;;  %4106 = vmatprep.subr.bf16.mxu0 %v5724_v41 }
 0x132   : > { %4138 = vmatprep.subr.bf16.mxu1 %v5727_v46 }
 0x133   : > { %1665 = vmatmul.mubr.f32.vlgmr.msra.gmra.mrb[0].mxu0 %v1587_v58 }
 0x134   : > { %1736 = vmatmul.mubr.f32.vlgmr.msra.gmra.mrb[0].mxu1 %v1587_v58  ;;  %4108 = vmatpush1.bf16.msra.mxu0 %v5730_v59  ;;  %v1487_v58 = vld [vmem:[#allocation16 + $0xe0] sm:$0xff] }
 0x135   : > { %4140 = vmatpush1.bf16.msra.mxu1 %v5734_v60  ;;  %4110 = vmatprep.subr.bf16.mxu0 %v5736_v0  ;;  %v5768_v19 = vpack.c.bf16 %v1487_v58, %v1483_v56  ;;  %v1502_v56 = vld [vmem:[#allocation16 + $0x158] sm:$0xff] }
 0x136   : > { %4142 = vmatprep.subr.bf16.mxu1 %v5739_v9  ;;  %1816 = vmatprep.mubr.f32.mxu0 %v6389_v8  ;;  %v1506_v58 = vld [vmem:[#allocation16 + $0x178] sm:$0xff] }
 0x137   : > { %1887 = vmatprep.mubr.f32.mxu1 %v6389_v8  ;;  %6582 = vst [vmem:[#allocation58_spill] sm:$0xff] %v5768_v19  ;;  %v1504_v8 = vld [vmem:[#allocation16 + $0x168] sm:$0xff]  ;;  %v5789_v18 = vpack.c.bf16 %v1506_v58, %v1502_v56  ;;  %v1509_v56 = vld [vmem:[#allocation16 + $0x190] sm:$0xff] }
 0x138   : > { %4112 = vmatpush1.bf16.msra.mxu0 %v5742_v24  ;;  %v5786_v7 = vpack.c.bf16 %v1504_v8, %v1500_v47  ;;  %v1511_v47 = vld [vmem:[#allocation16 + $0x1a0] sm:$0xff] }
 0x139   : > { %4144 = vmatpush1.bf16.msra.mxu1 %v5746_v27  ;;  %4114 = vmatprep.subr.bf16.mxu0 %v5748_v28  ;;  %6589 = vst [vmem:[#allocation65_spill] sm:$0xff] %v5789_v18 }
 0x13a   : > { %4146 = vmatprep.subr.bf16.mxu1 %v5751_v34  ;;  %6588 = vst [vmem:[#allocation64_spill] sm:$0xff] %v5786_v7 }
 0x13c   : > { %4116 = vmatpush1.bf16.msra.mxu0 %v5756_v48  ;;  %v1544_v48 = vld [vmem:[#allocation19 + $0xa8] sm:$0xff] }
 0x13d   : > { %4148 = vmatpush1.bf16.msra.mxu1 %v5760_v53  ;;  %4118 = vmatprep.subr.bf16.mxu0 %v5762_v55  ;;  %v5780_v53 = vpack.c.bf16 %v1495_v35, %v1491_v33  ;;  %v1508_v55 = vld [vmem:[#allocation16 + $0x188] sm:$0xff]  ;;  %v1510_v33 = vld [vmem:[#allocation16 + $0x198] sm:$0xff] }
 0x13e   : > { %4150 = vmatprep.subr.bf16.mxu1 %v5765_v6  ;;  %v1505_v6 = vld [vmem:[#allocation16 + $0x170] sm:$0xff]  ;;  %v1514_v35 = vld [vmem:[#allocation16 + $0x1b8] sm:$0xff] }
 0x13f   : > { %6586 = vst [vmem:[#allocation62_spill] sm:$0xff] %v5780_v53  ;;  %v5796_v8 = vpack.c.bf16 %v1505_v6, %v1501_v16  ;;  %v5801_v58 = vpack.c.bf16 %v1514_v35, %v1510_v33  ;;  %v1519_v16 = vld [vmem:[#allocation16 + $0x1e0] sm:$0xff]  ;;  %v1517_v33 = vld [vmem:[#allocation16 + $0x1d0] sm:$0xff] }
 0x140   : > { %4120 = vmatpush1.bf16.msra.mxu0 %v5768_v19  ;;  %v1512_v19 = vld [vmem:[#allocation16 + $0x1a8] sm:$0xff] }
 0x141   : > { %4152 = vmatpush1.bf16.msra.mxu1 %v5772_v31  ;;  %4122 = vmatprep.subr.bf16.mxu0 %v5774_v32  ;;  %v5792_v31 = vpack.c.bf16 %v1503_v15, %v1499_v14  ;;  %6591 = vst [vmem:[#allocation67_spill] sm:$0xff] %v5796_v8  ;;  %v5798_v42 = vpack.c.bf16 %v1512_v19, %v1508_v55  ;;  %6593 = vst [vmem:[#allocation69_spill] sm:$0xff] %v5801_v58  ;;  %v1516_v32 = vld [vmem:[#allocation16 + $0x1c8] sm:$0xff]  ;;  %v1518_v14 = vld [vmem:[#allocation16 + $0x1d8] sm:$0xff] }
 0x142   : > { %4154 = vmatprep.subr.bf16.mxu1 %v5777_v44  ;;  %v1513_v44 = vld [vmem:[#allocation16 + $0x1b0] sm:$0xff]  ;;  %v1522_v15 = vld [vmem:[#allocation16 + $0x1f8] sm:$0xff]  ;;  %v1515_v19 = vld [vmem:[#allocation16 + $0x1c0] sm:$0xff] }
 0x143   : > { %6590 = vst [vmem:[#allocation66_spill] sm:$0xff] %v5792_v31  ;;  %6592 = vst [vmem:[#allocation68_spill] sm:$0xff] %v5798_v42  ;;  %v5808_v55 = vpack.c.bf16 %v1513_v44, %v1509_v56  ;;  %v5813_v35 = vpack.c.bf16 %v1522_v15, %v1518_v14  ;;  %v1523_v44 = vld [vmem:[#allocation19] sm:$0xff]  ;;  %v1525_v14 = vld [vmem:[#allocation19 + $0x10] sm:$0xff] }
 0x144   : > { %4124 = vmatpush1.bf16.msra.mxu0 %v5780_v53  ;;  %v1520_v53 = vld [vmem:[#allocation16 + $0x1e8] sm:$0xff]  ;;  %v1527_v56 = vld [vmem:[#allocation19 + $0x20] sm:$0xff] }
 0x145   : > { %4156 = vmatpush1.bf16.msra.mxu1 %v5784_v1  ;;  %4126 = vmatprep.subr.bf16.mxu0 %v5786_v7  ;;  %v5804_v1 = vpack.c.bf16 %v1511_v47, %v1507_v45  ;;  %6595 = vst [vmem:[#allocation71_spill] sm:$0xff] %v5808_v55  ;;  %v5810_v6 = vpack.c.bf16 %v1520_v53, %v1516_v32  ;;  %6597 = vst [vmem:[#allocation73_spill] sm:$0xff] %v5813_v35  ;;  %v1524_v7 = vld [vmem:[#allocation19 + $0x8] sm:$0xff]  ;;  %v1526_v45 = vld [vmem:[#allocation19 + $0x18] sm:$0xff] }
 0x146   : > { %4158 = vmatprep.subr.bf16.mxu1 %v5789_v18  ;;  %v1521_v18 = vld [vmem:[#allocation16 + $0x1f0] sm:$0xff]  ;;  %v1530_v47 = vld [vmem:[#allocation19 + $0x38] sm:$0xff] }
 0x147   : > { %6594 = vst [vmem:[#allocation70_spill] sm:$0xff] %v5804_v1  ;;  %6596 = vst [vmem:[#allocation72_spill] sm:$0xff] %v5810_v6  ;;  %v5820_v53 = vpack.c.bf16 %v1521_v18, %v1517_v33  ;;  %v5825_v15 = vpack.c.bf16 %v1530_v47, %v1526_v45  ;;  %v1531_v18 = vld [vmem:[#allocation19 + $0x40] sm:$0xff]  ;;  %v1533_v45 = vld [vmem:[#allocation19 + $0x50] sm:$0xff] }
 0x148   : > { %4128 = vmatpush1.bf16.msra.mxu0 %v5792_v31  ;;  %v1528_v31 = vld [vmem:[#allocation19 + $0x28] sm:$0xff]  ;;  %v1535_v33 = vld [vmem:[#allocation19 + $0x60] sm:$0xff] }
 0x149   : > { %4160 = vmatpush1.bf16.msra.mxu1 %v5796_v8  ;;  %4130 = vmatprep.subr.bf16.mxu0 %v5798_v42  ;;  %v5816_v8 = vpack.c.bf16 %v1519_v16, %v1515_v19  ;;  %6599 = vst [vmem:[#allocation75_spill] sm:$0xff] %v5820_v53  ;;  %v5822_v32 = vpack.c.bf16 %v1528_v31, %v1524_v7  ;;  %6601 = vst [vmem:[#allocation77_spill] sm:$0xff] %v5825_v15  ;;  %v1532_v42 = vld [vmem:[#allocation19 + $0x48] sm:$0xff]  ;;  %v1534_v19 = vld [vmem:[#allocation19 + $0x58] sm:$0xff] }
 0x14a   : > { %4162 = vmatprep.subr.bf16.mxu1 %v5801_v58  ;;  %v1529_v58 = vld [vmem:[#allocation19 + $0x30] sm:$0xff]  ;;  %v1538_v16 = vld [vmem:[#allocation19 + $0x78] sm:$0xff] }
 0x14b   : > { %6598 = vst [vmem:[#allocation74_spill] sm:$0xff] %v5816_v8  ;;  %6600 = vst [vmem:[#allocation76_spill] sm:$0xff] %v5822_v32  ;;  %v5832_v31 = vpack.c.bf16 %v1529_v58, %v1525_v14  ;;  %v5837_v47 = vpack.c.bf16 %v1538_v16, %v1534_v19  ;;  %v5840_v58 = vpack.c.bf16 %v1535_v33, %v1531_v18  ;;  %v1539_v14 = vld [vmem:[#allocation19 + $0x80] sm:$0xff]  ;;  %v1541_v16 = vld [vmem:[#allocation19 + $0x90] sm:$0xff]  ;;  %v6610_v18 = vmov 0.0  }
 0x14c   : > { %4132 = vmatpush1.bf16.msra.mxu0 %v5804_v1  ;;  %v1536_v1 = vld [vmem:[#allocation19 + $0x68] sm:$0xff]  ;;  %v1543_v19 = vld [vmem:[#allocation19 + $0xa0] sm:$0xff]  ;;  %v1550_v33 = vld [vmem:[#allocation19 + $0xd8] sm:$0xff] }
 0x14d   : > { %4164 = vmatpush1.bf16.msra.mxu1 %v5808_v55  ;;  %4134 = vmatprep.subr.bf16.mxu0 %v5810_v6  ;;  %v1589_v55 = vld [vmem:[#allocation7] sm:$0xff]  ;;  %v5828_v6 = vpack.c.bf16 %v1527_v56, %v1523_v44  ;;  %6603 = vst [vmem:[#allocation79_spill] sm:$0xff] %v5832_v31  ;;  %v5834_v7 = vpack.c.bf16 %v1536_v1, %v1532_v42  ;;  %6605 = vst [vmem:[#allocation81_spill] sm:$0xff] %v5837_v47  ;;  %v1542_v44 = vld [vmem:[#allocation19 + $0x98] sm:$0xff] }
 0x14e   : > { %4166 = vmatprep.subr.bf16.mxu1 %v5813_v35  ;;  %v1537_v35 = vld [vmem:[#allocation19 + $0x70] sm:$0xff]  ;;  %v1546_v56 = vld [vmem:[#allocation19 + $0xb8] sm:$0xff]  ;;  %6606 = vst [vmem:[#allocation82_spill] sm:$0xff] %v5840_v58 }
 0x14f   : > { %6602 = vst [vmem:[#allocation78_spill] sm:$0xff] %v5828_v6  ;;  %6604 = vst [vmem:[#allocation80_spill] sm:$0xff] %v5834_v7  ;;  %v5844_v1 = vpack.c.bf16 %v1537_v35, %v1533_v45  ;;  %v1547_v45 = vld [vmem:[#allocation19 + $0xc0] sm:$0xff] }
 0x150   : > { %4136 = vmatpush1.bf16.msra.mxu0 %v5816_v8  ;;  %v1540_v8 = vld [vmem:[#allocation19 + $0x88] sm:$0xff] }
 0x151   : > { %4168 = vmatpush1.bf16.msra.mxu1 %v5820_v53  ;;  %4170 = vmatprep.subr.bf16.mxu0 %v5822_v32  ;;  %6607 = vst [vmem:[#allocation83_spill] sm:$0xff] %v5844_v1  ;;  %v5846_v42 = vpack.c.bf16 %v1544_v48, %v1540_v8  ;;  %v1548_v32 = vld [vmem:[#allocation19 + $0xc8] sm:$0xff]  ;;  %v5854_v48 = vpack.c.bf16 %v1543_v19, %v1539_v14  ;;  %v1558_v14 = vld [vmem:[#allocation19 + $0x118] sm:$0xff] }
 0x152   : > { %4202 = vmatprep.subr.bf16.mxu1 %v5825_v15  ;;  %v5849_v15 = vpack.c.bf16 %v1546_v56, %v1542_v44  ;;  %v1551_v44 = vld [vmem:[#allocation19 + $0xe0] sm:$0xff]  ;;  %v1549_v56 = vld [vmem:[#allocation19 + $0xd0] sm:$0xff]  ;;  %v1556_v53 = vld [vmem:[#allocation19 + $0x108] sm:$0xff] }
 0x153   : > { %1817 = vmatmul.mubr.f32.vlgmr.msra.gmra.mrb[8].mxu0 %v1589_v55  ;;  %6608 = vst [vmem:[#allocation84_spill] sm:$0xff] %v5846_v42  ;;  %6611 = vst [vmem:[#allocation86_spill] sm:$0xff] %v5854_v48  ;;  %v1562_v19 = vld [vmem:[#allocation19 + $0x138] sm:$0xff] }
 0x154   : > { %1888 = vmatmul.mubr.f32.vlgmr.msra.gmra.mrb[8].mxu1 %v1589_v55  ;;  %4172 = vmatpush1.bf16.msra.mxu0 %v5828_v6  ;;  %6609 = vst [vmem:[#allocation85_spill] sm:$0xff] %v5849_v15  ;;  %v1545_v55 = vld [vmem:[#allocation19 + $0xb0] sm:$0xff]  ;;  %v1552_v6 = vld [vmem:[#allocation19 + $0xe8] sm:$0xff] }
 0x155   : > { %4204 = vmatpush1.bf16.msra.mxu1 %v5832_v31  ;;  %4174 = vmatprep.subr.bf16.mxu0 %v5834_v7  ;;  %v1554_v31 = vld [vmem:[#allocation19 + $0xf8] sm:$0xff]  ;;  %v5858_v8 = vpack.c.bf16 %v1545_v55, %v1541_v16  ;;  %v5860_v35 = vpack.c.bf16 %v1552_v6, %v1548_v32  ;;  %v1553_v7 = vld [vmem:[#allocation19 + $0xf0] sm:$0xff]  ;;  %v1555_v16 = vld [vmem:[#allocation19 + $0x100] sm:$0xff] }
 0x156   : > { %4206 = vmatprep.subr.bf16.mxu1 %v5837_v47  ;;  %1968 = vmatprep.mubr.f32.mxu0 %v6610_v18  ;;  %v5863_v47 = vpack.c.bf16 %v1554_v31, %v1550_v33  ;;  %v5870_v6 = vpack.c.bf16 %v1553_v7, %v1549_v56  ;;  %v1559_v31 = vld [vmem:[#allocation19 + $0x120] sm:$0xff]  ;;  %v1557_v55 = vld [vmem:[#allocation19 + $0x110] sm:$0xff]  ;;  %v5875_v33 = vpack.c.bf16 %v1562_v19, %v1558_v14 }
 0x157   : > { %2039 = vmatprep.mubr.f32.mxu1 %v6610_v18  ;;  %6612 = vst [vmem:[#allocation87_spill] sm:$0xff] %v5858_v8  ;;  %6613 = vst [vmem:[#allocation88_spill] sm:$0xff] %v5860_v35  ;;  %v1567_v56 = vld [vmem:[#allocation19 + $0x160] sm:$0xff]  ;;  %v1565_v14 = vld [vmem:[#allocation19 + $0x150] sm:$0xff] }
 0x158   : > { %4176 = vmatpush1.bf16.msra.mxu0 %v5840_v58  ;;  %6614 = vst [vmem:[#allocation89_spill] sm:$0xff] %v5863_v47  ;;  %v1560_v58 = vld [vmem:[#allocation19 + $0x128] sm:$0xff]  ;;  %6616 = vst [vmem:[#allocation91_spill] sm:$0xff] %v5870_v6 }
 0x159   : > { %4208 = vmatpush1.bf16.msra.mxu1 %v5844_v1  ;;  %4178 = vmatprep.subr.bf16.mxu0 %v5846_v42  ;;  %v5866_v1 = vpack.c.bf16 %v1551_v44, %v1547_v45  ;;  %v5872_v32 = vpack.c.bf16 %v1560_v58, %v1556_v53  ;;  %6618 = vst [vmem:[#allocation93_spill] sm:$0xff] %v5875_v33  ;;  %v1564_v42 = vld [vmem:[#allocation19 + $0x148] sm:$0xff]  ;;  %v1566_v45 = vld [vmem:[#allocation19 + $0x158] sm:$0xff]  ;;  %v1563_v58 = vld [vmem:[#allocation19 + $0x140] sm:$0xff] }
 0x15a   : > { %4210 = vmatprep.subr.bf16.mxu1 %v5849_v15  ;;  %v1561_v15 = vld [vmem:[#allocation19 + $0x130] sm:$0xff]  ;;  %v1570_v44 = vld [vmem:[#allocation19 + $0x178] sm:$0xff] }
 0x15b   : > { %6615 = vst [vmem:[#allocation90_spill] sm:$0xff] %v5866_v1  ;;  %6617 = vst [vmem:[#allocation92_spill] sm:$0xff] %v5872_v32  ;;  %v5882_v53 = vpack.c.bf16 %v1561_v15, %v1557_v55  ;;  %v5887_v19 = vpack.c.bf16 %v1570_v44, %v1566_v45  ;;  %v1575_v55 = vld [vmem:[#allocation19 + $0x1a0] sm:$0xff]  ;;  %v1573_v45 = vld [vmem:[#allocation19 + $0x190] sm:$0xff] }
 0x15c   : > { %4180 = vmatpush1.bf16.msra.mxu0 %v5854_v48  ;;  %v1568_v48 = vld [vmem:[#allocation19 + $0x168] sm:$0xff] }
 0x15d   : > { %4212 = vmatpush1.bf16.msra.mxu1 %v5858_v8  ;;  %4182 = vmatprep.subr.bf16.mxu0 %v5860_v35  ;;  %v5878_v8 = vpack.c.bf16 %v1559_v31, %v1555_v16  ;;  %6620 = vst [vmem:[#allocation95_spill] sm:$0xff] %v5882_v53  ;;  %v5884_v7 = vpack.c.bf16 %v1568_v48, %v1564_v42  ;;  %6621 = vst [vmem:[#allocation96_spill] sm:$0xff] %v5887_v19  ;;  %v1572_v35 = vld [vmem:[#allocation19 + $0x188] sm:$0xff]  ;;  %v1574_v16 = vld [vmem:[#allocation19 + $0x198] sm:$0xff] }
 0x15e   : > { %4214 = vmatprep.subr.bf16.mxu1 %v5863_v47  ;;  %v1569_v47 = vld [vmem:[#allocation19 + $0x170] sm:$0xff]  ;;  %v1578_v31 = vld [vmem:[#allocation19 + $0x1b8] sm:$0xff]  ;;  %v1571_v48 = vld [vmem:[#allocation19 + $0x180] sm:$0xff] }
 0x15f   : > { %6619 = vst [vmem:[#allocation94_spill] sm:$0xff] %v5878_v8  ;;  %v5894_v15 = vpack.c.bf16 %v1569_v47, %v1565_v14  ;;  %v5899_v44 = vpack.c.bf16 %v1578_v31, %v1574_v16  ;;  %v1583_v14 = vld [vmem:[#allocation19 + $0x1e0] sm:$0xff]  ;;  %v1581_v31 = vld [vmem:[#allocation19 + $0x1d0] sm:$0xff] }
 0x160   : > { %4184 = vmatpush1.bf16.msra.mxu0 %v5866_v1  ;;  %v1576_v1 = vld [vmem:[#allocation19 + $0x1a8] sm:$0xff] }
 0x161   : > { %4216 = vmatpush1.bf16.msra.mxu1 %v5870_v6  ;;  %4186 = vmatprep.subr.bf16.mxu0 %v5872_v32  ;;  %v5890_v6 = vpack.c.bf16 %v1567_v56, %v1563_v58  ;;  %v5896_v42 = vpack.c.bf16 %v1576_v1, %v1572_v35  ;;  %v1580_v32 = vld [vmem:[#allocation19 + $0x1c8] sm:$0xff]  ;;  %v1582_v58 = vld [vmem:[#allocation19 + $0x1d8] sm:$0xff]  ;;  %v1579_v35 = vld [vmem:[#allocation19 + $0x1c0] sm:$0xff] }
 0x162   : > { %4218 = vmatprep.subr.bf16.mxu1 %v5875_v33  ;;  %v1577_v33 = vld [vmem:[#allocation19 + $0x1b0] sm:$0xff]  ;;  %v1586_v56 = vld [vmem:[#allocation19 + $0x1f8] sm:$0xff] }
 0x163   : > { %v5906_v47 = vpack.c.bf16 %v1577_v33, %v1573_v45  ;;  %v5911_v16 = vpack.c.bf16 %v1586_v56, %v1582_v58  ;;  %v611_v45 = vld [vmem:[%s6378_s5] sm:$0xf] }
 0x164   : > { %4188 = vmatpush1.bf16.msra.mxu0 %v5878_v8  ;;  %v1584_v8 = vld [vmem:[#allocation19 + $0x1e8] sm:$0xff] }
 0x165   : > { %4220 = vmatpush1.bf16.msra.mxu1 %v5882_v53  ;;  %4190 = vmatprep.subr.bf16.mxu0 %v5884_v7  ;;  %v5902_v53 = vpack.c.bf16 %v1575_v55, %v1571_v48  ;;  %v5908_v1 = vpack.c.bf16 %v1584_v8, %v1580_v32  ;;  %v5914_v48 = vpack.c.bf16 %v1583_v14, %v1579_v35  ;;  %v1591_v8 = vld [vmem:[#allocation9] sm:$0xff]  ;;  %v613_v32 = vlaneseq }
 0x166   : > { %4222 = vmatprep.subr.bf16.mxu1 %v5887_v19  ;;  %v1585_v19 = vld [vmem:[#allocation19 + $0x1f0] sm:$0xff] }
 0x167   : > { %v5918_v33 = vpack.c.bf16 %v1585_v19, %v1581_v31  ;;  %v614_v19 = vshrl.u32 %v613_v32, 7 }
 0x168   : > { %4192 = vmatpush1.bf16.msra.mxu0 %v5890_v6 }
 0x169   : > { %4224 = vmatpush1.bf16.msra.mxu1 %v5894_v15  ;;  %4194 = vmatprep.subr.bf16.mxu0 %v5896_v42  ;;  %v5959_v55 = vsub.s32 0, %v614_v19  ;;  %v5964_v58 = vsub.s32 1, %v614_v19  ;;  %v5969_v35 = vsub.s32 2, %v614_v19 }
 0x16a   : > { %4226 = vmatprep.subr.bf16.mxu1 %v5899_v44 }
 0x16b   : > { %v5967_v56 = vrot.slane %v611_v45, %v5959_v55  ;;  %v5972_v14 = vrot.slane %v611_v45, %v5964_v58  ;;  %v5976_v32 = vrot.slane %v611_v45, %v5969_v35 }
 0x16c   : > { %4196 = vmatpush1.bf16.msra.mxu0 %v5902_v53 }
 0x16d   : > { %4228 = vmatpush1.bf16.msra.mxu1 %v5906_v47  ;;  %4198 = vmatprep.subr.bf16.mxu0 %v5908_v1  ;;  %6622 = vst [vmem:[#allocation97_spill] sm:$0xff] %v5967_v56  ;;  %6623 = vst [vmem:[#allocation98_spill] sm:$0xff] %v5972_v14 }
 0x16e   : > { %4230 = vmatprep.subr.bf16.mxu1 %v5911_v16 }
 0x170   : > { %4200 = vmatpush1.bf16.msra.mxu0 %v5914_v48 }
 0x171   : > { %4232 = vmatpush1.bf16.msra.mxu1 %v5918_v33  ;;  %4234 = vmatprep.subr.bf16.mxu0 %v5619_v50 }
 0x172   : > { %4266 = vmatprep.subr.bf16.mxu1 %v5621_v54 }
 0x173   : > { %1969 = vmatmul.mubr.f32.vlgmr.msra.gmra.mrb[16].mxu0 %v1591_v8 }
 0x174   : > { %2040 = vmatmul.mubr.f32.vlgmr.msra.gmra.mrb[16].mxu1 %v1591_v8  ;;  %4236 = vmatpush1.bf16.msra.mxu0 %v5624_v61 }
 0x175   : > { %4268 = vmatpush1.bf16.msra.mxu1 %v5627_v62  ;;  %4238 = vmatprep.subr.bf16.mxu0 %v5629_v63 }
 0x176   : > { %4270 = vmatprep.subr.bf16.mxu1 %v5632_v3  ;;  %2175 = vmatprep.mubr.f32.mxu0 %v6610_v18 }
 0x177   : > { %2246 = vmatprep.mubr.f32.mxu1 %v6610_v18 }
 0x178   : > { %4240 = vmatpush1.bf16.msra.mxu0 %v5635_v10 }
 0x179   : > { %4272 = vmatpush1.bf16.msra.mxu1 %v5640_v12  ;;  %4242 = vmatprep.subr.bf16.mxu0 %v5642_v13 }
 0x17a   : > { %4274 = vmatprep.subr.bf16.mxu1 %v5645_v17 }
 0x17c   : > { %4244 = vmatpush1.bf16.msra.mxu0 %v5650_v23 }
 0x17d   : > { %4276 = vmatpush1.bf16.msra.mxu1 %v5655_v25  ;;  %4246 = vmatprep.subr.bf16.mxu0 %v5657_v26 }
 0x17e   : > { %4278 = vmatprep.subr.bf16.mxu1 %v5660_v30 }
 0x180   : > { %4248 = vmatpush1.bf16.msra.mxu0 %v5665_v36 }
 0x181   : > { %4280 = vmatpush1.bf16.msra.mxu1 %v5670_v38  ;;  %4250 = vmatprep.subr.bf16.mxu0 %v5672_v39 }
 0x182   : > { %4282 = vmatprep.subr.bf16.mxu1 %v5675_v43 }
 0x184   : > { %4252 = vmatpush1.bf16.msra.mxu0 %v5680_v49 }
 0x185   : > { %4284 = vmatpush1.bf16.msra.mxu1 %v5684_v51  ;;  %4254 = vmatprep.subr.bf16.mxu0 %v5686_v52 }
 0x186   : > { %4286 = vmatprep.subr.bf16.mxu1 %v5689_v57 }
 0x188   : > { %4256 = vmatpush1.bf16.msra.mxu0 %v5694_v2 }
 0x189   : > { %4288 = vmatpush1.bf16.msra.mxu1 %v5698_v4  ;;  %4258 = vmatprep.subr.bf16.mxu0 %v5700_v5 }
 0x18a   : > { %4290 = vmatprep.subr.bf16.mxu1 %v5703_v11 }
 0x18c   : > { %4260 = vmatpush1.bf16.msra.mxu0 %v5706_v20 }
 0x18d   : > { %4292 = vmatpush1.bf16.msra.mxu1 %v5710_v21  ;;  %4262 = vmatprep.subr.bf16.mxu0 %v5712_v22 }
 0x18e   : > { %4294 = vmatprep.subr.bf16.mxu1 %v5715_v29 }
 0x190   : > { %4264 = vmatpush1.bf16.msra.mxu0 %v5718_v37 }
 0x191   : > { %4296 = vmatpush1.bf16.msra.mxu1 %v5722_v40  ;;  %4298 = vmatprep.subr.bf16.mxu0 %v5724_v41  ;;  %v5978_v40 = vsub.s32 3, %v614_v19 }
 0x192   : > { %4330 = vmatprep.subr.bf16.mxu1 %v5727_v46 }
 0x193   : > { %v5983_v11 = vrot.slane %v611_v45, %v5978_v40 }
 0x195   : > { %6624 = vst [vmem:[#allocation99_spill] sm:$0xff] %v5983_v11 }
 0x206   : > { %v1666_v31 = vpop.f32.mrb[0].mxu0 }
 0x207   : > { %v4809_v8 = vadd.f32 %v1666_v31, %v5967_v56  ;;  %v1737_v46 = vpop.f32.mrb[0].mxu1  ;;  %v1668_v41 = vpop.f32.mrb[1].mxu0 }
 0x208   : > { %v4810_v37 = vadd.f32 %v1668_v41, %v5972_v14  ;;  %v1739_v29 = vpop.f32.mrb[1].mxu1  ;;  %v4817_v20 = vadd.f32 %v1737_v46, %v5976_v32  ;;  %v1588_v14 = vld [vmem:[#allocation6] sm:$0xff] }
 0x209   : > { %v2050_v22 = vmul.f32 0.5, %v4809_v8  ;;  %v4818_v31 = vadd.f32 %v1739_v29, %v5983_v11 }
 0x20a   : > { %v2054_v21 = vmul.f32 0.5, %v4810_v37 }
 0x20b   : > { %4978 = vtanh.f32 %v2050_v22  ;;  %v2059_v56 = vmul.f32 0.5, %v4818_v31 }
 0x20c   : > { %4980 = vtanh.f32 %v2054_v21 }
 0x20d   : > { %4982 = vtanh.f32 %v4817_v20  ;;  %v895_v20 = vld [vmem:[%s6381_s8] sm:$0xf] }
 0x20e   : > { %4984 = vtanh.f32 %v2059_v56  ;;  %v5993_v29 = vrot.slane %v895_v20, %v5959_v55  ;;  %v6005_v11 = vrot.slane %v895_v20, %v5978_v40 }
 0x215   : > { %v4979_v5 = vpop.eup %4978 }
 0x216   : > { %v4981_v4 = vpop.eup %4980  ;;  %v2052_v19 = vmul.f32 0.5, %v4979_v5  ;;  %v5996_v5 = vrot.slane %v895_v20, %v5964_v58 }
 0x217   : > { %v2056_v2 = vmul.f32 0.5, %v4981_v4  ;;  %v4983_v8 = vpop.eup %4982 }
 0x218   : > { %v2053_v41 = vadd.f32 0.5, %v2052_v19  ;;  %v4985_v21 = vpop.eup %4984 }
 0x219   : > { %v2057_v37 = vadd.f32 0.5, %v2056_v2  ;;  %v2061_v4 = vmul.f32 0.5, %v4985_v21 }
 0x21a   : > { %v2064_v22 = vmul.f32 %v4983_v8, %v2053_v41 }
 0x21b   : > { %v2063_v57 = vmul.f32 %v2057_v37, %v1588_v14  ;;  %v2062_v31 = vadd.f32 0.5, %v2061_v4 }
 0x21d   : > { %v5986_v46 = vadd.f32 %v2064_v22, %v2063_v57  ;;  %v6000_v57 = vrot.slane %v895_v20, %v5969_v35 }
 0x21f   : > { %6625 = vst [vmem:[#allocation100_spill] sm:$0xff] %v5986_v46  ;;  %4986 = vtanh.f32 %v5986_v46 }
 0x226   : > { %v1818_v45 = vpop.f32.mrb[8].mxu0 }
 0x227   : > { %v4825_v2 = vadd.f32 %v1818_v45, %v5993_v29  ;;  %v1889_v56 = vpop.f32.mrb[8].mxu1  ;;  %v1820_v14 = vpop.f32.mrb[9].mxu0  ;;  %v6626_v45 = vld [vmem:[#allocation54_spill] sm:$0xff] }
 0x228   : > { %v4826_v19 = vadd.f32 %v1820_v14, %v5996_v5  ;;  %v1891_v41 = vpop.f32.mrb[9].mxu1  ;;  %v4833_v21 = vadd.f32 %v1889_v56, %v6000_v57 }
 0x229   : > { %v4987_v8 = vpop.eup %4986  ;;  %v2068_v37 = vmul.f32 0.5, %v4825_v2  ;;  %v4834_v4 = vadd.f32 %v1891_v41, %v6005_v11  ;;  %v6627_v2 = vld [vmem:[#allocation55_spill] sm:$0xff] }
 0x22a   : > { %v2067_v22 = vmul.f32 %v4987_v8, %v2062_v31  ;;  %v2072_v46 = vmul.f32 0.5, %v4826_v19  ;;  %v6628_v31 = vld [vmem:[#allocation56_spill] sm:$0xff]  ;;  %v6629_v19 = vld [vmem:[#allocation57_spill] sm:$0xff] }
 0x22b   : > { %4988 = vtanh.f32 %v2068_v37  ;;  %v1590_v37 = vld [vmem:[#allocation8] sm:$0xff] }
 0x22c   : > { %4990 = vtanh.f32 %v2072_v46  ;;  %2176 = vmatmul.mubr.f32.vlgmr.msra.gmra.mrb[2].mxu0 %v2067_v22  ;;  %2247 = vmatmul.mubr.f32.vlgmr.msra.gmra.mrb[2].mxu1 %v2067_v22  ;;  %v2077_v46 = vmul.f32 0.5, %v4834_v4  ;;  %v6631_v4 = vld [vmem:[#allocation59_spill] sm:$0xff] }
 0x22d   : > { %4300 = vmatpush1.bf16.msra.mxu0 %v5730_v59  ;;  %4332 = vmatpush1.bf16.msra.mxu1 %v5734_v60  ;;  %4992 = vtanh.f32 %v4833_v21 }
 0x22e   : > { %4302 = vmatprep.subr.bf16.mxu0 %v5736_v0  ;;  %4334 = vmatprep.subr.bf16.mxu1 %v5739_v9  ;;  %4994 = vtanh.f32 %v2077_v46  ;;  %v6637_v46 = vld [vmem:[#allocation64_spill] sm:$0xff] }
 0x22f   : > { %2327 = vmatprep.mubr.f32.mxu0 %v6610_v18  ;;  %2398 = vmatprep.mubr.f32.mxu1 %v6610_v18 }
 0x231   : > { %4304 = vmatpush1.bf16.msra.mxu0 %v5742_v24  ;;  %4336 = vmatpush1.bf16.msra.mxu1 %v5746_v27 }
 0x232   : > { %4306 = vmatprep.subr.bf16.mxu0 %v5748_v28  ;;  %4338 = vmatprep.subr.bf16.mxu1 %v5751_v34  ;;  %v6630_v28 = vld [vmem:[#allocation58_spill] sm:$0xff] }
 0x235   : > { %v4989_v20 = vpop.eup %4988  ;;  %4308 = vmatpush1.bf16.msra.mxu0 %v6626_v45  ;;  %4340 = vmatpush1.bf16.msra.mxu1 %v6627_v2  ;;  %v6632_v45 = vld [vmem:[#allocation60_spill] sm:$0xff]  ;;  %v6633_v2 = vld [vmem:[#allocation61_spill] sm:$0xff] }
 0x236   : > { %v4991_v56 = vpop.eup %4990  ;;  %v2070_v14 = vmul.f32 0.5, %v4989_v20  ;;  %4310 = vmatprep.subr.bf16.mxu0 %v6628_v31  ;;  %4342 = vmatprep.subr.bf16.mxu1 %v6629_v19  ;;  %v6635_v31 = vld [vmem:[#allocation62_spill] sm:$0xff] }
 0x237   : > { %v2074_v41 = vmul.f32 0.5, %v4991_v56  ;;  %v4993_v22 = vpop.eup %4992  ;;  %v6636_v56 = vld [vmem:[#allocation63_spill] sm:$0xff] }
 0x238   : > { %v2071_v8 = vadd.f32 0.5, %v2070_v14  ;;  %v6638_v14 = vld [vmem:[#allocation65_spill] sm:$0xff] }
 0x239   : > { %v2075_v21 = vadd.f32 0.5, %v2074_v41  ;;  %4312 = vmatpush1.bf16.msra.mxu0 %v6630_v28  ;;  %4344 = vmatpush1.bf16.msra.mxu1 %v6631_v4  ;;  %v1179_v41 = vld [vmem:[%s6384_s11] sm:$0xf]  ;;  %v6648_v28 = vld [vmem:[#allocation74_spill] sm:$0xff] }
 0x23a   : > { %v2082_v34 = vmul.f32 %v4993_v22, %v2071_v8  ;;  %4314 = vmatprep.subr.bf16.mxu0 %v6632_v45  ;;  %4346 = vmatprep.subr.bf16.mxu1 %v6633_v2  ;;  %v4995_v8 = vpop.eup %4994  ;;  %v6639_v22 = vld [vmem:[#allocation66_spill] sm:$0xff]  ;;  %v6645_v2 = vld [vmem:[#allocation72_spill] sm:$0xff] }
 0x23b   : > { %v2081_v20 = vmul.f32 %v2075_v21, %v1590_v37  ;;  %v6640_v37 = vld [vmem:[#allocation67_spill] sm:$0xff]  ;;  %v6642_v21 = vld [vmem:[#allocation69_spill] sm:$0xff] }
 0x23d   : > { %v6026_v27 = vadd.f32 %v2082_v34, %v2081_v20  ;;  %4316 = vmatpush1.bf16.msra.mxu0 %v6635_v31  ;;  %4348 = vmatpush1.bf16.msra.mxu1 %v6636_v56  ;;  %v6641_v34 = vld [vmem:[#allocation68_spill] sm:$0xff]  ;;  %v6041_v20 = vrot.slane %v1179_v41, %v5959_v55  ;;  %v6643_v56 = vld [vmem:[#allocation70_spill] sm:$0xff]  ;;  %v6644_v31 = vld [vmem:[#allocation71_spill] sm:$0xff] }
 0x23e   : > { %4318 = vmatprep.subr.bf16.mxu0 %v6637_v46  ;;  %4350 = vmatprep.subr.bf16.mxu1 %v6638_v14  ;;  %v2079_v46 = vmul.f32 0.5, %v4995_v8  ;;  %v6044_v14 = vrot.slane %v1179_v41, %v5964_v58 }
 0x23f   : > { %6634 = vst [vmem:[#allocation101_spill] sm:$0xff] %v6026_v27  ;;  %4996 = vtanh.f32 %v6026_v27 }
 0x240   : > { %v2080_v8 = vadd.f32 0.5, %v2079_v46  ;;  %v6061_v46 = vrot.slane %v1179_v41, %v5978_v40  ;;  %v6657_v40 = vld [vmem:[#allocation82_spill] sm:$0xff] }
 0x241   : > { %4320 = vmatpush1.bf16.msra.mxu0 %v6639_v22  ;;  %4352 = vmatpush1.bf16.msra.mxu1 %v6640_v37  ;;  %v6646_v22 = vld [vmem:[#allocation73_spill] sm:$0xff] }
 0x242   : > { %4322 = vmatprep.subr.bf16.mxu0 %v6641_v34  ;;  %4354 = vmatprep.subr.bf16.mxu1 %v6642_v21  ;;  %v6052_v21 = vrot.slane %v1179_v41, %v5969_v35 }
 0x244   : > { %6647 = vst [vmem:[#allocation102_spill] sm:$0xff] %v6052_v21 }
 0x245   : > { %4324 = vmatpush1.bf16.msra.mxu0 %v6643_v56  ;;  %4356 = vmatpush1.bf16.msra.mxu1 %v6644_v31  ;;  %v6649_v31 = vld [vmem:[#allocation75_spill] sm:$0xff] }
 0x246   : > { %v1970_v27 = vpop.f32.mrb[16].mxu0  ;;  %4326 = vmatprep.subr.bf16.mxu0 %v6645_v2  ;;  %4358 = vmatprep.subr.bf16.mxu1 %v6646_v22  ;;  %v6650_v22 = vld [vmem:[#allocation76_spill] sm:$0xff] }
 0x247   : > { %v4841_v34 = vadd.f32 %v1970_v27, %v6041_v20  ;;  %v2041_v55 = vpop.f32.mrb[16].mxu1  ;;  %v1972_v37 = vpop.f32.mrb[17].mxu0  ;;  %v6651_v27 = vld [vmem:[#allocation77_spill] sm:$0xff]  ;;  %6652 = vst [vmem:[#allocation76_spill] sm:$0xff] %v6061_v46 }
 0x248   : > { %v4842_v58 = vadd.f32 %v1972_v37, %v6044_v14  ;;  %v2043_v45 = vpop.f32.mrb[17].mxu1  ;;  %v4849_v35 = vadd.f32 %v2041_v55, %v6052_v21  ;;  %v6653_v37 = vld [vmem:[#allocation78_spill] sm:$0xff] }
 0x249   : > { %v4997_v4 = vpop.eup %4996  ;;  %v2086_v56 = vmul.f32 0.5, %v4841_v34  ;;  %4328 = vmatpush1.bf16.msra.mxu0 %v6648_v28  ;;  %4360 = vmatpush1.bf16.msra.mxu1 %v6649_v31  ;;  %v6654_v34 = vld [vmem:[#allocation79_spill] sm:$0xff]  ;;  %v6655_v31 = vld [vmem:[#allocation80_spill] sm:$0xff]  ;;  %v6665_v21 = vld [vmem:[#allocation90_spill] sm:$0xff] }
 0x24a   : > { %v2085_v2 = vmul.f32 %v4997_v4, %v2080_v8  ;;  %v2090_v19 = vmul.f32 0.5, %v4842_v58  ;;  %4362 = vmatprep.subr.bf16.mxu0 %v6650_v22  ;;  %4394 = vmatprep.subr.bf16.mxu1 %v6651_v27  ;;  %v6656_v4 = vld [vmem:[#allocation81_spill] sm:$0xff]  ;;  %v4850_v8 = vadd.f32 %v2043_v45, %v6061_v46  ;;  %v6661_v58 = vld [vmem:[#allocation86_spill] sm:$0xff]  ;;  %v6663_v46 = vld [vmem:[#allocation88_spill] sm:$0xff] }
 0x24b   : > { %4998 = vtanh.f32 %v2086_v56  ;;  %v6660_v56 = vld [vmem:[#allocation85_spill] sm:$0xff] }
 0x24c   : > { %5000 = vtanh.f32 %v2090_v19  ;;  %2328 = vmatmul.mubr.f32.vlgmr.msra.gmra.mrb[10].mxu0 %v2085_v2  ;;  %2399 = vmatmul.mubr.f32.vlgmr.msra.gmra.mrb[10].mxu1 %v2085_v2  ;;  %v6658_v19 = vld [vmem:[#allocation83_spill] sm:$0xff]  ;;  %v6659_v2 = vld [vmem:[#allocation84_spill] sm:$0xff]  ;;  %v2095_v41 = vmul.f32 0.5, %v4850_v8 }
 0x24d   : > { %4364 = vmatpush1.bf16.msra.mxu0 %v6653_v37  ;;  %4396 = vmatpush1.bf16.msra.mxu1 %v6654_v34  ;;  %5002 = vtanh.f32 %v4849_v35  ;;  %v6666_v8 = vld [vmem:[#allocation91_spill] sm:$0xff] }
 0x24e   : > { %4366 = vmatprep.subr.bf16.mxu0 %v6655_v31  ;;  %4398 = vmatprep.subr.bf16.mxu1 %v6656_v4  ;;  %v6662_v4 = vld [vmem:[#allocation87_spill] sm:$0xff]  ;;  %v6664_v31 = vld [vmem:[#allocation89_spill] sm:$0xff]  ;;  %5004 = vtanh.f32 %v2095_v41  ;;  %v6671_v41 = vld [vmem:[#allocation96_spill] sm:$0xff] }
 0x24f   : > { %2479 = vmatprep.mubr.f32.mxu0 %v6610_v18  ;;  %2550 = vmatprep.mubr.f32.mxu1 %v6610_v18 }
 0x251   : > { %4368 = vmatpush1.bf16.msra.mxu0 %v6657_v40  ;;  %4400 = vmatpush1.bf16.msra.mxu1 %v6658_v19  ;;  %v1592_v19 = vld [vmem:[#allocation10] sm:$0xff] }
 0x252   : > { %4370 = vmatprep.subr.bf16.mxu0 %v6659_v2  ;;  %4402 = vmatprep.subr.bf16.mxu1 %v6660_v56 }
 0x255   : > { %v4999_v55 = vpop.eup %4998  ;;  %4372 = vmatpush1.bf16.msra.mxu0 %v6661_v58  ;;  %4404 = vmatpush1.bf16.msra.mxu1 %v6662_v4  ;;  %v6667_v58 = vld [vmem:[#allocation92_spill] sm:$0xff]  ;;  %v6668_v4 = vld [vmem:[#allocation93_spill] sm:$0xff] }
 0x256   : > { %v5001_v35 = vpop.eup %5000  ;;  %v2088_v45 = vmul.f32 0.5, %v4999_v55  ;;  %4374 = vmatprep.subr.bf16.mxu0 %v6663_v46  ;;  %4406 = vmatprep.subr.bf16.mxu1 %v6664_v31  ;;  %v6669_v46 = vld [vmem:[#allocation94_spill] sm:$0xff] }
 0x257   : > { %v2092_v34 = vmul.f32 0.5, %v5001_v35  ;;  %v5003_v37 = vpop.eup %5002  ;;  %v6670_v35 = vld [vmem:[#allocation95_spill] sm:$0xff] }
 0x258   : > { %v2089_v40 = vadd.f32 0.5, %v2088_v45  ;;  %v6673_v45 = vld [vmem:[#allocation39_spill] sm:$0xff] }
 0x259   : > { %v2093_v2 = vadd.f32 0.5, %v2092_v34  ;;  %4376 = vmatpush1.bf16.msra.mxu0 %v6665_v21  ;;  %4408 = vmatpush1.bf16.msra.mxu1 %v6666_v8  ;;  %v5005_v34 = vpop.eup %5004 }
 0x25a   : > { %v2100_v56 = vmul.f32 %v5003_v37, %v2089_v40  ;;  %4378 = vmatprep.subr.bf16.mxu0 %v6667_v58  ;;  %4410 = vmatprep.subr.bf16.mxu1 %v6668_v4  ;;  %v2097_v37 = vmul.f32 0.5, %v5005_v34  ;;  %v6675_v34 = vld [vmem:[#allocation41_spill] sm:$0xff] }
 0x25b   : > { %v2099_v55 = vmul.f32 %v2093_v2, %v1592_v19 }
 0x25c   : > { %v2098_v40 = vadd.f32 0.5, %v2097_v37  ;;  %v6676_v37 = vld [vmem:[#allocation42_spill] sm:$0xff] }
 0x25d   : > { %v6082_v27 = vadd.f32 %v2100_v56, %v2099_v55  ;;  %4380 = vmatpush1.bf16.msra.mxu0 %v6669_v46  ;;  %4412 = vmatpush1.bf16.msra.mxu1 %v6670_v35  ;;  %v6672_v56 = vld [vmem:[#allocation38_spill] sm:$0xff]  ;;  %v6674_v55 = vld [vmem:[#allocation40_spill] sm:$0xff] }
 0x25e   : > { %4382 = vmatprep.subr.bf16.mxu0 %v5884_v7  ;;  %4414 = vmatprep.subr.bf16.mxu1 %v6671_v41 }
 0x25f   : > { %5006 = vtanh.f32 %v6082_v27 }
 0x261   : > { %4384 = vmatpush1.bf16.msra.mxu0 %v5890_v6  ;;  %4416 = vmatpush1.bf16.msra.mxu1 %v5894_v15 }
 0x262   : > { %4386 = vmatprep.subr.bf16.mxu0 %v5896_v42  ;;  %4418 = vmatprep.subr.bf16.mxu1 %v5899_v44 }
 0x265   : > { %4388 = vmatpush1.bf16.msra.mxu0 %v5902_v53  ;;  %4420 = vmatpush1.bf16.msra.mxu1 %v5906_v47 }
 0x266   : > { %4390 = vmatprep.subr.bf16.mxu0 %v5908_v1  ;;  %4422 = vmatprep.subr.bf16.mxu1 %v5911_v16 }
 0x269   : > { %v5007_v19 = vpop.eup %5006  ;;  %4392 = vmatpush1.bf16.msra.mxu0 %v5914_v48  ;;  %4424 = vmatpush1.bf16.msra.mxu1 %v5918_v33 }
 0x26a   : > { %v2103_v2 = vmul.f32 %v5007_v19, %v2098_v40  ;;  %4426 = vmatprep.subr.bf16.mxu0 %v5619_v50  ;;  %4458 = vmatprep.subr.bf16.mxu1 %v5621_v54  ;;  %v6677_v40 = vld [vmem:[#allocation43_spill] sm:$0xff]  ;;  %v6678_v19 = vld [vmem:[#allocation44_spill] sm:$0xff] }
 0x26c   : > { %2480 = vmatmul.mubr.f32.vlgmr.msra.gmra.mrb[18].mxu0 %v2103_v2  ;;  %2551 = vmatmul.mubr.f32.vlgmr.msra.gmra.mrb[18].mxu1 %v2103_v2  ;;  %v6679_v2 = vld [vmem:[#allocation45_spill] sm:$0xff] }
 0x26d   : > { %4428 = vmatpush1.bf16.msra.mxu0 %v5624_v61  ;;  %4460 = vmatpush1.bf16.msra.mxu1 %v5627_v62 }
 0x26e   : > { %4430 = vmatprep.subr.bf16.mxu0 %v5629_v63  ;;  %4462 = vmatprep.subr.bf16.mxu1 %v5632_v3 }
 0x26f   : > { %2686 = vmatprep.mubr.f32.mxu0 %v6610_v18  ;;  %2757 = vmatprep.mubr.f32.mxu1 %v6610_v18 }
 0x271   : > { %4432 = vmatpush1.bf16.msra.mxu0 %v5635_v10  ;;  %4464 = vmatpush1.bf16.msra.mxu1 %v5640_v12 }
 0x272   : > { %4434 = vmatprep.subr.bf16.mxu0 %v5642_v13  ;;  %4466 = vmatprep.subr.bf16.mxu1 %v5645_v17 }
 0x275   : > { %4436 = vmatpush1.bf16.msra.mxu0 %v5650_v23  ;;  %4468 = vmatpush1.bf16.msra.mxu1 %v5655_v25 }
 0x276   : > { %4438 = vmatprep.subr.bf16.mxu0 %v5657_v26  ;;  %4470 = vmatprep.subr.bf16.mxu1 %v5660_v30 }
 0x279   : > { %4440 = vmatpush1.bf16.msra.mxu0 %v5665_v36  ;;  %4472 = vmatpush1.bf16.msra.mxu1 %v5670_v38  ;;  %v6686_v38 = vld [vmem:[#allocation98_spill] sm:$0xff] }
 0x27a   : > { %4442 = vmatprep.subr.bf16.mxu0 %v5672_v39  ;;  %4474 = vmatprep.subr.bf16.mxu1 %v5675_v43  ;;  %v6685_v43 = vld [vmem:[#allocation97_spill] sm:$0xff] }
 0x27d   : > { %4444 = vmatpush1.bf16.msra.mxu0 %v5680_v49  ;;  %4476 = vmatpush1.bf16.msra.mxu1 %v5684_v51  ;;  %v6680_v49 = vld [vmem:[#allocation46_spill] sm:$0xff]  ;;  %v6681_v51 = vld [vmem:[#allocation47_spill] sm:$0xff] }
 0x27e   : > { %4446 = vmatprep.subr.bf16.mxu0 %v5686_v52  ;;  %4478 = vmatprep.subr.bf16.mxu1 %v6672_v56  ;;  %v6682_v52 = vld [vmem:[#allocation48_spill] sm:$0xff]  ;;  %v6683_v56 = vld [vmem:[#allocation49_spill] sm:$0xff] }
 0x281   : > { %4448 = vmatpush1.bf16.msra.mxu0 %v6673_v45  ;;  %4480 = vmatpush1.bf16.msra.mxu1 %v6674_v55  ;;  %v6684_v45 = vld [vmem:[#allocation50_spill] sm:$0xff] }
 0x282   : > { %4450 = vmatprep.subr.bf16.mxu0 %v6675_v34  ;;  %4482 = vmatprep.subr.bf16.mxu1 %v6676_v37 }
 0x285   : > { %4452 = vmatpush1.bf16.msra.mxu0 %v6677_v40  ;;  %4484 = vmatpush1.bf16.msra.mxu1 %v6678_v19 }
 0x286   : > { %4454 = vmatprep.subr.bf16.mxu0 %v6679_v2  ;;  %4486 = vmatprep.subr.bf16.mxu1 %v6680_v49 }
 0x289   : > { %4456 = vmatpush1.bf16.msra.mxu0 %v6681_v51  ;;  %4488 = vmatpush1.bf16.msra.mxu1 %v6682_v52  ;;  %v6687_v52 = vld [vmem:[#allocation99_spill] sm:$0xff] }
 0x28a   : > { %4490 = vmatprep.subr.bf16.mxu0 %v6683_v56  ;;  %4522 = vmatprep.subr.bf16.mxu1 %v6684_v45 }
 0x2ff   : > { %v2177_v55 = vpop.f32.mrb[2].mxu0  ;;  %v2248_v34 = vpop.f32.mrb[2].mxu1 }
 0x300   : > { %v4811_v37 = vadd.f32 %v2177_v55, %v6685_v43  ;;  %v2179_v39 = vpop.f32.mrb[3].mxu0  ;;  %v2250_v40 = vpop.f32.mrb[3].mxu1  ;;  %v4819_v49 = vadd.f32 %v2248_v34, %v5976_v32 }
 0x301   : > { %v4812_v19 = vadd.f32 %v2179_v39, %v6686_v38  ;;  %v4820_v51 = vadd.f32 %v2250_v40, %v6687_v52  ;;  %v6688_v39 = vld [vmem:[#allocation100_spill] sm:$0xff] }
 0x302   : > { %v2561_v36 = vmul.f32 0.5, %v4811_v37 }
 0x303   : > { %v2565_v2 = vmul.f32 0.5, %v4812_v19  ;;  %v2570_v56 = vmul.f32 0.5, %v4820_v51 }
 0x304   : > { %5008 = vtanh.f32 %v2561_v36 }
 0x305   : > { %5010 = vtanh.f32 %v2565_v2 }
 0x306   : > { %5012 = vtanh.f32 %v4819_v49 }
 0x307   : > { %5014 = vtanh.f32 %v2570_v56 }
 0x30e   : > { %v5009_v30 = vpop.eup %5008 }
 0x30f   : > { %v5011_v45 = vpop.eup %5010  ;;  %v2563_v26 = vmul.f32 0.5, %v5009_v30 }
 0x310   : > { %v2567_v25 = vmul.f32 0.5, %v5011_v45  ;;  %v5013_v43 = vpop.eup %5012 }
 0x311   : > { %v2564_v55 = vadd.f32 0.5, %v2563_v26  ;;  %v5015_v36 = vpop.eup %5014 }
 0x312   : > { %v2568_v23 = vadd.f32 0.5, %v2567_v25  ;;  %v2572_v49 = vmul.f32 0.5, %v5015_v36  ;;  %v6691_v36 = vld [vmem:[#allocation53_spill] sm:$0xff] }
 0x313   : > { %v2575_v17 = vmul.f32 %v5013_v43, %v2564_v55 }
 0x314   : > { %v2574_v37 = vmul.f32 %v2568_v23, %v6688_v39  ;;  %v2573_v45 = vadd.f32 0.5, %v2572_v49  ;;  %v6689_v39 = vld [vmem:[#allocation51_spill] sm:$0xff] }
 0x316   : > { %v6140_v19 = vadd.f32 %v2575_v17, %v2574_v37  ;;  %v6690_v37 = vld [vmem:[#allocation52_spill] sm:$0xff] }
 0x318   : > { %5016 = vtanh.f32 %v6140_v19 }
 0x31f   : > { %v2329_v34 = vpop.f32.mrb[10].mxu0  ;;  %v2400_v40 = vpop.f32.mrb[10].mxu1 }
 0x320   : > { %v4827_v51 = vadd.f32 %v2329_v34, %v5993_v29  ;;  %v2331_v2 = vpop.f32.mrb[11].mxu0  ;;  %v2402_v30 = vpop.f32.mrb[11].mxu1  ;;  %v4835_v17 = vadd.f32 %v2400_v40, %v6000_v57  ;;  %v6692_v40 = vld [vmem:[#allocation54_spill] sm:$0xff] }
 0x321   : > { %v4828_v26 = vadd.f32 %v2331_v2, %v5996_v5  ;;  %v4836_v23 = vadd.f32 %v2402_v30, %v6005_v11 }
 0x322   : > { %v5017_v56 = vpop.eup %5016  ;;  %v2579_v25 = vmul.f32 0.5, %v4827_v51  ;;  %v6693_v51 = vld [vmem:[#allocation55_spill] sm:$0xff] }
 0x323   : > { %v2578_v43 = vmul.f32 %v5017_v56, %v2573_v45  ;;  %v2583_v55 = vmul.f32 0.5, %v4828_v26  ;;  %v2588_v49 = vmul.f32 0.5, %v4836_v23  ;;  %v6694_v45 = vld [vmem:[#allocation56_spill] sm:$0xff]  ;;  %v6695_v26 = vld [vmem:[#allocation57_spill] sm:$0xff] }
 0x324   : > { %5018 = vtanh.f32 %v2579_v25 }
 0x325   : > { %5020 = vtanh.f32 %v2583_v55  ;;  %2687 = vmatmul.mubr.f32.vlgmr.msra.gmra.mrb[4].mxu0 %v2578_v43  ;;  %2758 = vmatmul.mubr.f32.vlgmr.msra.gmra.mrb[4].mxu1 %v2578_v43 }
 0x326   : > { %4492 = vmatpush1.bf16.msra.mxu0 %v5730_v59  ;;  %4524 = vmatpush1.bf16.msra.mxu1 %v5734_v60  ;;  %5022 = vtanh.f32 %v4835_v17  ;;  %v6696_v17 = vld [vmem:[#allocation58_spill] sm:$0xff] }
 0x327   : > { %4494 = vmatprep.subr.bf16.mxu0 %v5736_v0  ;;  %4526 = vmatprep.subr.bf16.mxu1 %v5739_v9  ;;  %5024 = vtanh.f32 %v2588_v49  ;;  %v6704_v49 = vld [vmem:[#allocation64_spill] sm:$0xff] }
 0x328   : > { %2838 = vmatprep.mubr.f32.mxu0 %v6610_v18  ;;  %2909 = vmatprep.mubr.f32.mxu1 %v6610_v18 }
 0x32a   : > { %4496 = vmatpush1.bf16.msra.mxu0 %v5742_v24  ;;  %4528 = vmatpush1.bf16.msra.mxu1 %v6689_v39 }
 0x32b   : > { %4498 = vmatprep.subr.bf16.mxu0 %v6690_v37  ;;  %4530 = vmatprep.subr.bf16.mxu1 %v6691_v36  ;;  %v6697_v36 = vld [vmem:[#allocation59_spill] sm:$0xff]  ;;  %v6698_v37 = vld [vmem:[#allocation60_spill] sm:$0xff] }
 0x32e   : > { %v5019_v34 = vpop.eup %5018  ;;  %4500 = vmatpush1.bf16.msra.mxu0 %v6692_v40  ;;  %4532 = vmatpush1.bf16.msra.mxu1 %v6693_v51  ;;  %v6699_v40 = vld [vmem:[#allocation61_spill] sm:$0xff] }
 0x32f   : > { %v5021_v2 = vpop.eup %5020  ;;  %v2581_v30 = vmul.f32 0.5, %v5019_v34  ;;  %4502 = vmatprep.subr.bf16.mxu0 %v6694_v45  ;;  %4534 = vmatprep.subr.bf16.mxu1 %v6695_v26  ;;  %v6700_v51 = vld [vmem:[#allocation101_spill] sm:$0xff]  ;;  %v6702_v45 = vld [vmem:[#allocation62_spill] sm:$0xff] }
 0x330   : > { %v2585_v56 = vmul.f32 0.5, %v5021_v2  ;;  %v5023_v43 = vpop.eup %5022  ;;  %v6703_v2 = vld [vmem:[#allocation63_spill] sm:$0xff] }
 0x331   : > { %v2582_v25 = vadd.f32 0.5, %v2581_v30  ;;  %v6705_v30 = vld [vmem:[#allocation65_spill] sm:$0xff] }
 0x332   : > { %v2586_v55 = vadd.f32 0.5, %v2585_v56  ;;  %4504 = vmatpush1.bf16.msra.mxu0 %v6696_v17  ;;  %4536 = vmatpush1.bf16.msra.mxu1 %v6697_v36  ;;  %v5025_v56 = vpop.eup %5024 }
 0x333   : > { %v2593_v23 = vmul.f32 %v5023_v43, %v2582_v25  ;;  %4506 = vmatprep.subr.bf16.mxu0 %v6698_v37  ;;  %4538 = vmatprep.subr.bf16.mxu1 %v6699_v40  ;;  %v6706_v25 = vld [vmem:[#allocation66_spill] sm:$0xff]  ;;  %v6707_v43 = vld [vmem:[#allocation67_spill] sm:$0xff]  ;;  %v6708_v40 = vld [vmem:[#allocation68_spill] sm:$0xff] }
 0x334   : > { %v2592_v34 = vmul.f32 %v2586_v55, %v6700_v51  ;;  %v6709_v51 = vld [vmem:[#allocation69_spill] sm:$0xff]  ;;  %v2590_v55 = vmul.f32 0.5, %v5025_v56  ;;  %v6714_v56 = vld [vmem:[#allocation75_spill] sm:$0xff] }
 0x336   : > { %v6166_v39 = vadd.f32 %v2593_v23, %v2592_v34  ;;  %4508 = vmatpush1.bf16.msra.mxu0 %v6702_v45  ;;  %4540 = vmatpush1.bf16.msra.mxu1 %v6703_v2  ;;  %v6710_v23 = vld [vmem:[#allocation70_spill] sm:$0xff]  ;;  %v6711_v34 = vld [vmem:[#allocation71_spill] sm:$0xff]  ;;  %v6712_v45 = vld [vmem:[#allocation72_spill] sm:$0xff] }
 0x337   : > { %4510 = vmatprep.subr.bf16.mxu0 %v6704_v49  ;;  %4542 = vmatprep.subr.bf16.mxu1 %v6705_v30  ;;  %v6713_v30 = vld [vmem:[#allocation73_spill] sm:$0xff] }
 0x338   : > { %6701 = vst [vmem:[#allocation89_spill] sm:$0xff] %v6166_v39  ;;  %5026 = vtanh.f32 %v6166_v39 }
 0x33a   : > { %4512 = vmatpush1.bf16.msra.mxu0 %v6706_v25  ;;  %4544 = vmatpush1.bf16.msra.mxu1 %v6707_v43  ;;  %v2591_v43 = vadd.f32 0.5, %v2590_v55  ;;  %v6717_v55 = vld [vmem:[#allocation78_spill] sm:$0xff] }
 0x33b   : > { %4514 = vmatprep.subr.bf16.mxu0 %v6708_v40  ;;  %4546 = vmatprep.subr.bf16.mxu1 %v6709_v51 }
 0x33e   : > { %4516 = vmatpush1.bf16.msra.mxu0 %v6710_v23  ;;  %4548 = vmatpush1.bf16.msra.mxu1 %v6711_v34 }
 0x33f   : > { %v2481_v2 = vpop.f32.mrb[18].mxu0  ;;  %v2552_v49 = vpop.f32.mrb[18].mxu1  ;;  %4518 = vmatprep.subr.bf16.mxu0 %v6712_v45  ;;  %4550 = vmatprep.subr.bf16.mxu1 %v6713_v30  ;;  %v6715_v45 = vld [vmem:[#allocation77_spill] sm:$0xff]  ;;  %v6716_v30 = vld [vmem:[#allocation102_spill] sm:$0xff] }
 0x340   : > { %v4843_v39 = vadd.f32 %v2481_v2, %v6041_v20  ;;  %v2483_v25 = vpop.f32.mrb[19].mxu0  ;;  %v2554_v37 = vpop.f32.mrb[19].mxu1  ;;  %v4851_v2 = vadd.f32 %v2552_v49, %v6716_v30  ;;  %v6723_v49 = vld [vmem:[#allocation83_spill] sm:$0xff] }
 0x341   : > { %v4844_v40 = vadd.f32 %v2483_v25, %v6044_v14  ;;  %v6718_v25 = vld [vmem:[#allocation79_spill] sm:$0xff] }
 0x342   : > { %v5027_v36 = vpop.eup %5026  ;;  %v2597_v51 = vmul.f32 0.5, %v4843_v39  ;;  %4520 = vmatpush1.bf16.msra.mxu0 %v6648_v28  ;;  %4552 = vmatpush1.bf16.msra.mxu1 %v6714_v56  ;;  %v6719_v39 = vld [vmem:[#allocation80_spill] sm:$0xff]  ;;  %v6720_v28 = vld [vmem:[#allocation81_spill] sm:$0xff] }
 0x343   : > { %v2596_v34 = vmul.f32 %v5027_v36, %v2591_v43  ;;  %v2601_v23 = vmul.f32 0.5, %v4844_v40  ;;  %4554 = vmatprep.subr.bf16.mxu0 %v6650_v22  ;;  %4586 = vmatprep.subr.bf16.mxu1 %v6715_v45  ;;  %v6721_v36 = vld [vmem:[#allocation76_spill] sm:$0xff]  ;;  %v6722_v43 = vld [vmem:[#allocation82_spill] sm:$0xff] }
 0x344   : > { %5028 = vtanh.f32 %v2597_v51  ;;  %v4852_v40 = vadd.f32 %v2554_v37, %v6721_v36  ;;  %v6724_v51 = vld [vmem:[#allocation84_spill] sm:$0xff] }
 0x345   : > { %5030 = vtanh.f32 %v2601_v23  ;;  %2839 = vmatmul.mubr.f32.vlgmr.msra.gmra.mrb[12].mxu0 %v2596_v34  ;;  %2910 = vmatmul.mubr.f32.vlgmr.msra.gmra.mrb[12].mxu1 %v2596_v34  ;;  %v6725_v23 = vld [vmem:[#allocation85_spill] sm:$0xff]  ;;  %v6728_v36 = vld [vmem:[#allocation88_spill] sm:$0xff] }
 0x346   : > { %4556 = vmatpush1.bf16.msra.mxu0 %v6717_v55  ;;  %4588 = vmatpush1.bf16.msra.mxu1 %v6718_v25  ;;  %5032 = vtanh.f32 %v4851_v2  ;;  %v2606_v34 = vmul.f32 0.5, %v4852_v40 }
 0x347   : > { %4558 = vmatprep.subr.bf16.mxu0 %v6719_v39  ;;  %4590 = vmatprep.subr.bf16.mxu1 %v6720_v28  ;;  %v6726_v39 = vld [vmem:[#allocation86_spill] sm:$0xff]  ;;  %v6727_v28 = vld [vmem:[#allocation87_spill] sm:$0xff] }
 0x348   : > { %2990 = vmatprep.mubr.f32.mxu0 %v6610_v18  ;;  %3061 = vmatprep.mubr.f32.mxu1 %v6610_v18  ;;  %5034 = vtanh.f32 %v2606_v34  ;;  %v6735_v34 = vld [vmem:[#allocation32_spill] sm:$0xff] }
 0x34a   : > { %4560 = vmatpush1.bf16.msra.mxu0 %v6722_v43  ;;  %4592 = vmatpush1.bf16.msra.mxu1 %v6723_v49 }
 0x34b   : > { %4562 = vmatprep.subr.bf16.mxu0 %v6724_v51  ;;  %4594 = vmatprep.subr.bf16.mxu1 %v6725_v23 }
 0x34e   : > { %v5029_v25 = vpop.eup %5028  ;;  %4564 = vmatpush1.bf16.msra.mxu0 %v6726_v39  ;;  %4596 = vmatpush1.bf16.msra.mxu1 %v6727_v28 }
 0x34f   : > { %v5031_v2 = vpop.eup %5030  ;;  %v2599_v37 = vmul.f32 0.5, %v5029_v25  ;;  %4566 = vmatprep.subr.bf16.mxu0 %v6728_v36  ;;  %4598 = vmatprep.subr.bf16.mxu1 %v6664_v31 }
 0x350   : > { %v2603_v55 = vmul.f32 0.5, %v5031_v2  ;;  %v5033_v49 = vpop.eup %5032  ;;  %v6736_v2 = vld [vmem:[#allocation33_spill] sm:$0xff] }
 0x351   : > { %v2600_v43 = vadd.f32 0.5, %v2599_v37  ;;  %v6740_v37 = vld [vmem:[#allocation37_spill] sm:$0xff] }
 0x352   : > { %v2604_v30 = vadd.f32 0.5, %v2603_v55  ;;  %4568 = vmatpush1.bf16.msra.mxu0 %v6665_v21  ;;  %4600 = vmatpush1.bf16.msra.mxu1 %v6666_v8  ;;  %v5035_v55 = vpop.eup %5034 }
 0x353   : > { %v2611_v40 = vmul.f32 %v5033_v49, %v2600_v43  ;;  %4570 = vmatprep.subr.bf16.mxu0 %v6667_v58  ;;  %4602 = vmatprep.subr.bf16.mxu1 %v6668_v4 }
 0x354   : > { %v2610_v25 = vmul.f32 %v2604_v30, %v6082_v27  ;;  %v2608_v27 = vmul.f32 0.5, %v5035_v55  ;;  %v6743_v55 = vld [vmem:[#allocation40_spill] sm:$0xff] }
 0x356   : > { %v6208_v28 = vadd.f32 %v2611_v40, %v2610_v25  ;;  %4572 = vmatpush1.bf16.msra.mxu0 %v6669_v46  ;;  %4604 = vmatpush1.bf16.msra.mxu1 %v6670_v35  ;;  %v2609_v30 = vadd.f32 0.5, %v2608_v27  ;;  %v6741_v40 = vld [vmem:[#allocation38_spill] sm:$0xff]  ;;  %v6742_v25 = vld [vmem:[#allocation39_spill] sm:$0xff]  ;;  %v6744_v27 = vld [vmem:[#allocation41_spill] sm:$0xff] }
 0x357   : > { %4574 = vmatprep.subr.bf16.mxu0 %v5884_v7  ;;  %4606 = vmatprep.subr.bf16.mxu1 %v6671_v41 }
 0x358   : > { %5036 = vtanh.f32 %v6208_v28 }
 0x35a   : > { %4576 = vmatpush1.bf16.msra.mxu0 %v5890_v6  ;;  %4608 = vmatpush1.bf16.msra.mxu1 %v5894_v15 }
 0x35b   : > { %4578 = vmatprep.subr.bf16.mxu0 %v5896_v42  ;;  %4610 = vmatprep.subr.bf16.mxu1 %v5899_v44 }
 0x35e   : > { %4580 = vmatpush1.bf16.msra.mxu0 %v5902_v53  ;;  %4612 = vmatpush1.bf16.msra.mxu1 %v5906_v47 }
 0x35f   : > { %4582 = vmatprep.subr.bf16.mxu0 %v5908_v1  ;;  %4614 = vmatprep.subr.bf16.mxu1 %v5911_v16 }
 0x362   : > { %v5037_v43 = vpop.eup %5036  ;;  %4584 = vmatpush1.bf16.msra.mxu0 %v5914_v48  ;;  %4616 = vmatpush1.bf16.msra.mxu1 %v5918_v33 }
 0x363   : > { %v2614_v49 = vmul.f32 %v5037_v43, %v2609_v30  ;;  %4618 = vmatprep.subr.bf16.mxu0 %v5619_v50  ;;  %4650 = vmatprep.subr.bf16.mxu1 %v5621_v54  ;;  %v6729_v50 = vld [vmem:[#allocation26_spill] sm:$0xff]  ;;  %v6730_v54 = vld [vmem:[#allocation27_spill] sm:$0xff] }
 0x364   : > { %v6745_v30 = vld [vmem:[#allocation42_spill] sm:$0xff]  ;;  %v6746_v43 = vld [vmem:[#allocation43_spill] sm:$0xff] }
 0x365   : > { %2991 = vmatmul.mubr.f32.vlgmr.msra.gmra.mrb[20].mxu0 %v2614_v49  ;;  %3062 = vmatmul.mubr.f32.vlgmr.msra.gmra.mrb[20].mxu1 %v2614_v49  ;;  %v6747_v49 = vld [vmem:[#allocation44_spill] sm:$0xff] }
 0x366   : > { %4620 = vmatpush1.bf16.msra.mxu0 %v5624_v61  ;;  %4652 = vmatpush1.bf16.msra.mxu1 %v5627_v62  ;;  %v6731_v61 = vld [vmem:[#allocation28_spill] sm:$0xff]  ;;  %v6732_v62 = vld [vmem:[#allocation29_spill] sm:$0xff] }
 0x367   : > { %4622 = vmatprep.subr.bf16.mxu0 %v5629_v63  ;;  %4654 = vmatprep.subr.bf16.mxu1 %v5632_v3  ;;  %v6733_v63 = vld [vmem:[#allocation30_spill] sm:$0xff]  ;;  %v6734_v3 = vld [vmem:[#allocation31_spill] sm:$0xff] }
 0x368   : > { %3197 = vmatprep.mubr.f32.mxu0 %v6610_v18  ;;  %3268 = vmatprep.mubr.f32.mxu1 %v6610_v18 }
 0x36a   : > { %4624 = vmatpush1.bf16.msra.mxu0 %v5635_v10  ;;  %4656 = vmatpush1.bf16.msra.mxu1 %v5640_v12  ;;  %v6737_v10 = vld [vmem:[#allocation34_spill] sm:$0xff]  ;;  %v6738_v12 = vld [vmem:[#allocation35_spill] sm:$0xff] }
 0x36b   : > { %4626 = vmatprep.subr.bf16.mxu0 %v5642_v13  ;;  %4658 = vmatprep.subr.bf16.mxu1 %v6729_v50  ;;  %v6739_v13 = vld [vmem:[#allocation36_spill] sm:$0xff]  ;;  %v6748_v50 = vld [vmem:[#allocation45_spill] sm:$0xff] }
 0x36e   : > { %4628 = vmatpush1.bf16.msra.mxu0 %v6730_v54  ;;  %4660 = vmatpush1.bf16.msra.mxu1 %v6731_v61  ;;  %v6749_v54 = vld [vmem:[#allocation46_spill] sm:$0xff]  ;;  %v6750_v61 = vld [vmem:[#allocation47_spill] sm:$0xff] }
 0x36f   : > { %4630 = vmatprep.subr.bf16.mxu0 %v6732_v62  ;;  %4662 = vmatprep.subr.bf16.mxu1 %v6733_v63  ;;  %v6751_v62 = vld [vmem:[#allocation48_spill] sm:$0xff]  ;;  %v6752_v63 = vld [vmem:[#allocation49_spill] sm:$0xff] }
 0x372   : > { %4632 = vmatpush1.bf16.msra.mxu0 %v6734_v3  ;;  %4664 = vmatpush1.bf16.msra.mxu1 %v6735_v34  ;;  %v6753_v3 = vld [vmem:[#allocation50_spill] sm:$0xff] }
 0x373   : > { %4634 = vmatprep.subr.bf16.mxu0 %v6736_v2  ;;  %4666 = vmatprep.subr.bf16.mxu1 %v6737_v10  ;;  %v6754_v10 = vld [vmem:[#allocation97_spill] sm:$0xff] }
 0x376   : > { %4636 = vmatpush1.bf16.msra.mxu0 %v6738_v12  ;;  %4668 = vmatpush1.bf16.msra.mxu1 %v6739_v13 }
 0x377   : > { %4638 = vmatprep.subr.bf16.mxu0 %v6740_v37  ;;  %4670 = vmatprep.subr.bf16.mxu1 %v6741_v40 }
 0x37a   : > { %4640 = vmatpush1.bf16.msra.mxu0 %v6742_v25  ;;  %4672 = vmatpush1.bf16.msra.mxu1 %v6743_v55 }
 0x37b   : > { %4642 = vmatprep.subr.bf16.mxu0 %v6744_v27  ;;  %4674 = vmatprep.subr.bf16.mxu1 %v6745_v30 }
 0x37e   : > { %4644 = vmatpush1.bf16.msra.mxu0 %v6746_v43  ;;  %4676 = vmatpush1.bf16.msra.mxu1 %v6747_v49 }
 0x37f   : > { %4646 = vmatprep.subr.bf16.mxu0 %v6748_v50  ;;  %4678 = vmatprep.subr.bf16.mxu1 %v6749_v54 }
 0x382   : > { %4648 = vmatpush1.bf16.msra.mxu0 %v6750_v61  ;;  %4680 = vmatpush1.bf16.msra.mxu1 %v6751_v62 }
 0x383   : > { %4682 = vmatprep.subr.bf16.mxu0 %v6752_v63  ;;  %4714 = vmatprep.subr.bf16.mxu1 %v6753_v3 }
 0x3f8   : > { %v2688_v34 = vpop.f32.mrb[4].mxu0  ;;  %v2759_v2 = vpop.f32.mrb[4].mxu1 }
 0x3f9   : > { %v4813_v12 = vadd.f32 %v2688_v34, %v6754_v10  ;;  %v2690_v13 = vpop.f32.mrb[5].mxu0  ;;  %v2761_v37 = vpop.f32.mrb[5].mxu1  ;;  %v4821_v27 = vadd.f32 %v2759_v2, %v5976_v32 }
 0x3fa   : > { %v4814_v40 = vadd.f32 %v2690_v13, %v6686_v38  ;;  %v4822_v30 = vadd.f32 %v2761_v37, %v6687_v52 }
 0x3fb   : > { %v3072_v25 = vmul.f32 0.5, %v4813_v12 }
 0x3fc   : > { %v3076_v55 = vmul.f32 0.5, %v4814_v40  ;;  %v3081_v43 = vmul.f32 0.5, %v4822_v30 }
 0x3fd   : > { %5038 = vtanh.f32 %v3072_v25 }
 0x3fe   : > { %5040 = vtanh.f32 %v3076_v55 }
 0x3ff   : > { %5042 = vtanh.f32 %v4821_v27 }
 0x400   : > { %5044 = vtanh.f32 %v3081_v43 }
 0x407   : > { %v5039_v49 = vpop.eup %5038 }
 0x408   : > { %v5041_v50 = vpop.eup %5040  ;;  %v3074_v54 = vmul.f32 0.5, %v5039_v49 }
 0x409   : > { %v3078_v61 = vmul.f32 0.5, %v5041_v50  ;;  %v5043_v63 = vpop.eup %5042 }
 0x40a   : > { %v3075_v62 = vadd.f32 0.5, %v3074_v54  ;;  %v5045_v2 = vpop.eup %5044 }
 0x40b   : > { %v3079_v3 = vadd.f32 0.5, %v3078_v61  ;;  %v3083_v40 = vmul.f32 0.5, %v5045_v2 }
 0x40c   : > { %v3086_v34 = vmul.f32 %v5043_v63, %v3075_v62 }
 0x40d   : > { %v3085_v12 = vmul.f32 %v3079_v3, %v6140_v19  ;;  %v3084_v49 = vadd.f32 0.5, %v3083_v40  ;;  %v6755_v3 = vld [vmem:[#allocation51_spill] sm:$0xff] }
 0x40f   : > { %v6266_v13 = vadd.f32 %v3086_v34, %v3085_v12  ;;  %v6756_v34 = vld [vmem:[#allocation52_spill] sm:$0xff] }
 0x411   : > { %5046 = vtanh.f32 %v6266_v13 }
 0x418   : > { %v2840_v25 = vpop.f32.mrb[12].mxu0  ;;  %v2911_v37 = vpop.f32.mrb[12].mxu1 }
 0x419   : > { %v4829_v55 = vadd.f32 %v2840_v25, %v5993_v29  ;;  %v2842_v27 = vpop.f32.mrb[13].mxu0  ;;  %v2913_v30 = vpop.f32.mrb[13].mxu1  ;;  %v4837_v19 = vadd.f32 %v2911_v37, %v6000_v57  ;;  %v6760_v25 = vld [vmem:[#allocation56_spill] sm:$0xff] }
 0x41a   : > { %v4830_v43 = vadd.f32 %v2842_v27, %v5996_v5  ;;  %v4838_v63 = vadd.f32 %v2913_v30, %v6005_v11  ;;  %v6761_v30 = vld [vmem:[#allocation59_spill] sm:$0xff] }
 0x41b   : > { %v5047_v50 = vpop.eup %5046  ;;  %v3090_v54 = vmul.f32 0.5, %v4829_v55 }
 0x41c   : > { %v3089_v61 = vmul.f32 %v5047_v50, %v3084_v49  ;;  %v3094_v62 = vmul.f32 0.5, %v4830_v43  ;;  %v6762_v43 = vld [vmem:[#allocation60_spill] sm:$0xff]  ;;  %v6763_v50 = vld [vmem:[#allocation61_spill] sm:$0xff] }
 0x41d   : > { %5048 = vtanh.f32 %v3090_v54  ;;  %v6764_v54 = vld [vmem:[#allocation89_spill] sm:$0xff] }
 0x41e   : > { %5050 = vtanh.f32 %v3094_v62  ;;  %3198 = vmatmul.mubr.f32.vlgmr.msra.gmra.mrb[6].mxu0 %v3089_v61  ;;  %3269 = vmatmul.mubr.f32.vlgmr.msra.gmra.mrb[6].mxu1 %v3089_v61 }
 0x41f   : > { %4684 = vmatpush1.bf16.msra.mxu0 %v5730_v59  ;;  %4716 = vmatpush1.bf16.msra.mxu1 %v5734_v60  ;;  %5052 = vtanh.f32 %v4837_v19  ;;  %v6757_v59 = vld [vmem:[#allocation53_spill] sm:$0xff]  ;;  %v3099_v60 = vmul.f32 0.5, %v4838_v63  ;;  %v6765_v19 = vld [vmem:[#allocation62_spill] sm:$0xff]  ;;  %v6767_v63 = vld [vmem:[#allocation64_spill] sm:$0xff] }
 0x420   : > { %4686 = vmatprep.subr.bf16.mxu0 %v5736_v0  ;;  %4718 = vmatprep.subr.bf16.mxu1 %v5739_v9  ;;  %v6758_v0 = vld [vmem:[#allocation54_spill] sm:$0xff]  ;;  %v6759_v9 = vld [vmem:[#allocation55_spill] sm:$0xff] }
 0x421   : > { %3349 = vmatprep.mubr.f32.mxu0 %v6610_v18  ;;  %3420 = vmatprep.mubr.f32.mxu1 %v6610_v18  ;;  %5054 = vtanh.f32 %v3099_v60  ;;  %v6771_v60 = vld [vmem:[#allocation68_spill] sm:$0xff] }
 0x423   : > { %4688 = vmatpush1.bf16.msra.mxu0 %v5742_v24  ;;  %4720 = vmatpush1.bf16.msra.mxu1 %v6755_v3  ;;  %v6768_v3 = vld [vmem:[#allocation65_spill] sm:$0xff] }
 0x424   : > { %4690 = vmatprep.subr.bf16.mxu0 %v6756_v34  ;;  %4722 = vmatprep.subr.bf16.mxu1 %v6757_v59  ;;  %v6769_v34 = vld [vmem:[#allocation66_spill] sm:$0xff]  ;;  %v6770_v59 = vld [vmem:[#allocation67_spill] sm:$0xff] }
 0x427   : > { %v5049_v12 = vpop.eup %5048  ;;  %4692 = vmatpush1.bf16.msra.mxu0 %v6758_v0  ;;  %4724 = vmatpush1.bf16.msra.mxu1 %v6759_v9  ;;  %v6773_v9 = vld [vmem:[#allocation70_spill] sm:$0xff] }
 0x428   : > { %v5051_v2 = vpop.eup %5050  ;;  %v3092_v40 = vmul.f32 0.5, %v5049_v12  ;;  %4694 = vmatprep.subr.bf16.mxu0 %v6760_v25  ;;  %4726 = vmatprep.subr.bf16.mxu1 %v6695_v26  ;;  %v6766_v26 = vld [vmem:[#allocation63_spill] sm:$0xff]  ;;  %v6772_v12 = vld [vmem:[#allocation69_spill] sm:$0xff] }
 0x429   : > { %v3096_v37 = vmul.f32 0.5, %v5051_v2  ;;  %v5053_v55 = vpop.eup %5052  ;;  %v6774_v2 = vld [vmem:[#allocation71_spill] sm:$0xff] }
 0x42a   : > { %v3093_v24 = vadd.f32 0.5, %v3092_v40 }
 0x42b   : > { %v3097_v27 = vadd.f32 0.5, %v3096_v37  ;;  %4696 = vmatpush1.bf16.msra.mxu0 %v6696_v17  ;;  %4728 = vmatpush1.bf16.msra.mxu1 %v6761_v30  ;;  %v5055_v17 = vpop.eup %5054  ;;  %v6775_v37 = vld [vmem:[#allocation72_spill] sm:$0xff] }
 0x42c   : > { %v3104_v49 = vmul.f32 %v5053_v55, %v3093_v24  ;;  %4698 = vmatprep.subr.bf16.mxu0 %v6762_v43  ;;  %4730 = vmatprep.subr.bf16.mxu1 %v6763_v50  ;;  %v3101_v0 = vmul.f32 0.5, %v5055_v17  ;;  %v6776_v24 = vld [vmem:[#allocation73_spill] sm:$0xff]  ;;  %v6779_v17 = vld [vmem:[#allocation78_spill] sm:$0xff] }
 0x42d   : > { %v3103_v61 = vmul.f32 %v3097_v27, %v6764_v54 }
 0x42f   : > { %v6292_v62 = vadd.f32 %v3104_v49, %v3103_v61  ;;  %4700 = vmatpush1.bf16.msra.mxu0 %v6765_v19  ;;  %4732 = vmatpush1.bf16.msra.mxu1 %v6766_v26  ;;  %v3102_v49 = vadd.f32 0.5, %v3101_v0  ;;  %v6777_v61 = vld [vmem:[#allocation74_spill] sm:$0xff] }
 0x430   : > { %4702 = vmatprep.subr.bf16.mxu0 %v6767_v63  ;;  %4734 = vmatprep.subr.bf16.mxu1 %v6768_v3  ;;  %v6778_v63 = vld [vmem:[#allocation102_spill] sm:$0xff] }
 0x431   : > { %5056 = vtanh.f32 %v6292_v62 }
 0x433   : > { %4704 = vmatpush1.bf16.msra.mxu0 %v6769_v34  ;;  %4736 = vmatpush1.bf16.msra.mxu1 %v6770_v59  ;;  %v6780_v34 = vld [vmem:[#allocation79_spill] sm:$0xff]  ;;  %v6781_v59 = vld [vmem:[#allocation80_spill] sm:$0xff] }
 0x434   : > { %4706 = vmatprep.subr.bf16.mxu0 %v6771_v60  ;;  %4738 = vmatprep.subr.bf16.mxu1 %v6772_v12  ;;  %v6782_v60 = vld [vmem:[#allocation81_spill] sm:$0xff] }
 0x437   : > { %4708 = vmatpush1.bf16.msra.mxu0 %v6773_v9  ;;  %4740 = vmatpush1.bf16.msra.mxu1 %v6774_v2  ;;  %v6786_v2 = vld [vmem:[#allocation87_spill] sm:$0xff] }
 0x438   : > { %v2992_v40 = vpop.f32.mrb[20].mxu0  ;;  %v3063_v25 = vpop.f32.mrb[20].mxu1  ;;  %4710 = vmatprep.subr.bf16.mxu0 %v6775_v37  ;;  %4742 = vmatprep.subr.bf16.mxu1 %v6776_v24 }
 0x439   : > { %v4845_v55 = vadd.f32 %v2992_v40, %v6041_v20  ;;  %v2994_v27 = vpop.f32.mrb[21].mxu0  ;;  %v3065_v30 = vpop.f32.mrb[21].mxu1  ;;  %v4853_v3 = vadd.f32 %v3063_v25, %v6778_v63 }
 0x43a   : > { %v4846_v43 = vadd.f32 %v2994_v27, %v6044_v14 }
 0x43b   : > { %v5057_v50 = vpop.eup %5056  ;;  %v3108_v54 = vmul.f32 0.5, %v4845_v55  ;;  %4712 = vmatpush1.bf16.msra.mxu0 %v6777_v61  ;;  %4744 = vmatpush1.bf16.msra.mxu1 %v6714_v56  ;;  %v6783_v56 = vld [vmem:[#allocation76_spill] sm:$0xff] }
 0x43c   : > { %v3107_v19 = vmul.f32 %v5057_v50, %v3102_v49  ;;  %v3112_v26 = vmul.f32 0.5, %v4846_v43  ;;  %4746 = vmatprep.subr.bf16.mxu0 %v6650_v22  ;;  %4778 = vmatprep.subr.bf16.mxu1 %v6715_v45  ;;  %v4854_v12 = vadd.f32 %v3065_v30, %v6783_v56  ;;  %v6784_v22 = vld [vmem:[#allocation82_spill] sm:$0xff]  ;;  %v6785_v45 = vld [vmem:[#allocation83_spill] sm:$0xff] }
 0x43d   : > { %5058 = vtanh.f32 %v3108_v54 }
 0x43e   : > { %5060 = vtanh.f32 %v3112_v26  ;;  %3350 = vmatmul.mubr.f32.vlgmr.msra.gmra.mrb[14].mxu0 %v3107_v19  ;;  %3421 = vmatmul.mubr.f32.vlgmr.msra.gmra.mrb[14].mxu1 %v3107_v19  ;;  %v3117_v0 = vmul.f32 0.5, %v4854_v12 }
 0x43f   : > { %4748 = vmatpush1.bf16.msra.mxu0 %v6779_v17  ;;  %4780 = vmatpush1.bf16.msra.mxu1 %v6780_v34  ;;  %5062 = vtanh.f32 %v4853_v3 }
 0x440   : > { %4750 = vmatprep.subr.bf16.mxu0 %v6781_v59  ;;  %4782 = vmatprep.subr.bf16.mxu1 %v6782_v60  ;;  %5064 = vtanh.f32 %v3117_v0 }
 0x441   : > { %3501 = vmatprep.mubr.f32.mxu0 %v6610_v18  ;;  %3572 = vmatprep.mubr.f32.mxu1 %v6610_v18 }
 0x443   : > { %4752 = vmatpush1.bf16.msra.mxu0 %v6784_v22  ;;  %4784 = vmatpush1.bf16.msra.mxu1 %v6785_v45 }
 0x444   : > { %4754 = vmatprep.subr.bf16.mxu0 %v6724_v51  ;;  %4786 = vmatprep.subr.bf16.mxu1 %v6725_v23 }
 0x447   : > { %v5059_v9 = vpop.eup %5058  ;;  %4756 = vmatpush1.bf16.msra.mxu0 %v6726_v39  ;;  %4788 = vmatpush1.bf16.msra.mxu1 %v6786_v2 }
 0x448   : > { %v5061_v40 = vpop.eup %5060  ;;  %v3110_v25 = vmul.f32 0.5, %v5059_v9  ;;  %4758 = vmatprep.subr.bf16.mxu0 %v6728_v36  ;;  %4790 = vmatprep.subr.bf16.mxu1 %v6664_v31 }
 0x449   : > { %v3114_v18 = vmul.f32 0.5, %v5061_v40  ;;  %v5063_v24 = vpop.eup %5062 }
 0x44a   : > { %v3111_v37 = vadd.f32 0.5, %v3110_v25  ;;  %v5065_v31 = vpop.eup %5064 }
 0x44b   : > { %v3115_v55 = vadd.f32 0.5, %v3114_v18  ;;  %4760 = vmatpush1.bf16.msra.mxu0 %v6665_v21  ;;  %4792 = vmatpush1.bf16.msra.mxu1 %v6666_v8 }
 0x44c   : > { %v3122_v51 = vmul.f32 %v5063_v24, %v3111_v37  ;;  %4762 = vmatprep.subr.bf16.mxu0 %v6667_v58  ;;  %4794 = vmatprep.subr.bf16.mxu1 %v6668_v4 }
 0x44d   : > { %v3121_v39 = vmul.f32 %v3115_v55, %v6208_v28  ;;  %v3119_v28 = vmul.f32 0.5, %v5065_v31 }
 0x44f   : > { %v6334_v23 = vadd.f32 %v3122_v51, %v3121_v39  ;;  %4764 = vmatpush1.bf16.msra.mxu0 %v6669_v46  ;;  %4796 = vmatpush1.bf16.msra.mxu1 %v6670_v35 }
 0x450   : > { %4766 = vmatprep.subr.bf16.mxu0 %v5884_v7  ;;  %4798 = vmatprep.subr.bf16.mxu1 %v6671_v41  ;;  %v3120_v7 = vadd.f32 0.5, %v3119_v28 }
 0x451   : > { %5066 = vtanh.f32 %v6334_v23 }
 0x453   : > { %4768 = vmatpush1.bf16.msra.mxu0 %v5890_v6  ;;  %4800 = vmatpush1.bf16.msra.mxu1 %v5894_v15 }
 0x454   : > { %4770 = vmatprep.subr.bf16.mxu0 %v5896_v42  ;;  %4802 = vmatprep.subr.bf16.mxu1 %v5899_v44 }
 0x457   : > { %4772 = vmatpush1.bf16.msra.mxu0 %v5902_v53  ;;  %4804 = vmatpush1.bf16.msra.mxu1 %v5906_v47 }
 0x458   : > { %4774 = vmatprep.subr.bf16.mxu0 %v5908_v1  ;;  %4806 = vmatprep.subr.bf16.mxu1 %v5911_v16 }
 0x45b   : > { %v5067_v21 = vpop.eup %5066  ;;  %4776 = vmatpush1.bf16.msra.mxu0 %v5914_v48  ;;  %4808 = vmatpush1.bf16.msra.mxu1 %v5918_v33 }
 0x45c   : > { %v3125_v6 = vmul.f32 %v5067_v21, %v3120_v7 }
 0x45e   : > { %3502 = vmatmul.mubr.f32.vlgmr.msra.gmra.mrb[22].mxu0 %v3125_v6  ;;  %3573 = vmatmul.mubr.f32.vlgmr.msra.gmra.mrb[22].mxu1 %v3125_v6 }
 0x4f1   : > { %v3199_v15 = vpop.f32.mrb[6].mxu0  ;;  %v3270_v42 = vpop.f32.mrb[6].mxu1 }
 0x4f2   : > { %v4815_v44 = vadd.f32 %v3199_v15, %v6754_v10  ;;  %v3201_v53 = vpop.f32.mrb[7].mxu0  ;;  %v3272_v46 = vpop.f32.mrb[7].mxu1  ;;  %v4823_v16 = vadd.f32 %v3270_v42, %v5976_v32 }
 0x4f3   : > { %v4816_v47 = vadd.f32 %v3201_v53, %v6686_v38  ;;  %v4824_v48 = vadd.f32 %v3272_v46, %v6687_v52 }
 0x4f4   : > { %v3583_v1 = vmul.f32 0.5, %v4815_v44 }
 0x4f5   : > { %v3587_v4 = vmul.f32 0.5, %v4816_v47  ;;  %v3592_v33 = vmul.f32 0.5, %v4824_v48 }
 0x4f6   : > { %5068 = vtanh.f32 %v3583_v1 }
 0x4f7   : > { %5070 = vtanh.f32 %v3587_v4 }
 0x4f8   : > { %5072 = vtanh.f32 %v4823_v16 }
 0x4f9   : > { %5074 = vtanh.f32 %v3592_v33 }
 0x500   : > { %v5069_v58 = vpop.eup %5068 }
 0x501   : > { %v5071_v8 = vpop.eup %5070  ;;  %v3585_v35 = vmul.f32 0.5, %v5069_v58 }
 0x502   : > { %v3589_v41 = vmul.f32 0.5, %v5071_v8  ;;  %v5073_v10 = vpop.eup %5072 }
 0x503   : > { %v3586_v36 = vadd.f32 0.5, %v3585_v35  ;;  %v5075_v32 = vpop.eup %5074 }
 0x504   : > { %v3590_v27 = vadd.f32 0.5, %v3589_v41  ;;  %v3594_v43 = vmul.f32 0.5, %v5075_v32 }
 0x505   : > { %v3597_v30 = vmul.f32 %v5073_v10, %v3586_v36 }
 0x506   : > { %v3596_v38 = vmul.f32 %v3590_v27, %v6266_v13  ;;  %v3595_v26 = vadd.f32 0.5, %v3594_v43 }
 0x508   : > { %v3598_v49 = vadd.f32 %v3597_v30, %v3596_v38 }
 0x50a   : > { %5076 = vtanh.f32 %v3598_v49  ;;  %3638 = vst [vmem:[#allocation6] sm:$0xff] %v3598_v49 }
 0x511   : > { %v3351_v50 = vpop.f32.mrb[14].mxu0  ;;  %v3422_v54 = vpop.f32.mrb[14].mxu1 }
 0x512   : > { %v4831_v52 = vadd.f32 %v3351_v50, %v5993_v29  ;;  %v3353_v61 = vpop.f32.mrb[15].mxu0  ;;  %v3424_v19 = vpop.f32.mrb[15].mxu1  ;;  %v4839_v13 = vadd.f32 %v3422_v54, %v6000_v57 }
 0x513   : > { %v4832_v3 = vadd.f32 %v3353_v61, %v5996_v5  ;;  %v4840_v12 = vadd.f32 %v3424_v19, %v6005_v11 }
 0x514   : > { %v5077_v17 = vpop.eup %5076  ;;  %v3601_v34 = vmul.f32 0.5, %v4831_v52 }
 0x515   : > { %v3600_v59 = vmul.f32 %v5077_v17, %v3595_v26  ;;  %v3605_v60 = vmul.f32 0.5, %v4832_v3  ;;  %v3610_v22 = vmul.f32 0.5, %v4840_v12 }
 0x516   : > { %5078 = vtanh.f32 %v3601_v34 }
 0x517   : > { %3637 = vst [vmem:[#allocation5] sm:$0xff] %v3600_v59  ;;  %5080 = vtanh.f32 %v3605_v60 }
 0x518   : > { %5082 = vtanh.f32 %v4839_v13 }
 0x519   : > { %5084 = vtanh.f32 %v3610_v22 }
 0x51e   : > { %v3647_v10 = vld [vmem:[#allocation5] sm:$0xff] (!%p3846_p10) }
 0x51f   : > { %v3653_v38 = vmul.f32 (!%p3846_p10), %v3647_v10, %v3647_v10 }
 0x520   : > { %v5079_v45 = vpop.eup %5078 }
 0x521   : > { %v5081_v29 = vpop.eup %5080  ;;  %v3603_v0 = vmul.f32 0.5, %v5079_v45  ;;  %3654 = vadd.xlane.f32.xlu0 (!%p3846_p10), %v3653_v38 }
 0x522   : > { %v3607_v9 = vmul.f32 0.5, %v5081_v29  ;;  %v5083_v5 = vpop.eup %5082 }
 0x523   : > { %v3604_v2 = vadd.f32 0.5, %v3603_v0  ;;  %v5085_v57 = vpop.eup %5084 }
 0x524   : > { %v3608_v40 = vadd.f32 0.5, %v3607_v9  ;;  %v3612_v24 = vmul.f32 0.5, %v5085_v57 }
 0x525   : > { %v3615_v25 = vmul.f32 %v5083_v5, %v3604_v2 }
 0x526   : > { %v3614_v18 = vmul.f32 %v3608_v40, %v6292_v62  ;;  %v3613_v28 = vadd.f32 0.5, %v3612_v24 }
 0x528   : > { %v3616_v37 = vadd.f32 %v3615_v25, %v3614_v18 }
 0x52a   : > { %5086 = vtanh.f32 %v3616_v37  ;;  %3640 = vst [vmem:[#allocation8] sm:$0xff] %v3616_v37 }
 0x531   : > { %v3503_v55 = vpop.f32.mrb[22].mxu0  ;;  %v3574_v51 = vpop.f32.mrb[22].mxu1 }
 0x532   : > { %v4847_v11 = vadd.f32 %v3503_v55, %v6041_v20  ;;  %v3505_v39 = vpop.f32.mrb[23].mxu0  ;;  %v3576_v31 = vpop.f32.mrb[23].mxu1  ;;  %v4855_v62 = vadd.f32 %v3574_v51, %v6778_v63 }
 0x533   : > { %v4848_v7 = vadd.f32 %v3505_v39, %v6044_v14  ;;  %v4856_v44 = vadd.f32 %v3576_v31, %v6783_v56 }
 0x534   : > { %v5087_v21 = vpop.eup %5086  ;;  %v3619_v6 = vmul.f32 0.5, %v4847_v11 }
 0x535   : > { %v3618_v15 = vmul.f32 %v5087_v21, %v3613_v28  ;;  %v3623_v42 = vmul.f32 0.5, %v4848_v7  ;;  %v3628_v53 = vmul.f32 0.5, %v4856_v44 }
 0x536   : > { %5088 = vtanh.f32 %v3619_v6 }
 0x537   : > { %3639 = vst [vmem:[#allocation7] sm:$0xff] %v3618_v15  ;;  %5090 = vtanh.f32 %v3623_v42 }
 0x538   : > { %5092 = vtanh.f32 %v4855_v62 }
 0x539   : > { %5094 = vtanh.f32 %v3628_v53 }
 0x53e   : > { %v3648_v27 = vld [vmem:[#allocation7] sm:$0xff] (!%p3846_p10) }
 0x53f   : > { %v3650_v49 = vmul.f32 (!%p3846_p10), %v3648_v27, %v3647_v10 }
 0x540   : > { %v5089_v46 = vpop.eup %5088 }
 0x541   : > { %v5091_v20 = vpop.eup %5090  ;;  %v3621_v47 = vmul.f32 0.5, %v5089_v46 }
 0x542   : > { %v3625_v1 = vmul.f32 0.5, %v5091_v20  ;;  %v5093_v14 = vpop.eup %5092 }
 0x543   : > { %v3622_v4 = vadd.f32 0.5, %v3621_v47  ;;  %v5095_v63 = vpop.eup %5094 }
 0x544   : > { %v3626_v16 = vadd.f32 0.5, %v3625_v1  ;;  %v3630_v8 = vmul.f32 0.5, %v5095_v63 }
 0x545   : > { %v3633_v48 = vmul.f32 %v5093_v14, %v3622_v4 }
 0x546   : > { %v3632_v33 = vmul.f32 %v3626_v16, %v6334_v23  ;;  %v3631_v35 = vadd.f32 0.5, %v3630_v8  ;;  %v3664_v23 = vmul.f32 (!%p3846_p10), %v3648_v27, %v3648_v27 }
 0x548   : > { %v3634_v58 = vadd.f32 %v3633_v48, %v3632_v33  ;;  %3665 = vadd.xlane.f32.xlu0 (!%p3846_p10), %v3664_v23 }
 0x54a   : > { %5096 = vtanh.f32 %v3634_v58  ;;  %3642 = vst [vmem:[#allocation10] sm:$0xff] %v3634_v58 }
 0x551   : > { %3646 = sbr.rel (%p3846_p10) target bundleno = 1573 (0x625), region = 100 }
 0x554   : > { %v5097_v41 = vpop.eup %5096 }
 0x555   : > { %v3636_v56 = vmul.f32 %v5097_v41, %v3631_v35 }
 0x557   : > { %3641 = vst [vmem:[#allocation9] sm:$0xff] %v3636_v56 }
 0x55e   : > { %v3649_v36 = vld [vmem:[#allocation9] sm:$0xff] }
 0x55f   : > { %v3681_v30 = vmul.f32 %v3649_v36, %v3649_v36  ;;  %v3678_v32 = vmul.f32 %v3649_v36, %v3647_v10 }
 0x561   : > { %3682 = vadd.xlane.f32.xlu1 %v3681_v30  ;;  %3679 = vadd.xlane.f32.xlu0 %v3678_v32 }
 0x565   : > { %3651 = vadd.xlane.f32.xlu1 %v3650_v49 }
 0x5ae   : > { %v3655_v50 = vpop.xlane.xlu0 %3654 }
 0x5af   : > { %vm3658_vm2 = vcmp.eq.f32.partialorder %v3655_v50, inf  ;;  %v3661_v34 = vand.u32 2147483648, %v3655_v50  ;;  %vm3660_vm3 = vcmp.eq.f32.partialorder %v3655_v50, 0.0 }
 0x5d5   : > { %v3666_v54 = vpop.xlane.xlu0 %3665 }
 0x5d6   : > { %vm3669_vm4 = vcmp.eq.f32.partialorder %v3666_v54, inf  ;;  %v3672_v29 = vand.u32 2147483648, %v3666_v54  ;;  %vm3671_vm5 = vcmp.eq.f32.partialorder %v3666_v54, 0.0 }
 0x5ee   : > { %v3683_v43 = vpop.xlane.xlu1 %3682  ;;  %v3680_v37 = vpop.xlane.xlu0 %3679 }
 0x5ef   : > { %5098 = vrsqrt.f32 %v3683_v43  ;;  %vm3686_vm0 = vcmp.eq.f32.partialorder %v3683_v43, inf  ;;  %v3689_v26 = vand.u32 2147483648, %v3683_v43  ;;  %vm3688_vm1 = vcmp.eq.f32.partialorder %v3683_v43, 0.0 }
 0x5f0   : > { %5100 = vrsqrt.f32 %v3655_v50 }
 0x5f1   : > { %5102 = vrsqrt.f32 %v3666_v54 }
 0x5f2   : > { %v3652_v57 = vpop.xlane.xlu1 %3651 }
 0x5f9   : > { %v5099_v52 = vpop.eup %5098 }
 0x5fa   : > { %v5101_v61 = vpop.eup %5100  ;;  %v3685_v19 = vmul.f32 %v5099_v52, %v3683_v43 }
 0x5fb   : > { %v3657_v3 = vmul.f32 %v5101_v61, %v3655_v50  ;;  %v5103_v59 = vpop.eup %5102 }
 0x5fc   : > { %v3687_v17 = vsel %vm3686_vm0, %v3683_v43, %v3685_v19  ;;  %v3668_v22 = vmul.f32 %v5103_v59, %v3666_v54 }
 0x5fd   : > { %v3690_v60 = vsel %vm3688_vm1, %v3689_v26, %v3687_v17  ;;  %v3659_v13 = vsel %vm3658_vm2, %v3655_v50, %v3657_v3 }
 0x5fe   : > { %v3662_v12 = vsel %vm3660_vm3, %v3661_v34, %v3659_v13  ;;  %v3691_v45 = vmax.f32 %v3690_v60, 1e-08  ;;  %v3670_v9 = vsel %vm3669_vm4, %v3666_v54, %v3668_v22 }
 0x5ff   : > { %v3663_v0 = vmax.f32 %v3662_v12, 1e-08  ;;  %v3673_v2 = vsel %vm3671_vm5, %v3672_v29, %v3670_v9 }
 0x600   : > { %v3674_v40 = vmax.f32 %v3673_v2, 1e-08 }
 0x601   : > { %v3692_v5 = vmul.f32 %v3691_v45, %v3663_v0 }
 0x602   : > { %v3675_v25 = vmul.f32 %v3674_v40, %v3663_v0 }
 0x603   : > { %5104 = vrcp.f32 %v3692_v5 }
 0x604   : > { %5106 = vrcp.f32 %v3675_v25 }
 0x60d   : > { %v5105_v18 = vpop.eup %5104 }
 0x60e   : > { %v5107_v24 = vpop.eup %5106  ;;  %v3694_v55 = vmul.f32 %v5105_v18, %v3680_v37 }
 0x60f   : > { %v3677_v51 = vmul.f32 %v5107_v24, %v3652_v57 }
 0x611   : > { %v3695_v11 = vmax.f32 %v3677_v51, %v3694_v55 }
 0x613   : > { %v3696_v39 = vmul.f32 0.5, %v3695_v11 }
 0x615   : > { %5108 = vtanh.f32 %v3696_v39 }
 0x61f   : > { %v5109_v31 = vpop.eup %5108 }
 0x620   : > { %v3698_v28 = vmul.f32 0.5, %v5109_v31 }
 0x622   : > { %v3699_v7 = vadd.f32 0.5, %v3698_v28 }
 0x624   : > { %3701 = vst.msk [vmem:[%s6787_s23] sm:$0xff] %vm3700_vm6, %v3699_v7 }
 0x625 PF: > { %s6788_s28 = sld [smem:[#allocation25_spill]] }
 0x62b   : > { %s26_s21 = sadd.s32 1, %s6788_s28  }
 0x62c   : > { %p23_p11 = scmp.ge.s32.totalorder %s26_s21, 4  }
 0x62e   :  { %25 = sbr.rel (!%p23_p11) target bundleno = 6 (0x6), region = 145 }
 0x635   :  { %3713 = vsyncpa [#allocation12], 1 }
 0x636   :  { %3715 = vsyncpa [#allocation12 + $0x1], 1 }
 0x637   :  { %3716 = vsyncpa [#allocation14], 1 }
 0x638   :  { %3717 = vsyncpa [#allocation17], 1 }
 0x639   :  { %3718 = vsyncpa [#allocation20], 1 }

</bundles_post_ra>
